<compile_context>
chip_gen: v7x
topology: tpu7x:2x2x1
jax: 0.10.0
libtpu: 0.0.40
codegen_flags: <defaults>
</compile_context>

<pallas_src>
import numpy as np
import jax
import jax.numpy as jnp
from jax.experimental import pallas as pl
from jax.experimental.pallas import tpu as pltpu


# ----------------------------------------------------------------------------
# Fused kernel factory: whole forward pass in one pallas_call (no grid).
# ----------------------------------------------------------------------------
def make_agg_kernel(n_layers, B, T, Hh):
    H3 = 3 * Hh
    H6 = 6 * Hh
    N_h = 2 * Hh

    def gru_cell(xg, hg, bias_row, h_prev, m):
        """PyTorch GRU cell, gate order [r, z, n]; biases r/z pre-folded.

        xg, hg: (B, 3H)  input / recurrent gate pre-activations
        bias_row: (1, 4H) = [b_ir+b_hr | b_iz+b_hz | b_in | b_hn]
        h_prev: (B, H);  m: (B, 1) 1.0 = valid step, 0.0 = padding
        """
        r = jax.nn.sigmoid(xg[:, 0:Hh] + hg[:, 0:Hh] + bias_row[:, 0:Hh])
        z = jax.nn.sigmoid(xg[:, Hh:2 * Hh] + hg[:, Hh:2 * Hh]
                           + bias_row[:, Hh:2 * Hh])
        n = jnp.tanh(xg[:, 2 * Hh:H3] + bias_row[:, 2 * Hh:H3]
                     + r * (hg[:, 2 * Hh:H3] + bias_row[:, H3:4 * Hh]))
        h_new = (1.0 - z) * n + z * h_prev
        # packed-sequence semantics: padded steps emit 0 and freeze hidden
        return m * h_new, m * h_new + (1.0 - m) * h_prev

    def kernel(*refs):
        x_ref, mask_ref = refs[0], refs[1]
        layer_refs = refs[2:2 + 3 * n_layers]
        (w_att_ref, b_att_ref, w1_ref, b1_ref,
         w2_ref, b2_ref) = refs[2 + 3 * n_layers:2 + 3 * n_layers + 6]
        out_ref = refs[-1]

        mask = mask_ref[...]                                  # (B, T)

        # -------- stacked bidirectional multi-layer GRU (fully unrolled) ----
        x_flat = x_ref[...]                                   # (T*B, Din) time-major
        out_cat = None
        for layer in range(n_layers):
            wi_ref, wh_ref, b_ref = layer_refs[3 * layer:3 * layer + 3]
            if layer > 0:
                x_flat = jnp.concatenate(out_cat, axis=0)     # (T*B, N_h)

            # input projections: all time steps, both directions, ONE matmul
            xg_all = jnp.dot(x_flat, wi_ref[...],
                             preferred_element_type=jnp.float32)   # (T*B, 6H)
            wh_cat = wh_ref[...]                              # (H, 6H)
            bias = b_ref[...]                                 # (2, 4H)
            b_f, b_r = bias[0:1, :], bias[1:2, :]

            h_f = jnp.zeros((B, Hh), jnp.float32)
            h_r = jnp.zeros((B, Hh), jnp.float32)
            outs_f = [None] * T
            outs_r = [None] * T
            for t in range(T):        # static unroll; recurrence in registers
                tr = T - 1 - t        # reverse direction processes position tr
                h2 = jnp.concatenate([h_f, h_r], axis=0)      # (2B, H)
                hg = jnp.dot(h2, wh_cat,
                             preferred_element_type=jnp.float32)   # (2B, 6H)
                outs_f[t], h_f = gru_cell(
                    xg_all[t * B:(t + 1) * B, 0:H3], hg[0:B, 0:H3],
                    b_f, h_f, mask[:, t:t + 1])
                outs_r[tr], h_r = gru_cell(
                    xg_all[tr * B:(tr + 1) * B, H3:H6], hg[B:2 * B, H3:H6],
                    b_r, h_r, mask[:, tr:tr + 1])
            # concat directions per position -> next layer input / h_enc rows
            out_cat = [jnp.concatenate([outs_f[t], outs_r[t]], axis=1)
                       for t in range(T)]                     # T x (B, N_h)

        # -------- attention + length mask + softmax + pooling + MLP ---------
        h_all = jnp.concatenate(out_cat, axis=0)              # (T*B, N_h)
        logit_all = (jnp.dot(h_all, w_att_ref[...],
                             preferred_element_type=jnp.float32)
                     + b_att_ref[...])                        # (T*B, 1)
        logits = jnp.concatenate(
            [jnp.where(mask[:, t:t + 1] > 0.5,
                       logit_all[t * B:(t + 1) * B, :], -100.0)
             for t in range(T)], axis=1)                      # (B, T)

        # softmax over time (nn.Softmax() on 2D -> dim=1)
        logits = logits - jnp.max(logits, axis=1, keepdims=True)
        e = jnp.exp(logits)
        att = e / jnp.sum(e, axis=1, keepdims=True)           # (B, T)

        # K_agg = sum_t att[:, t] * h_enc[:, t, :]
        k_agg = jnp.zeros((B, N_h), jnp.float32)
        for t in range(T):
            k_agg = k_agg + att[:, t:t + 1] * out_cat[t]

        # agg_out: Linear -> Tanh -> Linear
        hid = jnp.tanh(jnp.dot(k_agg, w1_ref[...],
                               preferred_element_type=jnp.float32) + b1_ref[...])
        out_ref[...] = (jnp.dot(hid, w2_ref[...],
                                preferred_element_type=jnp.float32) + b2_ref[...])

    return kernel


# ----------------------------------------------------------------------------
# Parameter init (deterministic, PyTorch-style uniform bounds), pre-fused
# into the kernel layout: Wi_cat (Din, 6H), Wh_cat (H, 6H), bias (2, 4H).
# ----------------------------------------------------------------------------
def init_params(key, N_word, N_h, N_depth):
    Hh = N_h // 2
    n_keys = 8 * N_depth + 6
    keys = list(jax.random.split(key, n_keys))
    ki = 0

    def u(shape, bound):
        nonlocal ki
        k = keys[ki]
        ki += 1
        return jax.random.uniform(k, shape, jnp.float32, -bound, bound)

    params = {"n_layers": N_depth, "Hh": Hh, "gru": {}}
    gru_bound = 1.0 / np.sqrt(Hh)
    for layer in range(N_depth):
        din = N_word if layer == 0 else N_h
        wis, whs, bs = [], [], []
        for _direction in range(2):              # 0 = forward, 1 = reverse
            wih = u((3 * Hh, din), gru_bound)    # rows [r; z; n]
            whh = u((3 * Hh, Hh), gru_bound)
            bih = u((3 * Hh,), gru_bound)
            bhh = u((3 * Hh,), gru_bound)
            wis.append(wih.T)                    # (din, 3H)
            whs.append(whh.T)                    # (H, 3H)
            bs.append(jnp.concatenate(
                [bih[0:Hh] + bhh[0:Hh],          # folded r bias
                 bih[Hh:2 * Hh] + bhh[Hh:2 * Hh],  # folded z bias
                 bih[2 * Hh:3 * Hh],             # b_in
                 bhh[2 * Hh:3 * Hh]]).reshape(1, 4 * Hh))
        params["gru"][layer] = (
            jnp.concatenate(wis, axis=1),        # (din, 6H)  [fwd | rev]
            jnp.concatenate(whs, axis=1),        # (H, 6H)    [fwd | rev]
            jnp.concatenate(bs, axis=0),         # (2, 4H)
        )

    lb = 1.0 / np.sqrt(N_h)
    params["w_att"] = u((1, N_h), lb).T          # agg_att: Linear(N_h, 1) -> (N_h, 1)
    params["b_att"] = u((1,), lb).reshape(1, 1)
    params["w1_t"] = u((N_h, N_h), lb).T         # agg_out[0]: Linear(N_h, N_h)
    params["b1"] = u((N_h,), lb).reshape(1, N_h)
    params["w2_t"] = u((6, N_h), lb).T           # agg_out[2]: Linear(N_h, 6)
    params["b2"] = u((6,), lb).reshape(1, 6)
    return params


# ----------------------------------------------------------------------------
# Full forward pass: one fused pallas_call.
# ----------------------------------------------------------------------------
def agg_predictor_forward(params, x_emb_var, x_len):
    B, T, N_word_ = x_emb_var.shape
    n_layers = params["n_layers"]
    Hh = params["Hh"]

    x_len_j = jnp.asarray(np.asarray(x_len), jnp.int32)
    mask = (jnp.arange(T)[None, :] < x_len_j[:, None]).astype(jnp.float32)  # (B, T)

    # Single cheap input-prep op: time-major flat layout so every in-kernel
    # time slice is a contiguous, static row block (no flips / per-layer copies).
    x_tm = jnp.transpose(x_emb_var.astype(jnp.float32),
                         (1, 0, 2)).reshape(T * B, N_word_)

    flat = []
    for layer in range(n_layers):
        flat += list(params["gru"][layer])
    flat += [params["w_att"], params["b_att"], params["w1_t"], params["b1"],
             params["w2_t"], params["b2"]]

    kernel = make_agg_kernel(n_layers, B, T, Hh)
    return pl.pallas_call(
        kernel,
        out_shape=jax.ShapeDtypeStruct((B, 6), jnp.float32),
    )(x_tm, mask, *flat)


if __name__ == "__main__":
    # small, module-consistent shapes: N_word=32, N_h=16, N_depth=2, B=2, T=8
    N_word_s, N_h_s, N_depth_s = 32, 16, 2
    B, T = 2, 8

    key = jax.random.PRNGKey(0)
    pkey, xkey = jax.random.split(key)
    params = init_params(pkey, N_word_s, N_h_s, N_depth_s)

    x_emb_var = jax.random.normal(xkey, (B, T, N_word_s), jnp.float32)
    x_len = np.array([8, 5], dtype=np.int32)

    agg_score = agg_predictor_forward(params, x_emb_var, x_len)
    agg_score = jax.block_until_ready(agg_score)
    assert agg_score.shape == (B, 6)
    assert bool(jnp.all(jnp.isfinite(agg_score)))
    print("KERNEL_OK")
</pallas_src>

<mosaic_0001>
module attributes {stable_mosaic.version = 11 : i64} {
  func.func @kernel(%arg0: memref<16x32xf32, #tpu.memory_space<vmem>>, %arg1: memref<2x8xf32, #tpu.memory_space<vmem>>, %arg2: memref<32x48xf32, #tpu.memory_space<vmem>>, %arg3: memref<8x48xf32, #tpu.memory_space<vmem>>, %arg4: memref<2x32xf32, #tpu.memory_space<vmem>>, %arg5: memref<16x48xf32, #tpu.memory_space<vmem>>, %arg6: memref<8x48xf32, #tpu.memory_space<vmem>>, %arg7: memref<2x32xf32, #tpu.memory_space<vmem>>, %arg8: memref<16x1xf32, #tpu.memory_space<vmem>>, %arg9: memref<1x1xf32, #tpu.memory_space<vmem>>, %arg10: memref<16x16xf32, #tpu.memory_space<vmem>>, %arg11: memref<1x16xf32, #tpu.memory_space<vmem>>, %arg12: memref<16x6xf32, #tpu.memory_space<vmem>>, %arg13: memref<1x6xf32, #tpu.memory_space<vmem>>, %arg14: memref<2x6xf32, #tpu.memory_space<vmem>>) attributes {dimension_semantics = [], scalar_prefetch = 0 : i64, scratch_operands = 0 : i64, tpu.core_type = #tpu.core_type<tc>} {
    %c0 = arith.constant 0 : index
    %c0_0 = arith.constant 0 : index
    %0 = vector.load %arg1[%c0, %c0_0] : memref<2x8xf32, #tpu.memory_space<vmem>>, vector<2x8xf32>
    %c0_1 = arith.constant 0 : index
    %c0_2 = arith.constant 0 : index
    %1 = vector.load %arg0[%c0_1, %c0_2] : memref<16x32xf32, #tpu.memory_space<vmem>>, vector<16x32xf32>
    %c0_3 = arith.constant 0 : index
    %c0_4 = arith.constant 0 : index
    %2 = vector.load %arg2[%c0_3, %c0_4] : memref<32x48xf32, #tpu.memory_space<vmem>>, vector<32x48xf32>
    %cst = arith.constant dense<0.000000e+00> : vector<16x48xf32>
    %3 = tpu.matmul %1, %2, %cst {dimension_numbers = #tpu.dot_dimension_numbers<[1], [0], [0], [1], [0, 0, 1, 1], [], []>} : vector<16x32xf32>, vector<32x48xf32>, vector<16x48xf32> -> vector<16x48xf32>
    %c0_5 = arith.constant 0 : index
    %c0_6 = arith.constant 0 : index
    %4 = vector.load %arg3[%c0_5, %c0_6] : memref<8x48xf32, #tpu.memory_space<vmem>>, vector<8x48xf32>
    %c0_7 = arith.constant 0 : index
    %c0_8 = arith.constant 0 : index
    %5 = vector.load %arg4[%c0_7, %c0_8] : memref<2x32xf32, #tpu.memory_space<vmem>>, vector<2x32xf32>
    %6 = vector.extract_strided_slice %5 {offsets = [0, 0], sizes = [1, 32], strides = [1, 1]} : vector<2x32xf32> to vector<1x32xf32>
    %7 = vector.extract_strided_slice %5 {offsets = [1, 0], sizes = [1, 32], strides = [1, 1]} : vector<2x32xf32> to vector<1x32xf32>
    %cst_9 = arith.constant 0.000000e+00 : f32
    %8 = vector.broadcast %cst_9 : f32 to vector<2x8xf32>
    %cst_10 = arith.constant 0.000000e+00 : f32
    %9 = vector.broadcast %cst_10 : f32 to vector<2x8xf32>
    %10 = tpu.concatenate %8, %9 in 0 : vector<2x8xf32>, vector<2x8xf32> -> vector<4x8xf32>
    %cst_11 = arith.constant dense<0.000000e+00> : vector<4x48xf32>
    %11 = tpu.matmul %10, %4, %cst_11 {dimension_numbers = #tpu.dot_dimension_numbers<[1], [0], [0], [1], [0, 0, 1, 1], [], []>} : vector<4x8xf32>, vector<8x48xf32>, vector<4x48xf32> -> vector<4x48xf32>
    %12 = vector.extract_strided_slice %3 {offsets = [0, 0], sizes = [2, 24], strides = [1, 1]} : vector<16x48xf32> to vector<2x24xf32>
    %13 = vector.extract_strided_slice %11 {offsets = [0, 0], sizes = [2, 24], strides = [1, 1]} : vector<4x48xf32> to vector<2x24xf32>
    %14 = vector.extract_strided_slice %0 {offsets = [0, 0], sizes = [2, 1], strides = [1, 1]} : vector<2x8xf32> to vector<2x1xf32>
    %15 = vector.extract_strided_slice %12 {offsets = [0, 0], sizes = [2, 8], strides = [1, 1]} : vector<2x24xf32> to vector<2x8xf32>
    %16 = vector.extract_strided_slice %13 {offsets = [0, 0], sizes = [2, 8], strides = [1, 1]} : vector<2x24xf32> to vector<2x8xf32>
    %17 = arith.addf %15, %16 : vector<2x8xf32>
    %18 = vector.extract_strided_slice %6 {offsets = [0, 0], sizes = [1, 8], strides = [1, 1]} : vector<1x32xf32> to vector<1x8xf32>
    %19 = vector.broadcast %18 : vector<1x8xf32> to vector<2x8xf32>
    %20 = arith.addf %17, %19 : vector<2x8xf32>
    %21 = arith.negf %20 : vector<2x8xf32>
    %22 = math.exp %21 : vector<2x8xf32>
    %cst_12 = arith.constant 1.000000e+00 : f32
    %23 = vector.broadcast %cst_12 : f32 to vector<2x8xf32>
    %24 = arith.addf %23, %22 : vector<2x8xf32>
    %25 = arith.divf %23, %24 : vector<2x8xf32>
    %26 = vector.extract_strided_slice %12 {offsets = [0, 8], sizes = [2, 8], strides = [1, 1]} : vector<2x24xf32> to vector<2x8xf32>
    %27 = vector.extract_strided_slice %13 {offsets = [0, 8], sizes = [2, 8], strides = [1, 1]} : vector<2x24xf32> to vector<2x8xf32>
    %28 = arith.addf %26, %27 : vector<2x8xf32>
    %29 = vector.extract_strided_slice %6 {offsets = [0, 8], sizes = [1, 8], strides = [1, 1]} : vector<1x32xf32> to vector<1x8xf32>
    %30 = vector.broadcast %29 : vector<1x8xf32> to vector<2x8xf32>
    %31 = arith.addf %28, %30 : vector<2x8xf32>
    %32 = arith.negf %31 : vector<2x8xf32>
    %33 = math.exp %32 : vector<2x8xf32>
    %cst_13 = arith.constant 1.000000e+00 : f32
    %34 = vector.broadcast %cst_13 : f32 to vector<2x8xf32>
    %35 = arith.addf %34, %33 : vector<2x8xf32>
    %36 = arith.divf %34, %35 : vector<2x8xf32>
    %37 = vector.extract_strided_slice %12 {offsets = [0, 16], sizes = [2, 8], strides = [1, 1]} : vector<2x24xf32> to vector<2x8xf32>
    %38 = vector.extract_strided_slice %6 {offsets = [0, 16], sizes = [1, 8], strides = [1, 1]} : vector<1x32xf32> to vector<1x8xf32>
    %39 = vector.broadcast %38 : vector<1x8xf32> to vector<2x8xf32>
    %40 = arith.addf %37, %39 : vector<2x8xf32>
    %41 = vector.extract_strided_slice %13 {offsets = [0, 16], sizes = [2, 8], strides = [1, 1]} : vector<2x24xf32> to vector<2x8xf32>
    %42 = vector.extract_strided_slice %6 {offsets = [0, 24], sizes = [1, 8], strides = [1, 1]} : vector<1x32xf32> to vector<1x8xf32>
    %43 = vector.broadcast %42 : vector<1x8xf32> to vector<2x8xf32>
    %44 = arith.addf %41, %43 : vector<2x8xf32>
    %45 = arith.mulf %25, %44 : vector<2x8xf32>
    %46 = arith.addf %40, %45 : vector<2x8xf32>
    %47 = math.tanh %46 : vector<2x8xf32>
    %cst_14 = arith.constant 1.000000e+00 : f32
    %48 = vector.broadcast %cst_14 : f32 to vector<2x8xf32>
    %49 = arith.subf %48, %36 : vector<2x8xf32>
    %50 = arith.mulf %49, %47 : vector<2x8xf32>
    %51 = arith.mulf %36, %8 : vector<2x8xf32>
    %52 = arith.addf %50, %51 : vector<2x8xf32>
    %53 = vector.broadcast %14 : vector<2x1xf32> to vector<2x8xf32>
    %54 = arith.mulf %53, %52 : vector<2x8xf32>
    %55 = vector.broadcast %14 : vector<2x1xf32> to vector<2x8xf32>
    %56 = arith.mulf %55, %52 : vector<2x8xf32>
    %cst_15 = arith.constant 1.000000e+00 : f32
    %57 = vector.broadcast %cst_15 : f32 to vector<2x1xf32>
    %58 = arith.subf %57, %14 : vector<2x1xf32>
    %59 = vector.broadcast %58 : vector<2x1xf32> to vector<2x8xf32>
    %60 = arith.mulf %59, %8 : vector<2x8xf32>
    %61 = arith.addf %56, %60 : vector<2x8xf32>
    %62 = vector.extract_strided_slice %3 {offsets = [14, 24], sizes = [2, 24], strides = [1, 1]} : vector<16x48xf32> to vector<2x24xf32>
    %63 = vector.extract_strided_slice %11 {offsets = [2, 24], sizes = [2, 24], strides = [1, 1]} : vector<4x48xf32> to vector<2x24xf32>
    %64 = vector.extract_strided_slice %0 {offsets = [0, 7], sizes = [2, 1], strides = [1, 1]} : vector<2x8xf32> to vector<2x1xf32>
    %65 = vector.extract_strided_slice %62 {offsets = [0, 0], sizes = [2, 8], strides = [1, 1]} : vector<2x24xf32> to vector<2x8xf32>
    %66 = vector.extract_strided_slice %63 {offsets = [0, 0], sizes = [2, 8], strides = [1, 1]} : vector<2x24xf32> to vector<2x8xf32>
    %67 = arith.addf %65, %66 : vector<2x8xf32>
    %68 = vector.extract_strided_slice %7 {offsets = [0, 0], sizes = [1, 8], strides = [1, 1]} : vector<1x32xf32> to vector<1x8xf32>
    %69 = vector.broadcast %68 : vector<1x8xf32> to vector<2x8xf32>
    %70 = arith.addf %67, %69 : vector<2x8xf32>
    %71 = arith.negf %70 : vector<2x8xf32>
    %72 = math.exp %71 : vector<2x8xf32>
    %cst_16 = arith.constant 1.000000e+00 : f32
    %73 = vector.broadcast %cst_16 : f32 to vector<2x8xf32>
    %74 = arith.addf %73, %72 : vector<2x8xf32>
    %75 = arith.divf %73, %74 : vector<2x8xf32>
    %76 = vector.extract_strided_slice %62 {offsets = [0, 8], sizes = [2, 8], strides = [1, 1]} : vector<2x24xf32> to vector<2x8xf32>
    %77 = vector.extract_strided_slice %63 {offsets = [0, 8], sizes = [2, 8], strides = [1, 1]} : vector<2x24xf32> to vector<2x8xf32>
    %78 = arith.addf %76, %77 : vector<2x8xf32>
    %79 = vector.extract_strided_slice %7 {offsets = [0, 8], sizes = [1, 8], strides = [1, 1]} : vector<1x32xf32> to vector<1x8xf32>
    %80 = vector.broadcast %79 : vector<1x8xf32> to vector<2x8xf32>
    %81 = arith.addf %78, %80 : vector<2x8xf32>
    %82 = arith.negf %81 : vector<2x8xf32>
    %83 = math.exp %82 : vector<2x8xf32>
    %cst_17 = arith.constant 1.000000e+00 : f32
    %84 = vector.broadcast %cst_17 : f32 to vector<2x8xf32>
    %85 = arith.addf %84, %83 : vector<2x8xf32>
    %86 = arith.divf %84, %85 : vector<2x8xf32>
    %87 = vector.extract_strided_slice %62 {offsets = [0, 16], sizes = [2, 8], strides = [1, 1]} : vector<2x24xf32> to vector<2x8xf32>
    %88 = vector.extract_strided_slice %7 {offsets = [0, 16], sizes = [1, 8], strides = [1, 1]} : vector<1x32xf32> to vector<1x8xf32>
    %89 = vector.broadcast %88 : vector<1x8xf32> to vector<2x8xf32>
    %90 = arith.addf %87, %89 : vector<2x8xf32>
    %91 = vector.extract_strided_slice %63 {offsets = [0, 16], sizes = [2, 8], strides = [1, 1]} : vector<2x24xf32> to vector<2x8xf32>
    %92 = vector.extract_strided_slice %7 {offsets = [0, 24], sizes = [1, 8], strides = [1, 1]} : vector<1x32xf32> to vector<1x8xf32>
    %93 = vector.broadcast %92 : vector<1x8xf32> to vector<2x8xf32>
    %94 = arith.addf %91, %93 : vector<2x8xf32>
    %95 = arith.mulf %75, %94 : vector<2x8xf32>
    %96 = arith.addf %90, %95 : vector<2x8xf32>
    %97 = math.tanh %96 : vector<2x8xf32>
    %cst_18 = arith.constant 1.000000e+00 : f32
    %98 = vector.broadcast %cst_18 : f32 to vector<2x8xf32>
    %99 = arith.subf %98, %86 : vector<2x8xf32>
    %100 = arith.mulf %99, %97 : vector<2x8xf32>
    %101 = arith.mulf %86, %9 : vector<2x8xf32>
    %102 = arith.addf %100, %101 : vector<2x8xf32>
    %103 = vector.broadcast %64 : vector<2x1xf32> to vector<2x8xf32>
    %104 = arith.mulf %103, %102 : vector<2x8xf32>
    %105 = vector.broadcast %64 : vector<2x1xf32> to vector<2x8xf32>
    %106 = arith.mulf %105, %102 : vector<2x8xf32>
    %cst_19 = arith.constant 1.000000e+00 : f32
    %107 = vector.broadcast %cst_19 : f32 to vector<2x1xf32>
    %108 = arith.subf %107, %64 : vector<2x1xf32>
    %109 = vector.broadcast %108 : vector<2x1xf32> to vector<2x8xf32>
    %110 = arith.mulf %109, %9 : vector<2x8xf32>
    %111 = arith.addf %106, %110 : vector<2x8xf32>
    %112 = tpu.concatenate %61, %111 in 0 : vector<2x8xf32>, vector<2x8xf32> -> vector<4x8xf32>
    %cst_20 = arith.constant dense<0.000000e+00> : vector<4x48xf32>
    %113 = tpu.matmul %112, %4, %cst_20 {dimension_numbers = #tpu.dot_dimension_numbers<[1], [0], [0], [1], [0, 0, 1, 1], [], []>} : vector<4x8xf32>, vector<8x48xf32>, vector<4x48xf32> -> vector<4x48xf32>
    %114 = vector.extract_strided_slice %3 {offsets = [2, 0], sizes = [2, 24], strides = [1, 1]} : vector<16x48xf32> to vector<2x24xf32>
    %115 = vector.extract_strided_slice %113 {offsets = [0, 0], sizes = [2, 24], strides = [1, 1]} : vector<4x48xf32> to vector<2x24xf32>
    %116 = vector.extract_strided_slice %0 {offsets = [0, 1], sizes = [2, 1], strides = [1, 1]} : vector<2x8xf32> to vector<2x1xf32>
    %117 = vector.extract_strided_slice %114 {offsets = [0, 0], sizes = [2, 8], strides = [1, 1]} : vector<2x24xf32> to vector<2x8xf32>
    %118 = vector.extract_strided_slice %115 {offsets = [0, 0], sizes = [2, 8], strides = [1, 1]} : vector<2x24xf32> to vector<2x8xf32>
    %119 = arith.addf %117, %118 : vector<2x8xf32>
    %120 = vector.extract_strided_slice %6 {offsets = [0, 0], sizes = [1, 8], strides = [1, 1]} : vector<1x32xf32> to vector<1x8xf32>
    %121 = vector.broadcast %120 : vector<1x8xf32> to vector<2x8xf32>
    %122 = arith.addf %119, %121 : vector<2x8xf32>
    %123 = arith.negf %122 : vector<2x8xf32>
    %124 = math.exp %123 : vector<2x8xf32>
    %cst_21 = arith.constant 1.000000e+00 : f32
    %125 = vector.broadcast %cst_21 : f32 to vector<2x8xf32>
    %126 = arith.addf %125, %124 : vector<2x8xf32>
    %127 = arith.divf %125, %126 : vector<2x8xf32>
    %128 = vector.extract_strided_slice %114 {offsets = [0, 8], sizes = [2, 8], strides = [1, 1]} : vector<2x24xf32> to vector<2x8xf32>
    %129 = vector.extract_strided_slice %115 {offsets = [0, 8], sizes = [2, 8], strides = [1, 1]} : vector<2x24xf32> to vector<2x8xf32>
    %130 = arith.addf %128, %129 : vector<2x8xf32>
    %131 = vector.extract_strided_slice %6 {offsets = [0, 8], sizes = [1, 8], strides = [1, 1]} : vector<1x32xf32> to vector<1x8xf32>
    %132 = vector.broadcast %131 : vector<1x8xf32> to vector<2x8xf32>
    %133 = arith.addf %130, %132 : vector<2x8xf32>
    %134 = arith.negf %133 : vector<2x8xf32>
    %135 = math.exp %134 : vector<2x8xf32>
    %cst_22 = arith.constant 1.000000e+00 : f32
    %136 = vector.broadcast %cst_22 : f32 to vector<2x8xf32>
    %137 = arith.addf %136, %135 : vector<2x8xf32>
    %138 = arith.divf %136, %137 : vector<2x8xf32>
    %139 = vector.extract_strided_slice %114 {offsets = [0, 16], sizes = [2, 8], strides = [1, 1]} : vector<2x24xf32> to vector<2x8xf32>
    %140 = vector.extract_strided_slice %6 {offsets = [0, 16], sizes = [1, 8], strides = [1, 1]} : vector<1x32xf32> to vector<1x8xf32>
    %141 = vector.broadcast %140 : vector<1x8xf32> to vector<2x8xf32>
    %142 = arith.addf %139, %141 : vector<2x8xf32>
    %143 = vector.extract_strided_slice %115 {offsets = [0, 16], sizes = [2, 8], strides = [1, 1]} : vector<2x24xf32> to vector<2x8xf32>
    %144 = vector.extract_strided_slice %6 {offsets = [0, 24], sizes = [1, 8], strides = [1, 1]} : vector<1x32xf32> to vector<1x8xf32>
    %145 = vector.broadcast %144 : vector<1x8xf32> to vector<2x8xf32>
    %146 = arith.addf %143, %145 : vector<2x8xf32>
    %147 = arith.mulf %127, %146 : vector<2x8xf32>
    %148 = arith.addf %142, %147 : vector<2x8xf32>
    %149 = math.tanh %148 : vector<2x8xf32>
    %cst_23 = arith.constant 1.000000e+00 : f32
    %150 = vector.broadcast %cst_23 : f32 to vector<2x8xf32>
    %151 = arith.subf %150, %138 : vector<2x8xf32>
    %152 = arith.mulf %151, %149 : vector<2x8xf32>
    %153 = arith.mulf %138, %61 : vector<2x8xf32>
    %154 = arith.addf %152, %153 : vector<2x8xf32>
    %155 = vector.broadcast %116 : vector<2x1xf32> to vector<2x8xf32>
    %156 = arith.mulf %155, %154 : vector<2x8xf32>
    %157 = vector.broadcast %116 : vector<2x1xf32> to vector<2x8xf32>
    %158 = arith.mulf %157, %154 : vector<2x8xf32>
    %cst_24 = arith.constant 1.000000e+00 : f32
    %159 = vector.broadcast %cst_24 : f32 to vector<2x1xf32>
    %160 = arith.subf %159, %116 : vector<2x1xf32>
    %161 = vector.broadcast %160 : vector<2x1xf32> to vector<2x8xf32>
    %162 = arith.mulf %161, %61 : vector<2x8xf32>
    %163 = arith.addf %158, %162 : vector<2x8xf32>
    %164 = vector.extract_strided_slice %3 {offsets = [12, 24], sizes = [2, 24], strides = [1, 1]} : vector<16x48xf32> to vector<2x24xf32>
    %165 = vector.extract_strided_slice %113 {offsets = [2, 24], sizes = [2, 24], strides = [1, 1]} : vector<4x48xf32> to vector<2x24xf32>
    %166 = vector.extract_strided_slice %0 {offsets = [0, 6], sizes = [2, 1], strides = [1, 1]} : vector<2x8xf32> to vector<2x1xf32>
    %167 = vector.extract_strided_slice %164 {offsets = [0, 0], sizes = [2, 8], strides = [1, 1]} : vector<2x24xf32> to vector<2x8xf32>
    %168 = vector.extract_strided_slice %165 {offsets = [0, 0], sizes = [2, 8], strides = [1, 1]} : vector<2x24xf32> to vector<2x8xf32>
    %169 = arith.addf %167, %168 : vector<2x8xf32>
    %170 = vector.extract_strided_slice %7 {offsets = [0, 0], sizes = [1, 8], strides = [1, 1]} : vector<1x32xf32> to vector<1x8xf32>
    %171 = vector.broadcast %170 : vector<1x8xf32> to vector<2x8xf32>
    %172 = arith.addf %169, %171 : vector<2x8xf32>
    %173 = arith.negf %172 : vector<2x8xf32>
    %174 = math.exp %173 : vector<2x8xf32>
    %cst_25 = arith.constant 1.000000e+00 : f32
    %175 = vector.broadcast %cst_25 : f32 to vector<2x8xf32>
    %176 = arith.addf %175, %174 : vector<2x8xf32>
    %177 = arith.divf %175, %176 : vector<2x8xf32>
    %178 = vector.extract_strided_slice %164 {offsets = [0, 8], sizes = [2, 8], strides = [1, 1]} : vector<2x24xf32> to vector<2x8xf32>
    %179 = vector.extract_strided_slice %165 {offsets = [0, 8], sizes = [2, 8], strides = [1, 1]} : vector<2x24xf32> to vector<2x8xf32>
    %180 = arith.addf %178, %179 : vector<2x8xf32>
    %181 = vector.extract_strided_slice %7 {offsets = [0, 8], sizes = [1, 8], strides = [1, 1]} : vector<1x32xf32> to vector<1x8xf32>
    %182 = vector.broadcast %181 : vector<1x8xf32> to vector<2x8xf32>
    %183 = arith.addf %180, %182 : vector<2x8xf32>
    %184 = arith.negf %183 : vector<2x8xf32>
    %185 = math.exp %184 : vector<2x8xf32>
    %cst_26 = arith.constant 1.000000e+00 : f32
    %186 = vector.broadcast %cst_26 : f32 to vector<2x8xf32>
    %187 = arith.addf %186, %185 : vector<2x8xf32>
    %188 = arith.divf %186, %187 : vector<2x8xf32>
    %189 = vector.extract_strided_slice %164 {offsets = [0, 16], sizes = [2, 8], strides = [1, 1]} : vector<2x24xf32> to vector<2x8xf32>
    %190 = vector.extract_strided_slice %7 {offsets = [0, 16], sizes = [1, 8], strides = [1, 1]} : vector<1x32xf32> to vector<1x8xf32>
    %191 = vector.broadcast %190 : vector<1x8xf32> to vector<2x8xf32>
    %192 = arith.addf %189, %191 : vector<2x8xf32>
    %193 = vector.extract_strided_slice %165 {offsets = [0, 16], sizes = [2, 8], strides = [1, 1]} : vector<2x24xf32> to vector<2x8xf32>
    %194 = vector.extract_strided_slice %7 {offsets = [0, 24], sizes = [1, 8], strides = [1, 1]} : vector<1x32xf32> to vector<1x8xf32>
    %195 = vector.broadcast %194 : vector<1x8xf32> to vector<2x8xf32>
    %196 = arith.addf %193, %195 : vector<2x8xf32>
    %197 = arith.mulf %177, %196 : vector<2x8xf32>
    %198 = arith.addf %192, %197 : vector<2x8xf32>
    %199 = math.tanh %198 : vector<2x8xf32>
    %cst_27 = arith.constant 1.000000e+00 : f32
    %200 = vector.broadcast %cst_27 : f32 to vector<2x8xf32>
    %201 = arith.subf %200, %188 : vector<2x8xf32>
    %202 = arith.mulf %201, %199 : vector<2x8xf32>
    %203 = arith.mulf %188, %111 : vector<2x8xf32>
    %204 = arith.addf %202, %203 : vector<2x8xf32>
    %205 = vector.broadcast %166 : vector<2x1xf32> to vector<2x8xf32>
    %206 = arith.mulf %205, %204 : vector<2x8xf32>
    %207 = vector.broadcast %166 : vector<2x1xf32> to vector<2x8xf32>
    %208 = arith.mulf %207, %204 : vector<2x8xf32>
    %cst_28 = arith.constant 1.000000e+00 : f32
    %209 = vector.broadcast %cst_28 : f32 to vector<2x1xf32>
    %210 = arith.subf %209, %166 : vector<2x1xf32>
    %211 = vector.broadcast %210 : vector<2x1xf32> to vector<2x8xf32>
    %212 = arith.mulf %211, %111 : vector<2x8xf32>
    %213 = arith.addf %208, %212 : vector<2x8xf32>
    %214 = tpu.concatenate %163, %213 in 0 : vector<2x8xf32>, vector<2x8xf32> -> vector<4x8xf32>
    %cst_29 = arith.constant dense<0.000000e+00> : vector<4x48xf32>
    %215 = tpu.matmul %214, %4, %cst_29 {dimension_numbers = #tpu.dot_dimension_numbers<[1], [0], [0], [1], [0, 0, 1, 1], [], []>} : vector<4x8xf32>, vector<8x48xf32>, vector<4x48xf32> -> vector<4x48xf32>
    %216 = vector.extract_strided_slice %3 {offsets = [4, 0], sizes = [2, 24], strides = [1, 1]} : vector<16x48xf32> to vector<2x24xf32>
    %217 = vector.extract_strided_slice %215 {offsets = [0, 0], sizes = [2, 24], strides = [1, 1]} : vector<4x48xf32> to vector<2x24xf32>
    %218 = vector.extract_strided_slice %0 {offsets = [0, 2], sizes = [2, 1], strides = [1, 1]} : vector<2x8xf32> to vector<2x1xf32>
    %219 = vector.extract_strided_slice %216 {offsets = [0, 0], sizes = [2, 8], strides = [1, 1]} : vector<2x24xf32> to vector<2x8xf32>
    %220 = vector.extract_strided_slice %217 {offsets = [0, 0], sizes = [2, 8], strides = [1, 1]} : vector<2x24xf32> to vector<2x8xf32>
    %221 = arith.addf %219, %220 : vector<2x8xf32>
    %222 = vector.extract_strided_slice %6 {offsets = [0, 0], sizes = [1, 8], strides = [1, 1]} : vector<1x32xf32> to vector<1x8xf32>
    %223 = vector.broadcast %222 : vector<1x8xf32> to vector<2x8xf32>
    %224 = arith.addf %221, %223 : vector<2x8xf32>
    %225 = arith.negf %224 : vector<2x8xf32>
    %226 = math.exp %225 : vector<2x8xf32>
    %cst_30 = arith.constant 1.000000e+00 : f32
    %227 = vector.broadcast %cst_30 : f32 to vector<2x8xf32>
    %228 = arith.addf %227, %226 : vector<2x8xf32>
    %229 = arith.divf %227, %228 : vector<2x8xf32>
    %230 = vector.extract_strided_slice %216 {offsets = [0, 8], sizes = [2, 8], strides = [1, 1]} : vector<2x24xf32> to vector<2x8xf32>
    %231 = vector.extract_strided_slice %217 {offsets = [0, 8], sizes = [2, 8], strides = [1, 1]} : vector<2x24xf32> to vector<2x8xf32>
    %232 = arith.addf %230, %231 : vector<2x8xf32>
    %233 = vector.extract_strided_slice %6 {offsets = [0, 8], sizes = [1, 8], strides = [1, 1]} : vector<1x32xf32> to vector<1x8xf32>
    %234 = vector.broadcast %233 : vector<1x8xf32> to vector<2x8xf32>
    %235 = arith.addf %232, %234 : vector<2x8xf32>
    %236 = arith.negf %235 : vector<2x8xf32>
    %237 = math.exp %236 : vector<2x8xf32>
    %cst_31 = arith.constant 1.000000e+00 : f32
    %238 = vector.broadcast %cst_31 : f32 to vector<2x8xf32>
    %239 = arith.addf %238, %237 : vector<2x8xf32>
    %240 = arith.divf %238, %239 : vector<2x8xf32>
    %241 = vector.extract_strided_slice %216 {offsets = [0, 16], sizes = [2, 8], strides = [1, 1]} : vector<2x24xf32> to vector<2x8xf32>
    %242 = vector.extract_strided_slice %6 {offsets = [0, 16], sizes = [1, 8], strides = [1, 1]} : vector<1x32xf32> to vector<1x8xf32>
    %243 = vector.broadcast %242 : vector<1x8xf32> to vector<2x8xf32>
    %244 = arith.addf %241, %243 : vector<2x8xf32>
    %245 = vector.extract_strided_slice %217 {offsets = [0, 16], sizes = [2, 8], strides = [1, 1]} : vector<2x24xf32> to vector<2x8xf32>
    %246 = vector.extract_strided_slice %6 {offsets = [0, 24], sizes = [1, 8], strides = [1, 1]} : vector<1x32xf32> to vector<1x8xf32>
    %247 = vector.broadcast %246 : vector<1x8xf32> to vector<2x8xf32>
    %248 = arith.addf %245, %247 : vector<2x8xf32>
    %249 = arith.mulf %229, %248 : vector<2x8xf32>
    %250 = arith.addf %244, %249 : vector<2x8xf32>
    %251 = math.tanh %250 : vector<2x8xf32>
    %cst_32 = arith.constant 1.000000e+00 : f32
    %252 = vector.broadcast %cst_32 : f32 to vector<2x8xf32>
    %253 = arith.subf %252, %240 : vector<2x8xf32>
    %254 = arith.mulf %253, %251 : vector<2x8xf32>
    %255 = arith.mulf %240, %163 : vector<2x8xf32>
    %256 = arith.addf %254, %255 : vector<2x8xf32>
    %257 = vector.broadcast %218 : vector<2x1xf32> to vector<2x8xf32>
    %258 = arith.mulf %257, %256 : vector<2x8xf32>
    %259 = vector.broadcast %218 : vector<2x1xf32> to vector<2x8xf32>
    %260 = arith.mulf %259, %256 : vector<2x8xf32>
    %cst_33 = arith.constant 1.000000e+00 : f32
    %261 = vector.broadcast %cst_33 : f32 to vector<2x1xf32>
    %262 = arith.subf %261, %218 : vector<2x1xf32>
    %263 = vector.broadcast %262 : vector<2x1xf32> to vector<2x8xf32>
    %264 = arith.mulf %263, %163 : vector<2x8xf32>
    %265 = arith.addf %260, %264 : vector<2x8xf32>
    %266 = vector.extract_strided_slice %3 {offsets = [10, 24], sizes = [2, 24], strides = [1, 1]} : vector<16x48xf32> to vector<2x24xf32>
    %267 = vector.extract_strided_slice %215 {offsets = [2, 24], sizes = [2, 24], strides = [1, 1]} : vector<4x48xf32> to vector<2x24xf32>
    %268 = vector.extract_strided_slice %0 {offsets = [0, 5], sizes = [2, 1], strides = [1, 1]} : vector<2x8xf32> to vector<2x1xf32>
    %269 = vector.extract_strided_slice %266 {offsets = [0, 0], sizes = [2, 8], strides = [1, 1]} : vector<2x24xf32> to vector<2x8xf32>
    %270 = vector.extract_strided_slice %267 {offsets = [0, 0], sizes = [2, 8], strides = [1, 1]} : vector<2x24xf32> to vector<2x8xf32>
    %271 = arith.addf %269, %270 : vector<2x8xf32>
    %272 = vector.extract_strided_slice %7 {offsets = [0, 0], sizes = [1, 8], strides = [1, 1]} : vector<1x32xf32> to vector<1x8xf32>
    %273 = vector.broadcast %272 : vector<1x8xf32> to vector<2x8xf32>
    %274 = arith.addf %271, %273 : vector<2x8xf32>
    %275 = arith.negf %274 : vector<2x8xf32>
    %276 = math.exp %275 : vector<2x8xf32>
    %cst_34 = arith.constant 1.000000e+00 : f32
    %277 = vector.broadcast %cst_34 : f32 to vector<2x8xf32>
    %278 = arith.addf %277, %276 : vector<2x8xf32>
    %279 = arith.divf %277, %278 : vector<2x8xf32>
    %280 = vector.extract_strided_slice %266 {offsets = [0, 8], sizes = [2, 8], strides = [1, 1]} : vector<2x24xf32> to vector<2x8xf32>
    %281 = vector.extract_strided_slice %267 {offsets = [0, 8], sizes = [2, 8], strides = [1, 1]} : vector<2x24xf32> to vector<2x8xf32>
    %282 = arith.addf %280, %281 : vector<2x8xf32>
    %283 = vector.extract_strided_slice %7 {offsets = [0, 8], sizes = [1, 8], strides = [1, 1]} : vector<1x32xf32> to vector<1x8xf32>
    %284 = vector.broadcast %283 : vector<1x8xf32> to vector<2x8xf32>
    %285 = arith.addf %282, %284 : vector<2x8xf32>
    %286 = arith.negf %285 : vector<2x8xf32>
    %287 = math.exp %286 : vector<2x8xf32>
    %cst_35 = arith.constant 1.000000e+00 : f32
    %288 = vector.broadcast %cst_35 : f32 to vector<2x8xf32>
    %289 = arith.addf %288, %287 : vector<2x8xf32>
    %290 = arith.divf %288, %289 : vector<2x8xf32>
    %291 = vector.extract_strided_slice %266 {offsets = [0, 16], sizes = [2, 8], strides = [1, 1]} : vector<2x24xf32> to vector<2x8xf32>
    %292 = vector.extract_strided_slice %7 {offsets = [0, 16], sizes = [1, 8], strides = [1, 1]} : vector<1x32xf32> to vector<1x8xf32>
    %293 = vector.broadcast %292 : vector<1x8xf32> to vector<2x8xf32>
    %294 = arith.addf %291, %293 : vector<2x8xf32>
    %295 = vector.extract_strided_slice %267 {offsets = [0, 16], sizes = [2, 8], strides = [1, 1]} : vector<2x24xf32> to vector<2x8xf32>
    %296 = vector.extract_strided_slice %7 {offsets = [0, 24], sizes = [1, 8], strides = [1, 1]} : vector<1x32xf32> to vector<1x8xf32>
    %297 = vector.broadcast %296 : vector<1x8xf32> to vector<2x8xf32>
    %298 = arith.addf %295, %297 : vector<2x8xf32>
    %299 = arith.mulf %279, %298 : vector<2x8xf32>
    %300 = arith.addf %294, %299 : vector<2x8xf32>
    %301 = math.tanh %300 : vector<2x8xf32>
    %cst_36 = arith.constant 1.000000e+00 : f32
    %302 = vector.broadcast %cst_36 : f32 to vector<2x8xf32>
    %303 = arith.subf %302, %290 : vector<2x8xf32>
    %304 = arith.mulf %303, %301 : vector<2x8xf32>
    %305 = arith.mulf %290, %213 : vector<2x8xf32>
    %306 = arith.addf %304, %305 : vector<2x8xf32>
    %307 = vector.broadcast %268 : vector<2x1xf32> to vector<2x8xf32>
    %308 = arith.mulf %307, %306 : vector<2x8xf32>
    %309 = vector.broadcast %268 : vector<2x1xf32> to vector<2x8xf32>
    %310 = arith.mulf %309, %306 : vector<2x8xf32>
    %cst_37 = arith.constant 1.000000e+00 : f32
    %311 = vector.broadcast %cst_37 : f32 to vector<2x1xf32>
    %312 = arith.subf %311, %268 : vector<2x1xf32>
    %313 = vector.broadcast %312 : vector<2x1xf32> to vector<2x8xf32>
    %314 = arith.mulf %313, %213 : vector<2x8xf32>
    %315 = arith.addf %310, %314 : vector<2x8xf32>
    %316 = tpu.concatenate %265, %315 in 0 : vector<2x8xf32>, vector<2x8xf32> -> vector<4x8xf32>
    %cst_38 = arith.constant dense<0.000000e+00> : vector<4x48xf32>
    %317 = tpu.matmul %316, %4, %cst_38 {dimension_numbers = #tpu.dot_dimension_numbers<[1], [0], [0], [1], [0, 0, 1, 1], [], []>} : vector<4x8xf32>, vector<8x48xf32>, vector<4x48xf32> -> vector<4x48xf32>
    %318 = vector.extract_strided_slice %3 {offsets = [6, 0], sizes = [2, 24], strides = [1, 1]} : vector<16x48xf32> to vector<2x24xf32>
    %319 = vector.extract_strided_slice %317 {offsets = [0, 0], sizes = [2, 24], strides = [1, 1]} : vector<4x48xf32> to vector<2x24xf32>
    %320 = vector.extract_strided_slice %0 {offsets = [0, 3], sizes = [2, 1], strides = [1, 1]} : vector<2x8xf32> to vector<2x1xf32>
    %321 = vector.extract_strided_slice %318 {offsets = [0, 0], sizes = [2, 8], strides = [1, 1]} : vector<2x24xf32> to vector<2x8xf32>
    %322 = vector.extract_strided_slice %319 {offsets = [0, 0], sizes = [2, 8], strides = [1, 1]} : vector<2x24xf32> to vector<2x8xf32>
    %323 = arith.addf %321, %322 : vector<2x8xf32>
    %324 = vector.extract_strided_slice %6 {offsets = [0, 0], sizes = [1, 8], strides = [1, 1]} : vector<1x32xf32> to vector<1x8xf32>
    %325 = vector.broadcast %324 : vector<1x8xf32> to vector<2x8xf32>
    %326 = arith.addf %323, %325 : vector<2x8xf32>
    %327 = arith.negf %326 : vector<2x8xf32>
    %328 = math.exp %327 : vector<2x8xf32>
    %cst_39 = arith.constant 1.000000e+00 : f32
    %329 = vector.broadcast %cst_39 : f32 to vector<2x8xf32>
    %330 = arith.addf %329, %328 : vector<2x8xf32>
    %331 = arith.divf %329, %330 : vector<2x8xf32>
    %332 = vector.extract_strided_slice %318 {offsets = [0, 8], sizes = [2, 8], strides = [1, 1]} : vector<2x24xf32> to vector<2x8xf32>
    %333 = vector.extract_strided_slice %319 {offsets = [0, 8], sizes = [2, 8], strides = [1, 1]} : vector<2x24xf32> to vector<2x8xf32>
    %334 = arith.addf %332, %333 : vector<2x8xf32>
    %335 = vector.extract_strided_slice %6 {offsets = [0, 8], sizes = [1, 8], strides = [1, 1]} : vector<1x32xf32> to vector<1x8xf32>
    %336 = vector.broadcast %335 : vector<1x8xf32> to vector<2x8xf32>
    %337 = arith.addf %334, %336 : vector<2x8xf32>
    %338 = arith.negf %337 : vector<2x8xf32>
    %339 = math.exp %338 : vector<2x8xf32>
    %cst_40 = arith.constant 1.000000e+00 : f32
    %340 = vector.broadcast %cst_40 : f32 to vector<2x8xf32>
    %341 = arith.addf %340, %339 : vector<2x8xf32>
    %342 = arith.divf %340, %341 : vector<2x8xf32>
    %343 = vector.extract_strided_slice %318 {offsets = [0, 16], sizes = [2, 8], strides = [1, 1]} : vector<2x24xf32> to vector<2x8xf32>
    %344 = vector.extract_strided_slice %6 {offsets = [0, 16], sizes = [1, 8], strides = [1, 1]} : vector<1x32xf32> to vector<1x8xf32>
    %345 = vector.broadcast %344 : vector<1x8xf32> to vector<2x8xf32>
    %346 = arith.addf %343, %345 : vector<2x8xf32>
    %347 = vector.extract_strided_slice %319 {offsets = [0, 16], sizes = [2, 8], strides = [1, 1]} : vector<2x24xf32> to vector<2x8xf32>
    %348 = vector.extract_strided_slice %6 {offsets = [0, 24], sizes = [1, 8], strides = [1, 1]} : vector<1x32xf32> to vector<1x8xf32>
    %349 = vector.broadcast %348 : vector<1x8xf32> to vector<2x8xf32>
    %350 = arith.addf %347, %349 : vector<2x8xf32>
    %351 = arith.mulf %331, %350 : vector<2x8xf32>
    %352 = arith.addf %346, %351 : vector<2x8xf32>
    %353 = math.tanh %352 : vector<2x8xf32>
    %cst_41 = arith.constant 1.000000e+00 : f32
    %354 = vector.broadcast %cst_41 : f32 to vector<2x8xf32>
    %355 = arith.subf %354, %342 : vector<2x8xf32>
    %356 = arith.mulf %355, %353 : vector<2x8xf32>
    %357 = arith.mulf %342, %265 : vector<2x8xf32>
    %358 = arith.addf %356, %357 : vector<2x8xf32>
    %359 = vector.broadcast %320 : vector<2x1xf32> to vector<2x8xf32>
    %360 = arith.mulf %359, %358 : vector<2x8xf32>
    %361 = vector.broadcast %320 : vector<2x1xf32> to vector<2x8xf32>
    %362 = arith.mulf %361, %358 : vector<2x8xf32>
    %cst_42 = arith.constant 1.000000e+00 : f32
    %363 = vector.broadcast %cst_42 : f32 to vector<2x1xf32>
    %364 = arith.subf %363, %320 : vector<2x1xf32>
    %365 = vector.broadcast %364 : vector<2x1xf32> to vector<2x8xf32>
    %366 = arith.mulf %365, %265 : vector<2x8xf32>
    %367 = arith.addf %362, %366 : vector<2x8xf32>
    %368 = vector.extract_strided_slice %3 {offsets = [8, 24], sizes = [2, 24], strides = [1, 1]} : vector<16x48xf32> to vector<2x24xf32>
    %369 = vector.extract_strided_slice %317 {offsets = [2, 24], sizes = [2, 24], strides = [1, 1]} : vector<4x48xf32> to vector<2x24xf32>
    %370 = vector.extract_strided_slice %0 {offsets = [0, 4], sizes = [2, 1], strides = [1, 1]} : vector<2x8xf32> to vector<2x1xf32>
    %371 = vector.extract_strided_slice %368 {offsets = [0, 0], sizes = [2, 8], strides = [1, 1]} : vector<2x24xf32> to vector<2x8xf32>
    %372 = vector.extract_strided_slice %369 {offsets = [0, 0], sizes = [2, 8], strides = [1, 1]} : vector<2x24xf32> to vector<2x8xf32>
    %373 = arith.addf %371, %372 : vector<2x8xf32>
    %374 = vector.extract_strided_slice %7 {offsets = [0, 0], sizes = [1, 8], strides = [1, 1]} : vector<1x32xf32> to vector<1x8xf32>
    %375 = vector.broadcast %374 : vector<1x8xf32> to vector<2x8xf32>
    %376 = arith.addf %373, %375 : vector<2x8xf32>
    %377 = arith.negf %376 : vector<2x8xf32>
    %378 = math.exp %377 : vector<2x8xf32>
    %cst_43 = arith.constant 1.000000e+00 : f32
    %379 = vector.broadcast %cst_43 : f32 to vector<2x8xf32>
    %380 = arith.addf %379, %378 : vector<2x8xf32>
    %381 = arith.divf %379, %380 : vector<2x8xf32>
    %382 = vector.extract_strided_slice %368 {offsets = [0, 8], sizes = [2, 8], strides = [1, 1]} : vector<2x24xf32> to vector<2x8xf32>
    %383 = vector.extract_strided_slice %369 {offsets = [0, 8], sizes = [2, 8], strides = [1, 1]} : vector<2x24xf32> to vector<2x8xf32>
    %384 = arith.addf %382, %383 : vector<2x8xf32>
    %385 = vector.extract_strided_slice %7 {offsets = [0, 8], sizes = [1, 8], strides = [1, 1]} : vector<1x32xf32> to vector<1x8xf32>
    %386 = vector.broadcast %385 : vector<1x8xf32> to vector<2x8xf32>
    %387 = arith.addf %384, %386 : vector<2x8xf32>
    %388 = arith.negf %387 : vector<2x8xf32>
    %389 = math.exp %388 : vector<2x8xf32>
    %cst_44 = arith.constant 1.000000e+00 : f32
    %390 = vector.broadcast %cst_44 : f32 to vector<2x8xf32>
    %391 = arith.addf %390, %389 : vector<2x8xf32>
    %392 = arith.divf %390, %391 : vector<2x8xf32>
    %393 = vector.extract_strided_slice %368 {offsets = [0, 16], sizes = [2, 8], strides = [1, 1]} : vector<2x24xf32> to vector<2x8xf32>
    %394 = vector.extract_strided_slice %7 {offsets = [0, 16], sizes = [1, 8], strides = [1, 1]} : vector<1x32xf32> to vector<1x8xf32>
    %395 = vector.broadcast %394 : vector<1x8xf32> to vector<2x8xf32>
    %396 = arith.addf %393, %395 : vector<2x8xf32>
    %397 = vector.extract_strided_slice %369 {offsets = [0, 16], sizes = [2, 8], strides = [1, 1]} : vector<2x24xf32> to vector<2x8xf32>
    %398 = vector.extract_strided_slice %7 {offsets = [0, 24], sizes = [1, 8], strides = [1, 1]} : vector<1x32xf32> to vector<1x8xf32>
    %399 = vector.broadcast %398 : vector<1x8xf32> to vector<2x8xf32>
    %400 = arith.addf %397, %399 : vector<2x8xf32>
    %401 = arith.mulf %381, %400 : vector<2x8xf32>
    %402 = arith.addf %396, %401 : vector<2x8xf32>
    %403 = math.tanh %402 : vector<2x8xf32>
    %cst_45 = arith.constant 1.000000e+00 : f32
    %404 = vector.broadcast %cst_45 : f32 to vector<2x8xf32>
    %405 = arith.subf %404, %392 : vector<2x8xf32>
    %406 = arith.mulf %405, %403 : vector<2x8xf32>
    %407 = arith.mulf %392, %315 : vector<2x8xf32>
    %408 = arith.addf %406, %407 : vector<2x8xf32>
    %409 = vector.broadcast %370 : vector<2x1xf32> to vector<2x8xf32>
    %410 = arith.mulf %409, %408 : vector<2x8xf32>
    %411 = vector.broadcast %370 : vector<2x1xf32> to vector<2x8xf32>
    %412 = arith.mulf %411, %408 : vector<2x8xf32>
    %cst_46 = arith.constant 1.000000e+00 : f32
    %413 = vector.broadcast %cst_46 : f32 to vector<2x1xf32>
    %414 = arith.subf %413, %370 : vector<2x1xf32>
    %415 = vector.broadcast %414 : vector<2x1xf32> to vector<2x8xf32>
    %416 = arith.mulf %415, %315 : vector<2x8xf32>
    %417 = arith.addf %412, %416 : vector<2x8xf32>
    %418 = tpu.concatenate %367, %417 in 0 : vector<2x8xf32>, vector<2x8xf32> -> vector<4x8xf32>
    %cst_47 = arith.constant dense<0.000000e+00> : vector<4x48xf32>
    %419 = tpu.matmul %418, %4, %cst_47 {dimension_numbers = #tpu.dot_dimension_numbers<[1], [0], [0], [1], [0, 0, 1, 1], [], []>} : vector<4x8xf32>, vector<8x48xf32>, vector<4x48xf32> -> vector<4x48xf32>
    %420 = vector.extract_strided_slice %3 {offsets = [8, 0], sizes = [2, 24], strides = [1, 1]} : vector<16x48xf32> to vector<2x24xf32>
    %421 = vector.extract_strided_slice %419 {offsets = [0, 0], sizes = [2, 24], strides = [1, 1]} : vector<4x48xf32> to vector<2x24xf32>
    %422 = vector.extract_strided_slice %0 {offsets = [0, 4], sizes = [2, 1], strides = [1, 1]} : vector<2x8xf32> to vector<2x1xf32>
    %423 = vector.extract_strided_slice %420 {offsets = [0, 0], sizes = [2, 8], strides = [1, 1]} : vector<2x24xf32> to vector<2x8xf32>
    %424 = vector.extract_strided_slice %421 {offsets = [0, 0], sizes = [2, 8], strides = [1, 1]} : vector<2x24xf32> to vector<2x8xf32>
    %425 = arith.addf %423, %424 : vector<2x8xf32>
    %426 = vector.extract_strided_slice %6 {offsets = [0, 0], sizes = [1, 8], strides = [1, 1]} : vector<1x32xf32> to vector<1x8xf32>
    %427 = vector.broadcast %426 : vector<1x8xf32> to vector<2x8xf32>
    %428 = arith.addf %425, %427 : vector<2x8xf32>
    %429 = arith.negf %428 : vector<2x8xf32>
    %430 = math.exp %429 : vector<2x8xf32>
    %cst_48 = arith.constant 1.000000e+00 : f32
    %431 = vector.broadcast %cst_48 : f32 to vector<2x8xf32>
    %432 = arith.addf %431, %430 : vector<2x8xf32>
    %433 = arith.divf %431, %432 : vector<2x8xf32>
    %434 = vector.extract_strided_slice %420 {offsets = [0, 8], sizes = [2, 8], strides = [1, 1]} : vector<2x24xf32> to vector<2x8xf32>
    %435 = vector.extract_strided_slice %421 {offsets = [0, 8], sizes = [2, 8], strides = [1, 1]} : vector<2x24xf32> to vector<2x8xf32>
    %436 = arith.addf %434, %435 : vector<2x8xf32>
    %437 = vector.extract_strided_slice %6 {offsets = [0, 8], sizes = [1, 8], strides = [1, 1]} : vector<1x32xf32> to vector<1x8xf32>
    %438 = vector.broadcast %437 : vector<1x8xf32> to vector<2x8xf32>
    %439 = arith.addf %436, %438 : vector<2x8xf32>
    %440 = arith.negf %439 : vector<2x8xf32>
    %441 = math.exp %440 : vector<2x8xf32>
    %cst_49 = arith.constant 1.000000e+00 : f32
    %442 = vector.broadcast %cst_49 : f32 to vector<2x8xf32>
    %443 = arith.addf %442, %441 : vector<2x8xf32>
    %444 = arith.divf %442, %443 : vector<2x8xf32>
    %445 = vector.extract_strided_slice %420 {offsets = [0, 16], sizes = [2, 8], strides = [1, 1]} : vector<2x24xf32> to vector<2x8xf32>
    %446 = vector.extract_strided_slice %6 {offsets = [0, 16], sizes = [1, 8], strides = [1, 1]} : vector<1x32xf32> to vector<1x8xf32>
    %447 = vector.broadcast %446 : vector<1x8xf32> to vector<2x8xf32>
    %448 = arith.addf %445, %447 : vector<2x8xf32>
    %449 = vector.extract_strided_slice %421 {offsets = [0, 16], sizes = [2, 8], strides = [1, 1]} : vector<2x24xf32> to vector<2x8xf32>
    %450 = vector.extract_strided_slice %6 {offsets = [0, 24], sizes = [1, 8], strides = [1, 1]} : vector<1x32xf32> to vector<1x8xf32>
    %451 = vector.broadcast %450 : vector<1x8xf32> to vector<2x8xf32>
    %452 = arith.addf %449, %451 : vector<2x8xf32>
    %453 = arith.mulf %433, %452 : vector<2x8xf32>
    %454 = arith.addf %448, %453 : vector<2x8xf32>
    %455 = math.tanh %454 : vector<2x8xf32>
    %cst_50 = arith.constant 1.000000e+00 : f32
    %456 = vector.broadcast %cst_50 : f32 to vector<2x8xf32>
    %457 = arith.subf %456, %444 : vector<2x8xf32>
    %458 = arith.mulf %457, %455 : vector<2x8xf32>
    %459 = arith.mulf %444, %367 : vector<2x8xf32>
    %460 = arith.addf %458, %459 : vector<2x8xf32>
    %461 = vector.broadcast %422 : vector<2x1xf32> to vector<2x8xf32>
    %462 = arith.mulf %461, %460 : vector<2x8xf32>
    %463 = vector.broadcast %422 : vector<2x1xf32> to vector<2x8xf32>
    %464 = arith.mulf %463, %460 : vector<2x8xf32>
    %cst_51 = arith.constant 1.000000e+00 : f32
    %465 = vector.broadcast %cst_51 : f32 to vector<2x1xf32>
    %466 = arith.subf %465, %422 : vector<2x1xf32>
    %467 = vector.broadcast %466 : vector<2x1xf32> to vector<2x8xf32>
    %468 = arith.mulf %467, %367 : vector<2x8xf32>
    %469 = arith.addf %464, %468 : vector<2x8xf32>
    %470 = vector.extract_strided_slice %3 {offsets = [6, 24], sizes = [2, 24], strides = [1, 1]} : vector<16x48xf32> to vector<2x24xf32>
    %471 = vector.extract_strided_slice %419 {offsets = [2, 24], sizes = [2, 24], strides = [1, 1]} : vector<4x48xf32> to vector<2x24xf32>
    %472 = vector.extract_strided_slice %0 {offsets = [0, 3], sizes = [2, 1], strides = [1, 1]} : vector<2x8xf32> to vector<2x1xf32>
    %473 = vector.extract_strided_slice %470 {offsets = [0, 0], sizes = [2, 8], strides = [1, 1]} : vector<2x24xf32> to vector<2x8xf32>
    %474 = vector.extract_strided_slice %471 {offsets = [0, 0], sizes = [2, 8], strides = [1, 1]} : vector<2x24xf32> to vector<2x8xf32>
    %475 = arith.addf %473, %474 : vector<2x8xf32>
    %476 = vector.extract_strided_slice %7 {offsets = [0, 0], sizes = [1, 8], strides = [1, 1]} : vector<1x32xf32> to vector<1x8xf32>
    %477 = vector.broadcast %476 : vector<1x8xf32> to vector<2x8xf32>
    %478 = arith.addf %475, %477 : vector<2x8xf32>
    %479 = arith.negf %478 : vector<2x8xf32>
    %480 = math.exp %479 : vector<2x8xf32>
    %cst_52 = arith.constant 1.000000e+00 : f32
    %481 = vector.broadcast %cst_52 : f32 to vector<2x8xf32>
    %482 = arith.addf %481, %480 : vector<2x8xf32>
    %483 = arith.divf %481, %482 : vector<2x8xf32>
    %484 = vector.extract_strided_slice %470 {offsets = [0, 8], sizes = [2, 8], strides = [1, 1]} : vector<2x24xf32> to vector<2x8xf32>
    %485 = vector.extract_strided_slice %471 {offsets = [0, 8], sizes = [2, 8], strides = [1, 1]} : vector<2x24xf32> to vector<2x8xf32>
    %486 = arith.addf %484, %485 : vector<2x8xf32>
    %487 = vector.extract_strided_slice %7 {offsets = [0, 8], sizes = [1, 8], strides = [1, 1]} : vector<1x32xf32> to vector<1x8xf32>
    %488 = vector.broadcast %487 : vector<1x8xf32> to vector<2x8xf32>
    %489 = arith.addf %486, %488 : vector<2x8xf32>
    %490 = arith.negf %489 : vector<2x8xf32>
    %491 = math.exp %490 : vector<2x8xf32>
    %cst_53 = arith.constant 1.000000e+00 : f32
    %492 = vector.broadcast %cst_53 : f32 to vector<2x8xf32>
    %493 = arith.addf %492, %491 : vector<2x8xf32>
    %494 = arith.divf %492, %493 : vector<2x8xf32>
    %495 = vector.extract_strided_slice %470 {offsets = [0, 16], sizes = [2, 8], strides = [1, 1]} : vector<2x24xf32> to vector<2x8xf32>
    %496 = vector.extract_strided_slice %7 {offsets = [0, 16], sizes = [1, 8], strides = [1, 1]} : vector<1x32xf32> to vector<1x8xf32>
    %497 = vector.broadcast %496 : vector<1x8xf32> to vector<2x8xf32>
    %498 = arith.addf %495, %497 : vector<2x8xf32>
    %499 = vector.extract_strided_slice %471 {offsets = [0, 16], sizes = [2, 8], strides = [1, 1]} : vector<2x24xf32> to vector<2x8xf32>
    %500 = vector.extract_strided_slice %7 {offsets = [0, 24], sizes = [1, 8], strides = [1, 1]} : vector<1x32xf32> to vector<1x8xf32>
    %501 = vector.broadcast %500 : vector<1x8xf32> to vector<2x8xf32>
    %502 = arith.addf %499, %501 : vector<2x8xf32>
    %503 = arith.mulf %483, %502 : vector<2x8xf32>
    %504 = arith.addf %498, %503 : vector<2x8xf32>
    %505 = math.tanh %504 : vector<2x8xf32>
    %cst_54 = arith.constant 1.000000e+00 : f32
    %506 = vector.broadcast %cst_54 : f32 to vector<2x8xf32>
    %507 = arith.subf %506, %494 : vector<2x8xf32>
    %508 = arith.mulf %507, %505 : vector<2x8xf32>
    %509 = arith.mulf %494, %417 : vector<2x8xf32>
    %510 = arith.addf %508, %509 : vector<2x8xf32>
    %511 = vector.broadcast %472 : vector<2x1xf32> to vector<2x8xf32>
    %512 = arith.mulf %511, %510 : vector<2x8xf32>
    %513 = vector.broadcast %472 : vector<2x1xf32> to vector<2x8xf32>
    %514 = arith.mulf %513, %510 : vector<2x8xf32>
    %cst_55 = arith.constant 1.000000e+00 : f32
    %515 = vector.broadcast %cst_55 : f32 to vector<2x1xf32>
    %516 = arith.subf %515, %472 : vector<2x1xf32>
    %517 = vector.broadcast %516 : vector<2x1xf32> to vector<2x8xf32>
    %518 = arith.mulf %517, %417 : vector<2x8xf32>
    %519 = arith.addf %514, %518 : vector<2x8xf32>
    %520 = tpu.concatenate %469, %519 in 0 : vector<2x8xf32>, vector<2x8xf32> -> vector<4x8xf32>
    %cst_56 = arith.constant dense<0.000000e+00> : vector<4x48xf32>
    %521 = tpu.matmul %520, %4, %cst_56 {dimension_numbers = #tpu.dot_dimension_numbers<[1], [0], [0], [1], [0, 0, 1, 1], [], []>} : vector<4x8xf32>, vector<8x48xf32>, vector<4x48xf32> -> vector<4x48xf32>
    %522 = vector.extract_strided_slice %3 {offsets = [10, 0], sizes = [2, 24], strides = [1, 1]} : vector<16x48xf32> to vector<2x24xf32>
    %523 = vector.extract_strided_slice %521 {offsets = [0, 0], sizes = [2, 24], strides = [1, 1]} : vector<4x48xf32> to vector<2x24xf32>
    %524 = vector.extract_strided_slice %0 {offsets = [0, 5], sizes = [2, 1], strides = [1, 1]} : vector<2x8xf32> to vector<2x1xf32>
    %525 = vector.extract_strided_slice %522 {offsets = [0, 0], sizes = [2, 8], strides = [1, 1]} : vector<2x24xf32> to vector<2x8xf32>
    %526 = vector.extract_strided_slice %523 {offsets = [0, 0], sizes = [2, 8], strides = [1, 1]} : vector<2x24xf32> to vector<2x8xf32>
    %527 = arith.addf %525, %526 : vector<2x8xf32>
    %528 = vector.extract_strided_slice %6 {offsets = [0, 0], sizes = [1, 8], strides = [1, 1]} : vector<1x32xf32> to vector<1x8xf32>
    %529 = vector.broadcast %528 : vector<1x8xf32> to vector<2x8xf32>
    %530 = arith.addf %527, %529 : vector<2x8xf32>
    %531 = arith.negf %530 : vector<2x8xf32>
    %532 = math.exp %531 : vector<2x8xf32>
    %cst_57 = arith.constant 1.000000e+00 : f32
    %533 = vector.broadcast %cst_57 : f32 to vector<2x8xf32>
    %534 = arith.addf %533, %532 : vector<2x8xf32>
    %535 = arith.divf %533, %534 : vector<2x8xf32>
    %536 = vector.extract_strided_slice %522 {offsets = [0, 8], sizes = [2, 8], strides = [1, 1]} : vector<2x24xf32> to vector<2x8xf32>
    %537 = vector.extract_strided_slice %523 {offsets = [0, 8], sizes = [2, 8], strides = [1, 1]} : vector<2x24xf32> to vector<2x8xf32>
    %538 = arith.addf %536, %537 : vector<2x8xf32>
    %539 = vector.extract_strided_slice %6 {offsets = [0, 8], sizes = [1, 8], strides = [1, 1]} : vector<1x32xf32> to vector<1x8xf32>
    %540 = vector.broadcast %539 : vector<1x8xf32> to vector<2x8xf32>
    %541 = arith.addf %538, %540 : vector<2x8xf32>
    %542 = arith.negf %541 : vector<2x8xf32>
    %543 = math.exp %542 : vector<2x8xf32>
    %cst_58 = arith.constant 1.000000e+00 : f32
    %544 = vector.broadcast %cst_58 : f32 to vector<2x8xf32>
    %545 = arith.addf %544, %543 : vector<2x8xf32>
    %546 = arith.divf %544, %545 : vector<2x8xf32>
    %547 = vector.extract_strided_slice %522 {offsets = [0, 16], sizes = [2, 8], strides = [1, 1]} : vector<2x24xf32> to vector<2x8xf32>
    %548 = vector.extract_strided_slice %6 {offsets = [0, 16], sizes = [1, 8], strides = [1, 1]} : vector<1x32xf32> to vector<1x8xf32>
    %549 = vector.broadcast %548 : vector<1x8xf32> to vector<2x8xf32>
    %550 = arith.addf %547, %549 : vector<2x8xf32>
    %551 = vector.extract_strided_slice %523 {offsets = [0, 16], sizes = [2, 8], strides = [1, 1]} : vector<2x24xf32> to vector<2x8xf32>
    %552 = vector.extract_strided_slice %6 {offsets = [0, 24], sizes = [1, 8], strides = [1, 1]} : vector<1x32xf32> to vector<1x8xf32>
    %553 = vector.broadcast %552 : vector<1x8xf32> to vector<2x8xf32>
    %554 = arith.addf %551, %553 : vector<2x8xf32>
    %555 = arith.mulf %535, %554 : vector<2x8xf32>
    %556 = arith.addf %550, %555 : vector<2x8xf32>
    %557 = math.tanh %556 : vector<2x8xf32>
    %cst_59 = arith.constant 1.000000e+00 : f32
    %558 = vector.broadcast %cst_59 : f32 to vector<2x8xf32>
    %559 = arith.subf %558, %546 : vector<2x8xf32>
    %560 = arith.mulf %559, %557 : vector<2x8xf32>
    %561 = arith.mulf %546, %469 : vector<2x8xf32>
    %562 = arith.addf %560, %561 : vector<2x8xf32>
    %563 = vector.broadcast %524 : vector<2x1xf32> to vector<2x8xf32>
    %564 = arith.mulf %563, %562 : vector<2x8xf32>
    %565 = vector.broadcast %524 : vector<2x1xf32> to vector<2x8xf32>
    %566 = arith.mulf %565, %562 : vector<2x8xf32>
    %cst_60 = arith.constant 1.000000e+00 : f32
    %567 = vector.broadcast %cst_60 : f32 to vector<2x1xf32>
    %568 = arith.subf %567, %524 : vector<2x1xf32>
    %569 = vector.broadcast %568 : vector<2x1xf32> to vector<2x8xf32>
    %570 = arith.mulf %569, %469 : vector<2x8xf32>
    %571 = arith.addf %566, %570 : vector<2x8xf32>
    %572 = vector.extract_strided_slice %3 {offsets = [4, 24], sizes = [2, 24], strides = [1, 1]} : vector<16x48xf32> to vector<2x24xf32>
    %573 = vector.extract_strided_slice %521 {offsets = [2, 24], sizes = [2, 24], strides = [1, 1]} : vector<4x48xf32> to vector<2x24xf32>
    %574 = vector.extract_strided_slice %0 {offsets = [0, 2], sizes = [2, 1], strides = [1, 1]} : vector<2x8xf32> to vector<2x1xf32>
    %575 = vector.extract_strided_slice %572 {offsets = [0, 0], sizes = [2, 8], strides = [1, 1]} : vector<2x24xf32> to vector<2x8xf32>
    %576 = vector.extract_strided_slice %573 {offsets = [0, 0], sizes = [2, 8], strides = [1, 1]} : vector<2x24xf32> to vector<2x8xf32>
    %577 = arith.addf %575, %576 : vector<2x8xf32>
    %578 = vector.extract_strided_slice %7 {offsets = [0, 0], sizes = [1, 8], strides = [1, 1]} : vector<1x32xf32> to vector<1x8xf32>
    %579 = vector.broadcast %578 : vector<1x8xf32> to vector<2x8xf32>
    %580 = arith.addf %577, %579 : vector<2x8xf32>
    %581 = arith.negf %580 : vector<2x8xf32>
    %582 = math.exp %581 : vector<2x8xf32>
    %cst_61 = arith.constant 1.000000e+00 : f32
    %583 = vector.broadcast %cst_61 : f32 to vector<2x8xf32>
    %584 = arith.addf %583, %582 : vector<2x8xf32>
    %585 = arith.divf %583, %584 : vector<2x8xf32>
    %586 = vector.extract_strided_slice %572 {offsets = [0, 8], sizes = [2, 8], strides = [1, 1]} : vector<2x24xf32> to vector<2x8xf32>
    %587 = vector.extract_strided_slice %573 {offsets = [0, 8], sizes = [2, 8], strides = [1, 1]} : vector<2x24xf32> to vector<2x8xf32>
    %588 = arith.addf %586, %587 : vector<2x8xf32>
    %589 = vector.extract_strided_slice %7 {offsets = [0, 8], sizes = [1, 8], strides = [1, 1]} : vector<1x32xf32> to vector<1x8xf32>
    %590 = vector.broadcast %589 : vector<1x8xf32> to vector<2x8xf32>
    %591 = arith.addf %588, %590 : vector<2x8xf32>
    %592 = arith.negf %591 : vector<2x8xf32>
    %593 = math.exp %592 : vector<2x8xf32>
    %cst_62 = arith.constant 1.000000e+00 : f32
    %594 = vector.broadcast %cst_62 : f32 to vector<2x8xf32>
    %595 = arith.addf %594, %593 : vector<2x8xf32>
    %596 = arith.divf %594, %595 : vector<2x8xf32>
    %597 = vector.extract_strided_slice %572 {offsets = [0, 16], sizes = [2, 8], strides = [1, 1]} : vector<2x24xf32> to vector<2x8xf32>
    %598 = vector.extract_strided_slice %7 {offsets = [0, 16], sizes = [1, 8], strides = [1, 1]} : vector<1x32xf32> to vector<1x8xf32>
    %599 = vector.broadcast %598 : vector<1x8xf32> to vector<2x8xf32>
    %600 = arith.addf %597, %599 : vector<2x8xf32>
    %601 = vector.extract_strided_slice %573 {offsets = [0, 16], sizes = [2, 8], strides = [1, 1]} : vector<2x24xf32> to vector<2x8xf32>
    %602 = vector.extract_strided_slice %7 {offsets = [0, 24], sizes = [1, 8], strides = [1, 1]} : vector<1x32xf32> to vector<1x8xf32>
    %603 = vector.broadcast %602 : vector<1x8xf32> to vector<2x8xf32>
    %604 = arith.addf %601, %603 : vector<2x8xf32>
    %605 = arith.mulf %585, %604 : vector<2x8xf32>
    %606 = arith.addf %600, %605 : vector<2x8xf32>
    %607 = math.tanh %606 : vector<2x8xf32>
    %cst_63 = arith.constant 1.000000e+00 : f32
    %608 = vector.broadcast %cst_63 : f32 to vector<2x8xf32>
    %609 = arith.subf %608, %596 : vector<2x8xf32>
    %610 = arith.mulf %609, %607 : vector<2x8xf32>
    %611 = arith.mulf %596, %519 : vector<2x8xf32>
    %612 = arith.addf %610, %611 : vector<2x8xf32>
    %613 = vector.broadcast %574 : vector<2x1xf32> to vector<2x8xf32>
    %614 = arith.mulf %613, %612 : vector<2x8xf32>
    %615 = vector.broadcast %574 : vector<2x1xf32> to vector<2x8xf32>
    %616 = arith.mulf %615, %612 : vector<2x8xf32>
    %cst_64 = arith.constant 1.000000e+00 : f32
    %617 = vector.broadcast %cst_64 : f32 to vector<2x1xf32>
    %618 = arith.subf %617, %574 : vector<2x1xf32>
    %619 = vector.broadcast %618 : vector<2x1xf32> to vector<2x8xf32>
    %620 = arith.mulf %619, %519 : vector<2x8xf32>
    %621 = arith.addf %616, %620 : vector<2x8xf32>
    %622 = tpu.concatenate %571, %621 in 0 : vector<2x8xf32>, vector<2x8xf32> -> vector<4x8xf32>
    %cst_65 = arith.constant dense<0.000000e+00> : vector<4x48xf32>
    %623 = tpu.matmul %622, %4, %cst_65 {dimension_numbers = #tpu.dot_dimension_numbers<[1], [0], [0], [1], [0, 0, 1, 1], [], []>} : vector<4x8xf32>, vector<8x48xf32>, vector<4x48xf32> -> vector<4x48xf32>
    %624 = vector.extract_strided_slice %3 {offsets = [12, 0], sizes = [2, 24], strides = [1, 1]} : vector<16x48xf32> to vector<2x24xf32>
    %625 = vector.extract_strided_slice %623 {offsets = [0, 0], sizes = [2, 24], strides = [1, 1]} : vector<4x48xf32> to vector<2x24xf32>
    %626 = vector.extract_strided_slice %0 {offsets = [0, 6], sizes = [2, 1], strides = [1, 1]} : vector<2x8xf32> to vector<2x1xf32>
    %627 = vector.extract_strided_slice %624 {offsets = [0, 0], sizes = [2, 8], strides = [1, 1]} : vector<2x24xf32> to vector<2x8xf32>
    %628 = vector.extract_strided_slice %625 {offsets = [0, 0], sizes = [2, 8], strides = [1, 1]} : vector<2x24xf32> to vector<2x8xf32>
    %629 = arith.addf %627, %628 : vector<2x8xf32>
    %630 = vector.extract_strided_slice %6 {offsets = [0, 0], sizes = [1, 8], strides = [1, 1]} : vector<1x32xf32> to vector<1x8xf32>
    %631 = vector.broadcast %630 : vector<1x8xf32> to vector<2x8xf32>
    %632 = arith.addf %629, %631 : vector<2x8xf32>
    %633 = arith.negf %632 : vector<2x8xf32>
    %634 = math.exp %633 : vector<2x8xf32>
    %cst_66 = arith.constant 1.000000e+00 : f32
    %635 = vector.broadcast %cst_66 : f32 to vector<2x8xf32>
    %636 = arith.addf %635, %634 : vector<2x8xf32>
    %637 = arith.divf %635, %636 : vector<2x8xf32>
    %638 = vector.extract_strided_slice %624 {offsets = [0, 8], sizes = [2, 8], strides = [1, 1]} : vector<2x24xf32> to vector<2x8xf32>
    %639 = vector.extract_strided_slice %625 {offsets = [0, 8], sizes = [2, 8], strides = [1, 1]} : vector<2x24xf32> to vector<2x8xf32>
    %640 = arith.addf %638, %639 : vector<2x8xf32>
    %641 = vector.extract_strided_slice %6 {offsets = [0, 8], sizes = [1, 8], strides = [1, 1]} : vector<1x32xf32> to vector<1x8xf32>
    %642 = vector.broadcast %641 : vector<1x8xf32> to vector<2x8xf32>
    %643 = arith.addf %640, %642 : vector<2x8xf32>
    %644 = arith.negf %643 : vector<2x8xf32>
    %645 = math.exp %644 : vector<2x8xf32>
    %cst_67 = arith.constant 1.000000e+00 : f32
    %646 = vector.broadcast %cst_67 : f32 to vector<2x8xf32>
    %647 = arith.addf %646, %645 : vector<2x8xf32>
    %648 = arith.divf %646, %647 : vector<2x8xf32>
    %649 = vector.extract_strided_slice %624 {offsets = [0, 16], sizes = [2, 8], strides = [1, 1]} : vector<2x24xf32> to vector<2x8xf32>
    %650 = vector.extract_strided_slice %6 {offsets = [0, 16], sizes = [1, 8], strides = [1, 1]} : vector<1x32xf32> to vector<1x8xf32>
    %651 = vector.broadcast %650 : vector<1x8xf32> to vector<2x8xf32>
    %652 = arith.addf %649, %651 : vector<2x8xf32>
    %653 = vector.extract_strided_slice %625 {offsets = [0, 16], sizes = [2, 8], strides = [1, 1]} : vector<2x24xf32> to vector<2x8xf32>
    %654 = vector.extract_strided_slice %6 {offsets = [0, 24], sizes = [1, 8], strides = [1, 1]} : vector<1x32xf32> to vector<1x8xf32>
    %655 = vector.broadcast %654 : vector<1x8xf32> to vector<2x8xf32>
    %656 = arith.addf %653, %655 : vector<2x8xf32>
    %657 = arith.mulf %637, %656 : vector<2x8xf32>
    %658 = arith.addf %652, %657 : vector<2x8xf32>
    %659 = math.tanh %658 : vector<2x8xf32>
    %cst_68 = arith.constant 1.000000e+00 : f32
    %660 = vector.broadcast %cst_68 : f32 to vector<2x8xf32>
    %661 = arith.subf %660, %648 : vector<2x8xf32>
    %662 = arith.mulf %661, %659 : vector<2x8xf32>
    %663 = arith.mulf %648, %571 : vector<2x8xf32>
    %664 = arith.addf %662, %663 : vector<2x8xf32>
    %665 = vector.broadcast %626 : vector<2x1xf32> to vector<2x8xf32>
    %666 = arith.mulf %665, %664 : vector<2x8xf32>
    %667 = vector.broadcast %626 : vector<2x1xf32> to vector<2x8xf32>
    %668 = arith.mulf %667, %664 : vector<2x8xf32>
    %cst_69 = arith.constant 1.000000e+00 : f32
    %669 = vector.broadcast %cst_69 : f32 to vector<2x1xf32>
    %670 = arith.subf %669, %626 : vector<2x1xf32>
    %671 = vector.broadcast %670 : vector<2x1xf32> to vector<2x8xf32>
    %672 = arith.mulf %671, %571 : vector<2x8xf32>
    %673 = arith.addf %668, %672 : vector<2x8xf32>
    %674 = vector.extract_strided_slice %3 {offsets = [2, 24], sizes = [2, 24], strides = [1, 1]} : vector<16x48xf32> to vector<2x24xf32>
    %675 = vector.extract_strided_slice %623 {offsets = [2, 24], sizes = [2, 24], strides = [1, 1]} : vector<4x48xf32> to vector<2x24xf32>
    %676 = vector.extract_strided_slice %0 {offsets = [0, 1], sizes = [2, 1], strides = [1, 1]} : vector<2x8xf32> to vector<2x1xf32>
    %677 = vector.extract_strided_slice %674 {offsets = [0, 0], sizes = [2, 8], strides = [1, 1]} : vector<2x24xf32> to vector<2x8xf32>
    %678 = vector.extract_strided_slice %675 {offsets = [0, 0], sizes = [2, 8], strides = [1, 1]} : vector<2x24xf32> to vector<2x8xf32>
    %679 = arith.addf %677, %678 : vector<2x8xf32>
    %680 = vector.extract_strided_slice %7 {offsets = [0, 0], sizes = [1, 8], strides = [1, 1]} : vector<1x32xf32> to vector<1x8xf32>
    %681 = vector.broadcast %680 : vector<1x8xf32> to vector<2x8xf32>
    %682 = arith.addf %679, %681 : vector<2x8xf32>
    %683 = arith.negf %682 : vector<2x8xf32>
    %684 = math.exp %683 : vector<2x8xf32>
    %cst_70 = arith.constant 1.000000e+00 : f32
    %685 = vector.broadcast %cst_70 : f32 to vector<2x8xf32>
    %686 = arith.addf %685, %684 : vector<2x8xf32>
    %687 = arith.divf %685, %686 : vector<2x8xf32>
    %688 = vector.extract_strided_slice %674 {offsets = [0, 8], sizes = [2, 8], strides = [1, 1]} : vector<2x24xf32> to vector<2x8xf32>
    %689 = vector.extract_strided_slice %675 {offsets = [0, 8], sizes = [2, 8], strides = [1, 1]} : vector<2x24xf32> to vector<2x8xf32>
    %690 = arith.addf %688, %689 : vector<2x8xf32>
    %691 = vector.extract_strided_slice %7 {offsets = [0, 8], sizes = [1, 8], strides = [1, 1]} : vector<1x32xf32> to vector<1x8xf32>
    %692 = vector.broadcast %691 : vector<1x8xf32> to vector<2x8xf32>
    %693 = arith.addf %690, %692 : vector<2x8xf32>
    %694 = arith.negf %693 : vector<2x8xf32>
    %695 = math.exp %694 : vector<2x8xf32>
    %cst_71 = arith.constant 1.000000e+00 : f32
    %696 = vector.broadcast %cst_71 : f32 to vector<2x8xf32>
    %697 = arith.addf %696, %695 : vector<2x8xf32>
    %698 = arith.divf %696, %697 : vector<2x8xf32>
    %699 = vector.extract_strided_slice %674 {offsets = [0, 16], sizes = [2, 8], strides = [1, 1]} : vector<2x24xf32> to vector<2x8xf32>
    %700 = vector.extract_strided_slice %7 {offsets = [0, 16], sizes = [1, 8], strides = [1, 1]} : vector<1x32xf32> to vector<1x8xf32>
    %701 = vector.broadcast %700 : vector<1x8xf32> to vector<2x8xf32>
    %702 = arith.addf %699, %701 : vector<2x8xf32>
    %703 = vector.extract_strided_slice %675 {offsets = [0, 16], sizes = [2, 8], strides = [1, 1]} : vector<2x24xf32> to vector<2x8xf32>
    %704 = vector.extract_strided_slice %7 {offsets = [0, 24], sizes = [1, 8], strides = [1, 1]} : vector<1x32xf32> to vector<1x8xf32>
    %705 = vector.broadcast %704 : vector<1x8xf32> to vector<2x8xf32>
    %706 = arith.addf %703, %705 : vector<2x8xf32>
    %707 = arith.mulf %687, %706 : vector<2x8xf32>
    %708 = arith.addf %702, %707 : vector<2x8xf32>
    %709 = math.tanh %708 : vector<2x8xf32>
    %cst_72 = arith.constant 1.000000e+00 : f32
    %710 = vector.broadcast %cst_72 : f32 to vector<2x8xf32>
    %711 = arith.subf %710, %698 : vector<2x8xf32>
    %712 = arith.mulf %711, %709 : vector<2x8xf32>
    %713 = arith.mulf %698, %621 : vector<2x8xf32>
    %714 = arith.addf %712, %713 : vector<2x8xf32>
    %715 = vector.broadcast %676 : vector<2x1xf32> to vector<2x8xf32>
    %716 = arith.mulf %715, %714 : vector<2x8xf32>
    %717 = vector.broadcast %676 : vector<2x1xf32> to vector<2x8xf32>
    %718 = arith.mulf %717, %714 : vector<2x8xf32>
    %cst_73 = arith.constant 1.000000e+00 : f32
    %719 = vector.broadcast %cst_73 : f32 to vector<2x1xf32>
    %720 = arith.subf %719, %676 : vector<2x1xf32>
    %721 = vector.broadcast %720 : vector<2x1xf32> to vector<2x8xf32>
    %722 = arith.mulf %721, %621 : vector<2x8xf32>
    %723 = arith.addf %718, %722 : vector<2x8xf32>
    %724 = tpu.concatenate %673, %723 in 0 : vector<2x8xf32>, vector<2x8xf32> -> vector<4x8xf32>
    %cst_74 = arith.constant dense<0.000000e+00> : vector<4x48xf32>
    %725 = tpu.matmul %724, %4, %cst_74 {dimension_numbers = #tpu.dot_dimension_numbers<[1], [0], [0], [1], [0, 0, 1, 1], [], []>} : vector<4x8xf32>, vector<8x48xf32>, vector<4x48xf32> -> vector<4x48xf32>
    %726 = vector.extract_strided_slice %3 {offsets = [14, 0], sizes = [2, 24], strides = [1, 1]} : vector<16x48xf32> to vector<2x24xf32>
    %727 = vector.extract_strided_slice %725 {offsets = [0, 0], sizes = [2, 24], strides = [1, 1]} : vector<4x48xf32> to vector<2x24xf32>
    %728 = vector.extract_strided_slice %0 {offsets = [0, 7], sizes = [2, 1], strides = [1, 1]} : vector<2x8xf32> to vector<2x1xf32>
    %729 = vector.extract_strided_slice %726 {offsets = [0, 0], sizes = [2, 8], strides = [1, 1]} : vector<2x24xf32> to vector<2x8xf32>
    %730 = vector.extract_strided_slice %727 {offsets = [0, 0], sizes = [2, 8], strides = [1, 1]} : vector<2x24xf32> to vector<2x8xf32>
    %731 = arith.addf %729, %730 : vector<2x8xf32>
    %732 = vector.extract_strided_slice %6 {offsets = [0, 0], sizes = [1, 8], strides = [1, 1]} : vector<1x32xf32> to vector<1x8xf32>
    %733 = vector.broadcast %732 : vector<1x8xf32> to vector<2x8xf32>
    %734 = arith.addf %731, %733 : vector<2x8xf32>
    %735 = arith.negf %734 : vector<2x8xf32>
    %736 = math.exp %735 : vector<2x8xf32>
    %cst_75 = arith.constant 1.000000e+00 : f32
    %737 = vector.broadcast %cst_75 : f32 to vector<2x8xf32>
    %738 = arith.addf %737, %736 : vector<2x8xf32>
    %739 = arith.divf %737, %738 : vector<2x8xf32>
    %740 = vector.extract_strided_slice %726 {offsets = [0, 8], sizes = [2, 8], strides = [1, 1]} : vector<2x24xf32> to vector<2x8xf32>
    %741 = vector.extract_strided_slice %727 {offsets = [0, 8], sizes = [2, 8], strides = [1, 1]} : vector<2x24xf32> to vector<2x8xf32>
    %742 = arith.addf %740, %741 : vector<2x8xf32>
    %743 = vector.extract_strided_slice %6 {offsets = [0, 8], sizes = [1, 8], strides = [1, 1]} : vector<1x32xf32> to vector<1x8xf32>
    %744 = vector.broadcast %743 : vector<1x8xf32> to vector<2x8xf32>
    %745 = arith.addf %742, %744 : vector<2x8xf32>
    %746 = arith.negf %745 : vector<2x8xf32>
    %747 = math.exp %746 : vector<2x8xf32>
    %cst_76 = arith.constant 1.000000e+00 : f32
    %748 = vector.broadcast %cst_76 : f32 to vector<2x8xf32>
    %749 = arith.addf %748, %747 : vector<2x8xf32>
    %750 = arith.divf %748, %749 : vector<2x8xf32>
    %751 = vector.extract_strided_slice %726 {offsets = [0, 16], sizes = [2, 8], strides = [1, 1]} : vector<2x24xf32> to vector<2x8xf32>
    %752 = vector.extract_strided_slice %6 {offsets = [0, 16], sizes = [1, 8], strides = [1, 1]} : vector<1x32xf32> to vector<1x8xf32>
    %753 = vector.broadcast %752 : vector<1x8xf32> to vector<2x8xf32>
    %754 = arith.addf %751, %753 : vector<2x8xf32>
    %755 = vector.extract_strided_slice %727 {offsets = [0, 16], sizes = [2, 8], strides = [1, 1]} : vector<2x24xf32> to vector<2x8xf32>
    %756 = vector.extract_strided_slice %6 {offsets = [0, 24], sizes = [1, 8], strides = [1, 1]} : vector<1x32xf32> to vector<1x8xf32>
    %757 = vector.broadcast %756 : vector<1x8xf32> to vector<2x8xf32>
    %758 = arith.addf %755, %757 : vector<2x8xf32>
    %759 = arith.mulf %739, %758 : vector<2x8xf32>
    %760 = arith.addf %754, %759 : vector<2x8xf32>
    %761 = math.tanh %760 : vector<2x8xf32>
    %cst_77 = arith.constant 1.000000e+00 : f32
    %762 = vector.broadcast %cst_77 : f32 to vector<2x8xf32>
    %763 = arith.subf %762, %750 : vector<2x8xf32>
    %764 = arith.mulf %763, %761 : vector<2x8xf32>
    %765 = arith.mulf %750, %673 : vector<2x8xf32>
    %766 = arith.addf %764, %765 : vector<2x8xf32>
    %767 = vector.broadcast %728 : vector<2x1xf32> to vector<2x8xf32>
    %768 = arith.mulf %767, %766 : vector<2x8xf32>
    %769 = vector.extract_strided_slice %3 {offsets = [0, 24], sizes = [2, 24], strides = [1, 1]} : vector<16x48xf32> to vector<2x24xf32>
    %770 = vector.extract_strided_slice %725 {offsets = [2, 24], sizes = [2, 24], strides = [1, 1]} : vector<4x48xf32> to vector<2x24xf32>
    %771 = vector.extract_strided_slice %0 {offsets = [0, 0], sizes = [2, 1], strides = [1, 1]} : vector<2x8xf32> to vector<2x1xf32>
    %772 = vector.extract_strided_slice %769 {offsets = [0, 0], sizes = [2, 8], strides = [1, 1]} : vector<2x24xf32> to vector<2x8xf32>
    %773 = vector.extract_strided_slice %770 {offsets = [0, 0], sizes = [2, 8], strides = [1, 1]} : vector<2x24xf32> to vector<2x8xf32>
    %774 = arith.addf %772, %773 : vector<2x8xf32>
    %775 = vector.extract_strided_slice %7 {offsets = [0, 0], sizes = [1, 8], strides = [1, 1]} : vector<1x32xf32> to vector<1x8xf32>
    %776 = vector.broadcast %775 : vector<1x8xf32> to vector<2x8xf32>
    %777 = arith.addf %774, %776 : vector<2x8xf32>
    %778 = arith.negf %777 : vector<2x8xf32>
    %779 = math.exp %778 : vector<2x8xf32>
    %cst_78 = arith.constant 1.000000e+00 : f32
    %780 = vector.broadcast %cst_78 : f32 to vector<2x8xf32>
    %781 = arith.addf %780, %779 : vector<2x8xf32>
    %782 = arith.divf %780, %781 : vector<2x8xf32>
    %783 = vector.extract_strided_slice %769 {offsets = [0, 8], sizes = [2, 8], strides = [1, 1]} : vector<2x24xf32> to vector<2x8xf32>
    %784 = vector.extract_strided_slice %770 {offsets = [0, 8], sizes = [2, 8], strides = [1, 1]} : vector<2x24xf32> to vector<2x8xf32>
    %785 = arith.addf %783, %784 : vector<2x8xf32>
    %786 = vector.extract_strided_slice %7 {offsets = [0, 8], sizes = [1, 8], strides = [1, 1]} : vector<1x32xf32> to vector<1x8xf32>
    %787 = vector.broadcast %786 : vector<1x8xf32> to vector<2x8xf32>
    %788 = arith.addf %785, %787 : vector<2x8xf32>
    %789 = arith.negf %788 : vector<2x8xf32>
    %790 = math.exp %789 : vector<2x8xf32>
    %cst_79 = arith.constant 1.000000e+00 : f32
    %791 = vector.broadcast %cst_79 : f32 to vector<2x8xf32>
    %792 = arith.addf %791, %790 : vector<2x8xf32>
    %793 = arith.divf %791, %792 : vector<2x8xf32>
    %794 = vector.extract_strided_slice %769 {offsets = [0, 16], sizes = [2, 8], strides = [1, 1]} : vector<2x24xf32> to vector<2x8xf32>
    %795 = vector.extract_strided_slice %7 {offsets = [0, 16], sizes = [1, 8], strides = [1, 1]} : vector<1x32xf32> to vector<1x8xf32>
    %796 = vector.broadcast %795 : vector<1x8xf32> to vector<2x8xf32>
    %797 = arith.addf %794, %796 : vector<2x8xf32>
    %798 = vector.extract_strided_slice %770 {offsets = [0, 16], sizes = [2, 8], strides = [1, 1]} : vector<2x24xf32> to vector<2x8xf32>
    %799 = vector.extract_strided_slice %7 {offsets = [0, 24], sizes = [1, 8], strides = [1, 1]} : vector<1x32xf32> to vector<1x8xf32>
    %800 = vector.broadcast %799 : vector<1x8xf32> to vector<2x8xf32>
    %801 = arith.addf %798, %800 : vector<2x8xf32>
    %802 = arith.mulf %782, %801 : vector<2x8xf32>
    %803 = arith.addf %797, %802 : vector<2x8xf32>
    %804 = math.tanh %803 : vector<2x8xf32>
    %cst_80 = arith.constant 1.000000e+00 : f32
    %805 = vector.broadcast %cst_80 : f32 to vector<2x8xf32>
    %806 = arith.subf %805, %793 : vector<2x8xf32>
    %807 = arith.mulf %806, %804 : vector<2x8xf32>
    %808 = arith.mulf %793, %723 : vector<2x8xf32>
    %809 = arith.addf %807, %808 : vector<2x8xf32>
    %810 = vector.broadcast %771 : vector<2x1xf32> to vector<2x8xf32>
    %811 = arith.mulf %810, %809 : vector<2x8xf32>
    %812 = tpu.concatenate %54, %811 in 1 : vector<2x8xf32>, vector<2x8xf32> -> vector<2x16xf32>
    %813 = tpu.concatenate %156, %716 in 1 : vector<2x8xf32>, vector<2x8xf32> -> vector<2x16xf32>
    %814 = tpu.concatenate %258, %614 in 1 : vector<2x8xf32>, vector<2x8xf32> -> vector<2x16xf32>
    %815 = tpu.concatenate %360, %512 in 1 : vector<2x8xf32>, vector<2x8xf32> -> vector<2x16xf32>
    %816 = tpu.concatenate %462, %410 in 1 : vector<2x8xf32>, vector<2x8xf32> -> vector<2x16xf32>
    %817 = tpu.concatenate %564, %308 in 1 : vector<2x8xf32>, vector<2x8xf32> -> vector<2x16xf32>
    %818 = tpu.concatenate %666, %206 in 1 : vector<2x8xf32>, vector<2x8xf32> -> vector<2x16xf32>
    %819 = tpu.concatenate %768, %104 in 1 : vector<2x8xf32>, vector<2x8xf32> -> vector<2x16xf32>
    %820 = tpu.concatenate %812, %813, %814, %815, %816, %817, %818, %819 in 0 : vector<2x16xf32>, vector<2x16xf32>, vector<2x16xf32>, vector<2x16xf32>, vector<2x16xf32>, vector<2x16xf32>, vector<2x16xf32>, vector<2x16xf32> -> vector<16x16xf32>
    %c0_81 = arith.constant 0 : index
    %c0_82 = arith.constant 0 : index
    %821 = vector.load %arg5[%c0_81, %c0_82] : memref<16x48xf32, #tpu.memory_space<vmem>>, vector<16x48xf32>
    %cst_83 = arith.constant dense<0.000000e+00> : vector<16x48xf32>
    %822 = tpu.matmul %820, %821, %cst_83 {dimension_numbers = #tpu.dot_dimension_numbers<[1], [0], [0], [1], [0, 0, 1, 1], [], []>} : vector<16x16xf32>, vector<16x48xf32>, vector<16x48xf32> -> vector<16x48xf32>
    %c0_84 = arith.constant 0 : index
    %c0_85 = arith.constant 0 : index
    %823 = vector.load %arg6[%c0_84, %c0_85] : memref<8x48xf32, #tpu.memory_space<vmem>>, vector<8x48xf32>
    %c0_86 = arith.constant 0 : index
    %c0_87 = arith.constant 0 : index
    %824 = vector.load %arg7[%c0_86, %c0_87] : memref<2x32xf32, #tpu.memory_space<vmem>>, vector<2x32xf32>
    %825 = vector.extract_strided_slice %824 {offsets = [0, 0], sizes = [1, 32], strides = [1, 1]} : vector<2x32xf32> to vector<1x32xf32>
    %826 = vector.extract_strided_slice %824 {offsets = [1, 0], sizes = [1, 32], strides = [1, 1]} : vector<2x32xf32> to vector<1x32xf32>
    %cst_88 = arith.constant 0.000000e+00 : f32
    %827 = vector.broadcast %cst_88 : f32 to vector<2x8xf32>
    %cst_89 = arith.constant 0.000000e+00 : f32
    %828 = vector.broadcast %cst_89 : f32 to vector<2x8xf32>
    %829 = tpu.concatenate %827, %828 in 0 : vector<2x8xf32>, vector<2x8xf32> -> vector<4x8xf32>
    %cst_90 = arith.constant dense<0.000000e+00> : vector<4x48xf32>
    %830 = tpu.matmul %829, %823, %cst_90 {dimension_numbers = #tpu.dot_dimension_numbers<[1], [0], [0], [1], [0, 0, 1, 1], [], []>} : vector<4x8xf32>, vector<8x48xf32>, vector<4x48xf32> -> vector<4x48xf32>
    %831 = vector.extract_strided_slice %822 {offsets = [0, 0], sizes = [2, 24], strides = [1, 1]} : vector<16x48xf32> to vector<2x24xf32>
    %832 = vector.extract_strided_slice %830 {offsets = [0, 0], sizes = [2, 24], strides = [1, 1]} : vector<4x48xf32> to vector<2x24xf32>
    %833 = vector.extract_strided_slice %0 {offsets = [0, 0], sizes = [2, 1], strides = [1, 1]} : vector<2x8xf32> to vector<2x1xf32>
    %834 = vector.extract_strided_slice %831 {offsets = [0, 0], sizes = [2, 8], strides = [1, 1]} : vector<2x24xf32> to vector<2x8xf32>
    %835 = vector.extract_strided_slice %832 {offsets = [0, 0], sizes = [2, 8], strides = [1, 1]} : vector<2x24xf32> to vector<2x8xf32>
    %836 = arith.addf %834, %835 : vector<2x8xf32>
    %837 = vector.extract_strided_slice %825 {offsets = [0, 0], sizes = [1, 8], strides = [1, 1]} : vector<1x32xf32> to vector<1x8xf32>
    %838 = vector.broadcast %837 : vector<1x8xf32> to vector<2x8xf32>
    %839 = arith.addf %836, %838 : vector<2x8xf32>
    %840 = arith.negf %839 : vector<2x8xf32>
    %841 = math.exp %840 : vector<2x8xf32>
    %cst_91 = arith.constant 1.000000e+00 : f32
    %842 = vector.broadcast %cst_91 : f32 to vector<2x8xf32>
    %843 = arith.addf %842, %841 : vector<2x8xf32>
    %844 = arith.divf %842, %843 : vector<2x8xf32>
    %845 = vector.extract_strided_slice %831 {offsets = [0, 8], sizes = [2, 8], strides = [1, 1]} : vector<2x24xf32> to vector<2x8xf32>
    %846 = vector.extract_strided_slice %832 {offsets = [0, 8], sizes = [2, 8], strides = [1, 1]} : vector<2x24xf32> to vector<2x8xf32>
    %847 = arith.addf %845, %846 : vector<2x8xf32>
    %848 = vector.extract_strided_slice %825 {offsets = [0, 8], sizes = [1, 8], strides = [1, 1]} : vector<1x32xf32> to vector<1x8xf32>
    %849 = vector.broadcast %848 : vector<1x8xf32> to vector<2x8xf32>
    %850 = arith.addf %847, %849 : vector<2x8xf32>
    %851 = arith.negf %850 : vector<2x8xf32>
    %852 = math.exp %851 : vector<2x8xf32>
    %cst_92 = arith.constant 1.000000e+00 : f32
    %853 = vector.broadcast %cst_92 : f32 to vector<2x8xf32>
    %854 = arith.addf %853, %852 : vector<2x8xf32>
    %855 = arith.divf %853, %854 : vector<2x8xf32>
    %856 = vector.extract_strided_slice %831 {offsets = [0, 16], sizes = [2, 8], strides = [1, 1]} : vector<2x24xf32> to vector<2x8xf32>
    %857 = vector.extract_strided_slice %825 {offsets = [0, 16], sizes = [1, 8], strides = [1, 1]} : vector<1x32xf32> to vector<1x8xf32>
    %858 = vector.broadcast %857 : vector<1x8xf32> to vector<2x8xf32>
    %859 = arith.addf %856, %858 : vector<2x8xf32>
    %860 = vector.extract_strided_slice %832 {offsets = [0, 16], sizes = [2, 8], strides = [1, 1]} : vector<2x24xf32> to vector<2x8xf32>
    %861 = vector.extract_strided_slice %825 {offsets = [0, 24], sizes = [1, 8], strides = [1, 1]} : vector<1x32xf32> to vector<1x8xf32>
    %862 = vector.broadcast %861 : vector<1x8xf32> to vector<2x8xf32>
    %863 = arith.addf %860, %862 : vector<2x8xf32>
    %864 = arith.mulf %844, %863 : vector<2x8xf32>
    %865 = arith.addf %859, %864 : vector<2x8xf32>
    %866 = math.tanh %865 : vector<2x8xf32>
    %cst_93 = arith.constant 1.000000e+00 : f32
    %867 = vector.broadcast %cst_93 : f32 to vector<2x8xf32>
    %868 = arith.subf %867, %855 : vector<2x8xf32>
    %869 = arith.mulf %868, %866 : vector<2x8xf32>
    %870 = arith.mulf %855, %827 : vector<2x8xf32>
    %871 = arith.addf %869, %870 : vector<2x8xf32>
    %872 = vector.broadcast %833 : vector<2x1xf32> to vector<2x8xf32>
    %873 = arith.mulf %872, %871 : vector<2x8xf32>
    %874 = vector.broadcast %833 : vector<2x1xf32> to vector<2x8xf32>
    %875 = arith.mulf %874, %871 : vector<2x8xf32>
    %cst_94 = arith.constant 1.000000e+00 : f32
    %876 = vector.broadcast %cst_94 : f32 to vector<2x1xf32>
    %877 = arith.subf %876, %833 : vector<2x1xf32>
    %878 = vector.broadcast %877 : vector<2x1xf32> to vector<2x8xf32>
    %879 = arith.mulf %878, %827 : vector<2x8xf32>
    %880 = arith.addf %875, %879 : vector<2x8xf32>
    %881 = vector.extract_strided_slice %822 {offsets = [14, 24], sizes = [2, 24], strides = [1, 1]} : vector<16x48xf32> to vector<2x24xf32>
    %882 = vector.extract_strided_slice %830 {offsets = [2, 24], sizes = [2, 24], strides = [1, 1]} : vector<4x48xf32> to vector<2x24xf32>
    %883 = vector.extract_strided_slice %0 {offsets = [0, 7], sizes = [2, 1], strides = [1, 1]} : vector<2x8xf32> to vector<2x1xf32>
    %884 = vector.extract_strided_slice %881 {offsets = [0, 0], sizes = [2, 8], strides = [1, 1]} : vector<2x24xf32> to vector<2x8xf32>
    %885 = vector.extract_strided_slice %882 {offsets = [0, 0], sizes = [2, 8], strides = [1, 1]} : vector<2x24xf32> to vector<2x8xf32>
    %886 = arith.addf %884, %885 : vector<2x8xf32>
    %887 = vector.extract_strided_slice %826 {offsets = [0, 0], sizes = [1, 8], strides = [1, 1]} : vector<1x32xf32> to vector<1x8xf32>
    %888 = vector.broadcast %887 : vector<1x8xf32> to vector<2x8xf32>
    %889 = arith.addf %886, %888 : vector<2x8xf32>
    %890 = arith.negf %889 : vector<2x8xf32>
    %891 = math.exp %890 : vector<2x8xf32>
    %cst_95 = arith.constant 1.000000e+00 : f32
    %892 = vector.broadcast %cst_95 : f32 to vector<2x8xf32>
    %893 = arith.addf %892, %891 : vector<2x8xf32>
    %894 = arith.divf %892, %893 : vector<2x8xf32>
    %895 = vector.extract_strided_slice %881 {offsets = [0, 8], sizes = [2, 8], strides = [1, 1]} : vector<2x24xf32> to vector<2x8xf32>
    %896 = vector.extract_strided_slice %882 {offsets = [0, 8], sizes = [2, 8], strides = [1, 1]} : vector<2x24xf32> to vector<2x8xf32>
    %897 = arith.addf %895, %896 : vector<2x8xf32>
    %898 = vector.extract_strided_slice %826 {offsets = [0, 8], sizes = [1, 8], strides = [1, 1]} : vector<1x32xf32> to vector<1x8xf32>
    %899 = vector.broadcast %898 : vector<1x8xf32> to vector<2x8xf32>
    %900 = arith.addf %897, %899 : vector<2x8xf32>
    %901 = arith.negf %900 : vector<2x8xf32>
    %902 = math.exp %901 : vector<2x8xf32>
    %cst_96 = arith.constant 1.000000e+00 : f32
    %903 = vector.broadcast %cst_96 : f32 to vector<2x8xf32>
    %904 = arith.addf %903, %902 : vector<2x8xf32>
    %905 = arith.divf %903, %904 : vector<2x8xf32>
    %906 = vector.extract_strided_slice %881 {offsets = [0, 16], sizes = [2, 8], strides = [1, 1]} : vector<2x24xf32> to vector<2x8xf32>
    %907 = vector.extract_strided_slice %826 {offsets = [0, 16], sizes = [1, 8], strides = [1, 1]} : vector<1x32xf32> to vector<1x8xf32>
    %908 = vector.broadcast %907 : vector<1x8xf32> to vector<2x8xf32>
    %909 = arith.addf %906, %908 : vector<2x8xf32>
    %910 = vector.extract_strided_slice %882 {offsets = [0, 16], sizes = [2, 8], strides = [1, 1]} : vector<2x24xf32> to vector<2x8xf32>
    %911 = vector.extract_strided_slice %826 {offsets = [0, 24], sizes = [1, 8], strides = [1, 1]} : vector<1x32xf32> to vector<1x8xf32>
    %912 = vector.broadcast %911 : vector<1x8xf32> to vector<2x8xf32>
    %913 = arith.addf %910, %912 : vector<2x8xf32>
    %914 = arith.mulf %894, %913 : vector<2x8xf32>
    %915 = arith.addf %909, %914 : vector<2x8xf32>
    %916 = math.tanh %915 : vector<2x8xf32>
    %cst_97 = arith.constant 1.000000e+00 : f32
    %917 = vector.broadcast %cst_97 : f32 to vector<2x8xf32>
    %918 = arith.subf %917, %905 : vector<2x8xf32>
    %919 = arith.mulf %918, %916 : vector<2x8xf32>
    %920 = arith.mulf %905, %828 : vector<2x8xf32>
    %921 = arith.addf %919, %920 : vector<2x8xf32>
    %922 = vector.broadcast %883 : vector<2x1xf32> to vector<2x8xf32>
    %923 = arith.mulf %922, %921 : vector<2x8xf32>
    %924 = vector.broadcast %883 : vector<2x1xf32> to vector<2x8xf32>
    %925 = arith.mulf %924, %921 : vector<2x8xf32>
    %cst_98 = arith.constant 1.000000e+00 : f32
    %926 = vector.broadcast %cst_98 : f32 to vector<2x1xf32>
    %927 = arith.subf %926, %883 : vector<2x1xf32>
    %928 = vector.broadcast %927 : vector<2x1xf32> to vector<2x8xf32>
    %929 = arith.mulf %928, %828 : vector<2x8xf32>
    %930 = arith.addf %925, %929 : vector<2x8xf32>
    %931 = tpu.concatenate %880, %930 in 0 : vector<2x8xf32>, vector<2x8xf32> -> vector<4x8xf32>
    %cst_99 = arith.constant dense<0.000000e+00> : vector<4x48xf32>
    %932 = tpu.matmul %931, %823, %cst_99 {dimension_numbers = #tpu.dot_dimension_numbers<[1], [0], [0], [1], [0, 0, 1, 1], [], []>} : vector<4x8xf32>, vector<8x48xf32>, vector<4x48xf32> -> vector<4x48xf32>
    %933 = vector.extract_strided_slice %822 {offsets = [2, 0], sizes = [2, 24], strides = [1, 1]} : vector<16x48xf32> to vector<2x24xf32>
    %934 = vector.extract_strided_slice %932 {offsets = [0, 0], sizes = [2, 24], strides = [1, 1]} : vector<4x48xf32> to vector<2x24xf32>
    %935 = vector.extract_strided_slice %0 {offsets = [0, 1], sizes = [2, 1], strides = [1, 1]} : vector<2x8xf32> to vector<2x1xf32>
    %936 = vector.extract_strided_slice %933 {offsets = [0, 0], sizes = [2, 8], strides = [1, 1]} : vector<2x24xf32> to vector<2x8xf32>
    %937 = vector.extract_strided_slice %934 {offsets = [0, 0], sizes = [2, 8], strides = [1, 1]} : vector<2x24xf32> to vector<2x8xf32>
    %938 = arith.addf %936, %937 : vector<2x8xf32>
    %939 = vector.extract_strided_slice %825 {offsets = [0, 0], sizes = [1, 8], strides = [1, 1]} : vector<1x32xf32> to vector<1x8xf32>
    %940 = vector.broadcast %939 : vector<1x8xf32> to vector<2x8xf32>
    %941 = arith.addf %938, %940 : vector<2x8xf32>
    %942 = arith.negf %941 : vector<2x8xf32>
    %943 = math.exp %942 : vector<2x8xf32>
    %cst_100 = arith.constant 1.000000e+00 : f32
    %944 = vector.broadcast %cst_100 : f32 to vector<2x8xf32>
    %945 = arith.addf %944, %943 : vector<2x8xf32>
    %946 = arith.divf %944, %945 : vector<2x8xf32>
    %947 = vector.extract_strided_slice %933 {offsets = [0, 8], sizes = [2, 8], strides = [1, 1]} : vector<2x24xf32> to vector<2x8xf32>
    %948 = vector.extract_strided_slice %934 {offsets = [0, 8], sizes = [2, 8], strides = [1, 1]} : vector<2x24xf32> to vector<2x8xf32>
    %949 = arith.addf %947, %948 : vector<2x8xf32>
    %950 = vector.extract_strided_slice %825 {offsets = [0, 8], sizes = [1, 8], strides = [1, 1]} : vector<1x32xf32> to vector<1x8xf32>
    %951 = vector.broadcast %950 : vector<1x8xf32> to vector<2x8xf32>
    %952 = arith.addf %949, %951 : vector<2x8xf32>
    %953 = arith.negf %952 : vector<2x8xf32>
    %954 = math.exp %953 : vector<2x8xf32>
    %cst_101 = arith.constant 1.000000e+00 : f32
    %955 = vector.broadcast %cst_101 : f32 to vector<2x8xf32>
    %956 = arith.addf %955, %954 : vector<2x8xf32>
    %957 = arith.divf %955, %956 : vector<2x8xf32>
    %958 = vector.extract_strided_slice %933 {offsets = [0, 16], sizes = [2, 8], strides = [1, 1]} : vector<2x24xf32> to vector<2x8xf32>
    %959 = vector.extract_strided_slice %825 {offsets = [0, 16], sizes = [1, 8], strides = [1, 1]} : vector<1x32xf32> to vector<1x8xf32>
    %960 = vector.broadcast %959 : vector<1x8xf32> to vector<2x8xf32>
    %961 = arith.addf %958, %960 : vector<2x8xf32>
    %962 = vector.extract_strided_slice %934 {offsets = [0, 16], sizes = [2, 8], strides = [1, 1]} : vector<2x24xf32> to vector<2x8xf32>
    %963 = vector.extract_strided_slice %825 {offsets = [0, 24], sizes = [1, 8], strides = [1, 1]} : vector<1x32xf32> to vector<1x8xf32>
    %964 = vector.broadcast %963 : vector<1x8xf32> to vector<2x8xf32>
    %965 = arith.addf %962, %964 : vector<2x8xf32>
    %966 = arith.mulf %946, %965 : vector<2x8xf32>
    %967 = arith.addf %961, %966 : vector<2x8xf32>
    %968 = math.tanh %967 : vector<2x8xf32>
    %cst_102 = arith.constant 1.000000e+00 : f32
    %969 = vector.broadcast %cst_102 : f32 to vector<2x8xf32>
    %970 = arith.subf %969, %957 : vector<2x8xf32>
    %971 = arith.mulf %970, %968 : vector<2x8xf32>
    %972 = arith.mulf %957, %880 : vector<2x8xf32>
    %973 = arith.addf %971, %972 : vector<2x8xf32>
    %974 = vector.broadcast %935 : vector<2x1xf32> to vector<2x8xf32>
    %975 = arith.mulf %974, %973 : vector<2x8xf32>
    %976 = vector.broadcast %935 : vector<2x1xf32> to vector<2x8xf32>
    %977 = arith.mulf %976, %973 : vector<2x8xf32>
    %cst_103 = arith.constant 1.000000e+00 : f32
    %978 = vector.broadcast %cst_103 : f32 to vector<2x1xf32>
    %979 = arith.subf %978, %935 : vector<2x1xf32>
    %980 = vector.broadcast %979 : vector<2x1xf32> to vector<2x8xf32>
    %981 = arith.mulf %980, %880 : vector<2x8xf32>
    %982 = arith.addf %977, %981 : vector<2x8xf32>
    %983 = vector.extract_strided_slice %822 {offsets = [12, 24], sizes = [2, 24], strides = [1, 1]} : vector<16x48xf32> to vector<2x24xf32>
    %984 = vector.extract_strided_slice %932 {offsets = [2, 24], sizes = [2, 24], strides = [1, 1]} : vector<4x48xf32> to vector<2x24xf32>
    %985 = vector.extract_strided_slice %0 {offsets = [0, 6], sizes = [2, 1], strides = [1, 1]} : vector<2x8xf32> to vector<2x1xf32>
    %986 = vector.extract_strided_slice %983 {offsets = [0, 0], sizes = [2, 8], strides = [1, 1]} : vector<2x24xf32> to vector<2x8xf32>
    %987 = vector.extract_strided_slice %984 {offsets = [0, 0], sizes = [2, 8], strides = [1, 1]} : vector<2x24xf32> to vector<2x8xf32>
    %988 = arith.addf %986, %987 : vector<2x8xf32>
    %989 = vector.extract_strided_slice %826 {offsets = [0, 0], sizes = [1, 8], strides = [1, 1]} : vector<1x32xf32> to vector<1x8xf32>
    %990 = vector.broadcast %989 : vector<1x8xf32> to vector<2x8xf32>
    %991 = arith.addf %988, %990 : vector<2x8xf32>
    %992 = arith.negf %991 : vector<2x8xf32>
    %993 = math.exp %992 : vector<2x8xf32>
    %cst_104 = arith.constant 1.000000e+00 : f32
    %994 = vector.broadcast %cst_104 : f32 to vector<2x8xf32>
    %995 = arith.addf %994, %993 : vector<2x8xf32>
    %996 = arith.divf %994, %995 : vector<2x8xf32>
    %997 = vector.extract_strided_slice %983 {offsets = [0, 8], sizes = [2, 8], strides = [1, 1]} : vector<2x24xf32> to vector<2x8xf32>
    %998 = vector.extract_strided_slice %984 {offsets = [0, 8], sizes = [2, 8], strides = [1, 1]} : vector<2x24xf32> to vector<2x8xf32>
    %999 = arith.addf %997, %998 : vector<2x8xf32>
    %1000 = vector.extract_strided_slice %826 {offsets = [0, 8], sizes = [1, 8], strides = [1, 1]} : vector<1x32xf32> to vector<1x8xf32>
    %1001 = vector.broadcast %1000 : vector<1x8xf32> to vector<2x8xf32>
    %1002 = arith.addf %999, %1001 : vector<2x8xf32>
    %1003 = arith.negf %1002 : vector<2x8xf32>
    %1004 = math.exp %1003 : vector<2x8xf32>
    %cst_105 = arith.constant 1.000000e+00 : f32
    %1005 = vector.broadcast %cst_105 : f32 to vector<2x8xf32>
    %1006 = arith.addf %1005, %1004 : vector<2x8xf32>
    %1007 = arith.divf %1005, %1006 : vector<2x8xf32>
    %1008 = vector.extract_strided_slice %983 {offsets = [0, 16], sizes = [2, 8], strides = [1, 1]} : vector<2x24xf32> to vector<2x8xf32>
    %1009 = vector.extract_strided_slice %826 {offsets = [0, 16], sizes = [1, 8], strides = [1, 1]} : vector<1x32xf32> to vector<1x8xf32>
    %1010 = vector.broadcast %1009 : vector<1x8xf32> to vector<2x8xf32>
    %1011 = arith.addf %1008, %1010 : vector<2x8xf32>
    %1012 = vector.extract_strided_slice %984 {offsets = [0, 16], sizes = [2, 8], strides = [1, 1]} : vector<2x24xf32> to vector<2x8xf32>
    %1013 = vector.extract_strided_slice %826 {offsets = [0, 24], sizes = [1, 8], strides = [1, 1]} : vector<1x32xf32> to vector<1x8xf32>
    %1014 = vector.broadcast %1013 : vector<1x8xf32> to vector<2x8xf32>
    %1015 = arith.addf %1012, %1014 : vector<2x8xf32>
    %1016 = arith.mulf %996, %1015 : vector<2x8xf32>
    %1017 = arith.addf %1011, %1016 : vector<2x8xf32>
    %1018 = math.tanh %1017 : vector<2x8xf32>
    %cst_106 = arith.constant 1.000000e+00 : f32
    %1019 = vector.broadcast %cst_106 : f32 to vector<2x8xf32>
    %1020 = arith.subf %1019, %1007 : vector<2x8xf32>
    %1021 = arith.mulf %1020, %1018 : vector<2x8xf32>
    %1022 = arith.mulf %1007, %930 : vector<2x8xf32>
    %1023 = arith.addf %1021, %1022 : vector<2x8xf32>
    %1024 = vector.broadcast %985 : vector<2x1xf32> to vector<2x8xf32>
    %1025 = arith.mulf %1024, %1023 : vector<2x8xf32>
    %1026 = vector.broadcast %985 : vector<2x1xf32> to vector<2x8xf32>
    %1027 = arith.mulf %1026, %1023 : vector<2x8xf32>
    %cst_107 = arith.constant 1.000000e+00 : f32
    %1028 = vector.broadcast %cst_107 : f32 to vector<2x1xf32>
    %1029 = arith.subf %1028, %985 : vector<2x1xf32>
    %1030 = vector.broadcast %1029 : vector<2x1xf32> to vector<2x8xf32>
    %1031 = arith.mulf %1030, %930 : vector<2x8xf32>
    %1032 = arith.addf %1027, %1031 : vector<2x8xf32>
    %1033 = tpu.concatenate %982, %1032 in 0 : vector<2x8xf32>, vector<2x8xf32> -> vector<4x8xf32>
    %cst_108 = arith.constant dense<0.000000e+00> : vector<4x48xf32>
    %1034 = tpu.matmul %1033, %823, %cst_108 {dimension_numbers = #tpu.dot_dimension_numbers<[1], [0], [0], [1], [0, 0, 1, 1], [], []>} : vector<4x8xf32>, vector<8x48xf32>, vector<4x48xf32> -> vector<4x48xf32>
    %1035 = vector.extract_strided_slice %822 {offsets = [4, 0], sizes = [2, 24], strides = [1, 1]} : vector<16x48xf32> to vector<2x24xf32>
    %1036 = vector.extract_strided_slice %1034 {offsets = [0, 0], sizes = [2, 24], strides = [1, 1]} : vector<4x48xf32> to vector<2x24xf32>
    %1037 = vector.extract_strided_slice %0 {offsets = [0, 2], sizes = [2, 1], strides = [1, 1]} : vector<2x8xf32> to vector<2x1xf32>
    %1038 = vector.extract_strided_slice %1035 {offsets = [0, 0], sizes = [2, 8], strides = [1, 1]} : vector<2x24xf32> to vector<2x8xf32>
    %1039 = vector.extract_strided_slice %1036 {offsets = [0, 0], sizes = [2, 8], strides = [1, 1]} : vector<2x24xf32> to vector<2x8xf32>
    %1040 = arith.addf %1038, %1039 : vector<2x8xf32>
    %1041 = vector.extract_strided_slice %825 {offsets = [0, 0], sizes = [1, 8], strides = [1, 1]} : vector<1x32xf32> to vector<1x8xf32>
    %1042 = vector.broadcast %1041 : vector<1x8xf32> to vector<2x8xf32>
    %1043 = arith.addf %1040, %1042 : vector<2x8xf32>
    %1044 = arith.negf %1043 : vector<2x8xf32>
    %1045 = math.exp %1044 : vector<2x8xf32>
    %cst_109 = arith.constant 1.000000e+00 : f32
    %1046 = vector.broadcast %cst_109 : f32 to vector<2x8xf32>
    %1047 = arith.addf %1046, %1045 : vector<2x8xf32>
    %1048 = arith.divf %1046, %1047 : vector<2x8xf32>
    %1049 = vector.extract_strided_slice %1035 {offsets = [0, 8], sizes = [2, 8], strides = [1, 1]} : vector<2x24xf32> to vector<2x8xf32>
    %1050 = vector.extract_strided_slice %1036 {offsets = [0, 8], sizes = [2, 8], strides = [1, 1]} : vector<2x24xf32> to vector<2x8xf32>
    %1051 = arith.addf %1049, %1050 : vector<2x8xf32>
    %1052 = vector.extract_strided_slice %825 {offsets = [0, 8], sizes = [1, 8], strides = [1, 1]} : vector<1x32xf32> to vector<1x8xf32>
    %1053 = vector.broadcast %1052 : vector<1x8xf32> to vector<2x8xf32>
    %1054 = arith.addf %1051, %1053 : vector<2x8xf32>
    %1055 = arith.negf %1054 : vector<2x8xf32>
    %1056 = math.exp %1055 : vector<2x8xf32>
    %cst_110 = arith.constant 1.000000e+00 : f32
    %1057 = vector.broadcast %cst_110 : f32 to vector<2x8xf32>
    %1058 = arith.addf %1057, %1056 : vector<2x8xf32>
    %1059 = arith.divf %1057, %1058 : vector<2x8xf32>
    %1060 = vector.extract_strided_slice %1035 {offsets = [0, 16], sizes = [2, 8], strides = [1, 1]} : vector<2x24xf32> to vector<2x8xf32>
    %1061 = vector.extract_strided_slice %825 {offsets = [0, 16], sizes = [1, 8], strides = [1, 1]} : vector<1x32xf32> to vector<1x8xf32>
    %1062 = vector.broadcast %1061 : vector<1x8xf32> to vector<2x8xf32>
    %1063 = arith.addf %1060, %1062 : vector<2x8xf32>
    %1064 = vector.extract_strided_slice %1036 {offsets = [0, 16], sizes = [2, 8], strides = [1, 1]} : vector<2x24xf32> to vector<2x8xf32>
    %1065 = vector.extract_strided_slice %825 {offsets = [0, 24], sizes = [1, 8], strides = [1, 1]} : vector<1x32xf32> to vector<1x8xf32>
    %1066 = vector.broadcast %1065 : vector<1x8xf32> to vector<2x8xf32>
    %1067 = arith.addf %1064, %1066 : vector<2x8xf32>
    %1068 = arith.mulf %1048, %1067 : vector<2x8xf32>
    %1069 = arith.addf %1063, %1068 : vector<2x8xf32>
    %1070 = math.tanh %1069 : vector<2x8xf32>
    %cst_111 = arith.constant 1.000000e+00 : f32
    %1071 = vector.broadcast %cst_111 : f32 to vector<2x8xf32>
    %1072 = arith.subf %1071, %1059 : vector<2x8xf32>
    %1073 = arith.mulf %1072, %1070 : vector<2x8xf32>
    %1074 = arith.mulf %1059, %982 : vector<2x8xf32>
    %1075 = arith.addf %1073, %1074 : vector<2x8xf32>
    %1076 = vector.broadcast %1037 : vector<2x1xf32> to vector<2x8xf32>
    %1077 = arith.mulf %1076, %1075 : vector<2x8xf32>
    %1078 = vector.broadcast %1037 : vector<2x1xf32> to vector<2x8xf32>
    %1079 = arith.mulf %1078, %1075 : vector<2x8xf32>
    %cst_112 = arith.constant 1.000000e+00 : f32
    %1080 = vector.broadcast %cst_112 : f32 to vector<2x1xf32>
    %1081 = arith.subf %1080, %1037 : vector<2x1xf32>
    %1082 = vector.broadcast %1081 : vector<2x1xf32> to vector<2x8xf32>
    %1083 = arith.mulf %1082, %982 : vector<2x8xf32>
    %1084 = arith.addf %1079, %1083 : vector<2x8xf32>
    %1085 = vector.extract_strided_slice %822 {offsets = [10, 24], sizes = [2, 24], strides = [1, 1]} : vector<16x48xf32> to vector<2x24xf32>
    %1086 = vector.extract_strided_slice %1034 {offsets = [2, 24], sizes = [2, 24], strides = [1, 1]} : vector<4x48xf32> to vector<2x24xf32>
    %1087 = vector.extract_strided_slice %0 {offsets = [0, 5], sizes = [2, 1], strides = [1, 1]} : vector<2x8xf32> to vector<2x1xf32>
    %1088 = vector.extract_strided_slice %1085 {offsets = [0, 0], sizes = [2, 8], strides = [1, 1]} : vector<2x24xf32> to vector<2x8xf32>
    %1089 = vector.extract_strided_slice %1086 {offsets = [0, 0], sizes = [2, 8], strides = [1, 1]} : vector<2x24xf32> to vector<2x8xf32>
    %1090 = arith.addf %1088, %1089 : vector<2x8xf32>
    %1091 = vector.extract_strided_slice %826 {offsets = [0, 0], sizes = [1, 8], strides = [1, 1]} : vector<1x32xf32> to vector<1x8xf32>
    %1092 = vector.broadcast %1091 : vector<1x8xf32> to vector<2x8xf32>
    %1093 = arith.addf %1090, %1092 : vector<2x8xf32>
    %1094 = arith.negf %1093 : vector<2x8xf32>
    %1095 = math.exp %1094 : vector<2x8xf32>
    %cst_113 = arith.constant 1.000000e+00 : f32
    %1096 = vector.broadcast %cst_113 : f32 to vector<2x8xf32>
    %1097 = arith.addf %1096, %1095 : vector<2x8xf32>
    %1098 = arith.divf %1096, %1097 : vector<2x8xf32>
    %1099 = vector.extract_strided_slice %1085 {offsets = [0, 8], sizes = [2, 8], strides = [1, 1]} : vector<2x24xf32> to vector<2x8xf32>
    %1100 = vector.extract_strided_slice %1086 {offsets = [0, 8], sizes = [2, 8], strides = [1, 1]} : vector<2x24xf32> to vector<2x8xf32>
    %1101 = arith.addf %1099, %1100 : vector<2x8xf32>
    %1102 = vector.extract_strided_slice %826 {offsets = [0, 8], sizes = [1, 8], strides = [1, 1]} : vector<1x32xf32> to vector<1x8xf32>
    %1103 = vector.broadcast %1102 : vector<1x8xf32> to vector<2x8xf32>
    %1104 = arith.addf %1101, %1103 : vector<2x8xf32>
    %1105 = arith.negf %1104 : vector<2x8xf32>
    %1106 = math.exp %1105 : vector<2x8xf32>
    %cst_114 = arith.constant 1.000000e+00 : f32
    %1107 = vector.broadcast %cst_114 : f32 to vector<2x8xf32>
    %1108 = arith.addf %1107, %1106 : vector<2x8xf32>
    %1109 = arith.divf %1107, %1108 : vector<2x8xf32>
    %1110 = vector.extract_strided_slice %1085 {offsets = [0, 16], sizes = [2, 8], strides = [1, 1]} : vector<2x24xf32> to vector<2x8xf32>
    %1111 = vector.extract_strided_slice %826 {offsets = [0, 16], sizes = [1, 8], strides = [1, 1]} : vector<1x32xf32> to vector<1x8xf32>
    %1112 = vector.broadcast %1111 : vector<1x8xf32> to vector<2x8xf32>
    %1113 = arith.addf %1110, %1112 : vector<2x8xf32>
    %1114 = vector.extract_strided_slice %1086 {offsets = [0, 16], sizes = [2, 8], strides = [1, 1]} : vector<2x24xf32> to vector<2x8xf32>
    %1115 = vector.extract_strided_slice %826 {offsets = [0, 24], sizes = [1, 8], strides = [1, 1]} : vector<1x32xf32> to vector<1x8xf32>
    %1116 = vector.broadcast %1115 : vector<1x8xf32> to vector<2x8xf32>
    %1117 = arith.addf %1114, %1116 : vector<2x8xf32>
    %1118 = arith.mulf %1098, %1117 : vector<2x8xf32>
    %1119 = arith.addf %1113, %1118 : vector<2x8xf32>
    %1120 = math.tanh %1119 : vector<2x8xf32>
    %cst_115 = arith.constant 1.000000e+00 : f32
    %1121 = vector.broadcast %cst_115 : f32 to vector<2x8xf32>
    %1122 = arith.subf %1121, %1109 : vector<2x8xf32>
    %1123 = arith.mulf %1122, %1120 : vector<2x8xf32>
    %1124 = arith.mulf %1109, %1032 : vector<2x8xf32>
    %1125 = arith.addf %1123, %1124 : vector<2x8xf32>
    %1126 = vector.broadcast %1087 : vector<2x1xf32> to vector<2x8xf32>
    %1127 = arith.mulf %1126, %1125 : vector<2x8xf32>
    %1128 = vector.broadcast %1087 : vector<2x1xf32> to vector<2x8xf32>
    %1129 = arith.mulf %1128, %1125 : vector<2x8xf32>
    %cst_116 = arith.constant 1.000000e+00 : f32
    %1130 = vector.broadcast %cst_116 : f32 to vector<2x1xf32>
    %1131 = arith.subf %1130, %1087 : vector<2x1xf32>
    %1132 = vector.broadcast %1131 : vector<2x1xf32> to vector<2x8xf32>
    %1133 = arith.mulf %1132, %1032 : vector<2x8xf32>
    %1134 = arith.addf %1129, %1133 : vector<2x8xf32>
    %1135 = tpu.concatenate %1084, %1134 in 0 : vector<2x8xf32>, vector<2x8xf32> -> vector<4x8xf32>
    %cst_117 = arith.constant dense<0.000000e+00> : vector<4x48xf32>
    %1136 = tpu.matmul %1135, %823, %cst_117 {dimension_numbers = #tpu.dot_dimension_numbers<[1], [0], [0], [1], [0, 0, 1, 1], [], []>} : vector<4x8xf32>, vector<8x48xf32>, vector<4x48xf32> -> vector<4x48xf32>
    %1137 = vector.extract_strided_slice %822 {offsets = [6, 0], sizes = [2, 24], strides = [1, 1]} : vector<16x48xf32> to vector<2x24xf32>
    %1138 = vector.extract_strided_slice %1136 {offsets = [0, 0], sizes = [2, 24], strides = [1, 1]} : vector<4x48xf32> to vector<2x24xf32>
    %1139 = vector.extract_strided_slice %0 {offsets = [0, 3], sizes = [2, 1], strides = [1, 1]} : vector<2x8xf32> to vector<2x1xf32>
    %1140 = vector.extract_strided_slice %1137 {offsets = [0, 0], sizes = [2, 8], strides = [1, 1]} : vector<2x24xf32> to vector<2x8xf32>
    %1141 = vector.extract_strided_slice %1138 {offsets = [0, 0], sizes = [2, 8], strides = [1, 1]} : vector<2x24xf32> to vector<2x8xf32>
    %1142 = arith.addf %1140, %1141 : vector<2x8xf32>
    %1143 = vector.extract_strided_slice %825 {offsets = [0, 0], sizes = [1, 8], strides = [1, 1]} : vector<1x32xf32> to vector<1x8xf32>
    %1144 = vector.broadcast %1143 : vector<1x8xf32> to vector<2x8xf32>
    %1145 = arith.addf %1142, %1144 : vector<2x8xf32>
    %1146 = arith.negf %1145 : vector<2x8xf32>
    %1147 = math.exp %1146 : vector<2x8xf32>
    %cst_118 = arith.constant 1.000000e+00 : f32
    %1148 = vector.broadcast %cst_118 : f32 to vector<2x8xf32>
    %1149 = arith.addf %1148, %1147 : vector<2x8xf32>
    %1150 = arith.divf %1148, %1149 : vector<2x8xf32>
    %1151 = vector.extract_strided_slice %1137 {offsets = [0, 8], sizes = [2, 8], strides = [1, 1]} : vector<2x24xf32> to vector<2x8xf32>
    %1152 = vector.extract_strided_slice %1138 {offsets = [0, 8], sizes = [2, 8], strides = [1, 1]} : vector<2x24xf32> to vector<2x8xf32>
    %1153 = arith.addf %1151, %1152 : vector<2x8xf32>
    %1154 = vector.extract_strided_slice %825 {offsets = [0, 8], sizes = [1, 8], strides = [1, 1]} : vector<1x32xf32> to vector<1x8xf32>
    %1155 = vector.broadcast %1154 : vector<1x8xf32> to vector<2x8xf32>
    %1156 = arith.addf %1153, %1155 : vector<2x8xf32>
    %1157 = arith.negf %1156 : vector<2x8xf32>
    %1158 = math.exp %1157 : vector<2x8xf32>
    %cst_119 = arith.constant 1.000000e+00 : f32
    %1159 = vector.broadcast %cst_119 : f32 to vector<2x8xf32>
    %1160 = arith.addf %1159, %1158 : vector<2x8xf32>
    %1161 = arith.divf %1159, %1160 : vector<2x8xf32>
    %1162 = vector.extract_strided_slice %1137 {offsets = [0, 16], sizes = [2, 8], strides = [1, 1]} : vector<2x24xf32> to vector<2x8xf32>
    %1163 = vector.extract_strided_slice %825 {offsets = [0, 16], sizes = [1, 8], strides = [1, 1]} : vector<1x32xf32> to vector<1x8xf32>
    %1164 = vector.broadcast %1163 : vector<1x8xf32> to vector<2x8xf32>
    %1165 = arith.addf %1162, %1164 : vector<2x8xf32>
    %1166 = vector.extract_strided_slice %1138 {offsets = [0, 16], sizes = [2, 8], strides = [1, 1]} : vector<2x24xf32> to vector<2x8xf32>
    %1167 = vector.extract_strided_slice %825 {offsets = [0, 24], sizes = [1, 8], strides = [1, 1]} : vector<1x32xf32> to vector<1x8xf32>
    %1168 = vector.broadcast %1167 : vector<1x8xf32> to vector<2x8xf32>
    %1169 = arith.addf %1166, %1168 : vector<2x8xf32>
    %1170 = arith.mulf %1150, %1169 : vector<2x8xf32>
    %1171 = arith.addf %1165, %1170 : vector<2x8xf32>
    %1172 = math.tanh %1171 : vector<2x8xf32>
    %cst_120 = arith.constant 1.000000e+00 : f32
    %1173 = vector.broadcast %cst_120 : f32 to vector<2x8xf32>
    %1174 = arith.subf %1173, %1161 : vector<2x8xf32>
    %1175 = arith.mulf %1174, %1172 : vector<2x8xf32>
    %1176 = arith.mulf %1161, %1084 : vector<2x8xf32>
    %1177 = arith.addf %1175, %1176 : vector<2x8xf32>
    %1178 = vector.broadcast %1139 : vector<2x1xf32> to vector<2x8xf32>
    %1179 = arith.mulf %1178, %1177 : vector<2x8xf32>
    %1180 = vector.broadcast %1139 : vector<2x1xf32> to vector<2x8xf32>
    %1181 = arith.mulf %1180, %1177 : vector<2x8xf32>
    %cst_121 = arith.constant 1.000000e+00 : f32
    %1182 = vector.broadcast %cst_121 : f32 to vector<2x1xf32>
    %1183 = arith.subf %1182, %1139 : vector<2x1xf32>
    %1184 = vector.broadcast %1183 : vector<2x1xf32> to vector<2x8xf32>
    %1185 = arith.mulf %1184, %1084 : vector<2x8xf32>
    %1186 = arith.addf %1181, %1185 : vector<2x8xf32>
    %1187 = vector.extract_strided_slice %822 {offsets = [8, 24], sizes = [2, 24], strides = [1, 1]} : vector<16x48xf32> to vector<2x24xf32>
    %1188 = vector.extract_strided_slice %1136 {offsets = [2, 24], sizes = [2, 24], strides = [1, 1]} : vector<4x48xf32> to vector<2x24xf32>
    %1189 = vector.extract_strided_slice %0 {offsets = [0, 4], sizes = [2, 1], strides = [1, 1]} : vector<2x8xf32> to vector<2x1xf32>
    %1190 = vector.extract_strided_slice %1187 {offsets = [0, 0], sizes = [2, 8], strides = [1, 1]} : vector<2x24xf32> to vector<2x8xf32>
    %1191 = vector.extract_strided_slice %1188 {offsets = [0, 0], sizes = [2, 8], strides = [1, 1]} : vector<2x24xf32> to vector<2x8xf32>
    %1192 = arith.addf %1190, %1191 : vector<2x8xf32>
    %1193 = vector.extract_strided_slice %826 {offsets = [0, 0], sizes = [1, 8], strides = [1, 1]} : vector<1x32xf32> to vector<1x8xf32>
    %1194 = vector.broadcast %1193 : vector<1x8xf32> to vector<2x8xf32>
    %1195 = arith.addf %1192, %1194 : vector<2x8xf32>
    %1196 = arith.negf %1195 : vector<2x8xf32>
    %1197 = math.exp %1196 : vector<2x8xf32>
    %cst_122 = arith.constant 1.000000e+00 : f32
    %1198 = vector.broadcast %cst_122 : f32 to vector<2x8xf32>
    %1199 = arith.addf %1198, %1197 : vector<2x8xf32>
    %1200 = arith.divf %1198, %1199 : vector<2x8xf32>
    %1201 = vector.extract_strided_slice %1187 {offsets = [0, 8], sizes = [2, 8], strides = [1, 1]} : vector<2x24xf32> to vector<2x8xf32>
    %1202 = vector.extract_strided_slice %1188 {offsets = [0, 8], sizes = [2, 8], strides = [1, 1]} : vector<2x24xf32> to vector<2x8xf32>
    %1203 = arith.addf %1201, %1202 : vector<2x8xf32>
    %1204 = vector.extract_strided_slice %826 {offsets = [0, 8], sizes = [1, 8], strides = [1, 1]} : vector<1x32xf32> to vector<1x8xf32>
    %1205 = vector.broadcast %1204 : vector<1x8xf32> to vector<2x8xf32>
    %1206 = arith.addf %1203, %1205 : vector<2x8xf32>
    %1207 = arith.negf %1206 : vector<2x8xf32>
    %1208 = math.exp %1207 : vector<2x8xf32>
    %cst_123 = arith.constant 1.000000e+00 : f32
    %1209 = vector.broadcast %cst_123 : f32 to vector<2x8xf32>
    %1210 = arith.addf %1209, %1208 : vector<2x8xf32>
    %1211 = arith.divf %1209, %1210 : vector<2x8xf32>
    %1212 = vector.extract_strided_slice %1187 {offsets = [0, 16], sizes = [2, 8], strides = [1, 1]} : vector<2x24xf32> to vector<2x8xf32>
    %1213 = vector.extract_strided_slice %826 {offsets = [0, 16], sizes = [1, 8], strides = [1, 1]} : vector<1x32xf32> to vector<1x8xf32>
    %1214 = vector.broadcast %1213 : vector<1x8xf32> to vector<2x8xf32>
    %1215 = arith.addf %1212, %1214 : vector<2x8xf32>
    %1216 = vector.extract_strided_slice %1188 {offsets = [0, 16], sizes = [2, 8], strides = [1, 1]} : vector<2x24xf32> to vector<2x8xf32>
    %1217 = vector.extract_strided_slice %826 {offsets = [0, 24], sizes = [1, 8], strides = [1, 1]} : vector<1x32xf32> to vector<1x8xf32>
    %1218 = vector.broadcast %1217 : vector<1x8xf32> to vector<2x8xf32>
    %1219 = arith.addf %1216, %1218 : vector<2x8xf32>
    %1220 = arith.mulf %1200, %1219 : vector<2x8xf32>
    %1221 = arith.addf %1215, %1220 : vector<2x8xf32>
    %1222 = math.tanh %1221 : vector<2x8xf32>
    %cst_124 = arith.constant 1.000000e+00 : f32
    %1223 = vector.broadcast %cst_124 : f32 to vector<2x8xf32>
    %1224 = arith.subf %1223, %1211 : vector<2x8xf32>
    %1225 = arith.mulf %1224, %1222 : vector<2x8xf32>
    %1226 = arith.mulf %1211, %1134 : vector<2x8xf32>
    %1227 = arith.addf %1225, %1226 : vector<2x8xf32>
    %1228 = vector.broadcast %1189 : vector<2x1xf32> to vector<2x8xf32>
    %1229 = arith.mulf %1228, %1227 : vector<2x8xf32>
    %1230 = vector.broadcast %1189 : vector<2x1xf32> to vector<2x8xf32>
    %1231 = arith.mulf %1230, %1227 : vector<2x8xf32>
    %cst_125 = arith.constant 1.000000e+00 : f32
    %1232 = vector.broadcast %cst_125 : f32 to vector<2x1xf32>
    %1233 = arith.subf %1232, %1189 : vector<2x1xf32>
    %1234 = vector.broadcast %1233 : vector<2x1xf32> to vector<2x8xf32>
    %1235 = arith.mulf %1234, %1134 : vector<2x8xf32>
    %1236 = arith.addf %1231, %1235 : vector<2x8xf32>
    %1237 = tpu.concatenate %1186, %1236 in 0 : vector<2x8xf32>, vector<2x8xf32> -> vector<4x8xf32>
    %cst_126 = arith.constant dense<0.000000e+00> : vector<4x48xf32>
    %1238 = tpu.matmul %1237, %823, %cst_126 {dimension_numbers = #tpu.dot_dimension_numbers<[1], [0], [0], [1], [0, 0, 1, 1], [], []>} : vector<4x8xf32>, vector<8x48xf32>, vector<4x48xf32> -> vector<4x48xf32>
    %1239 = vector.extract_strided_slice %822 {offsets = [8, 0], sizes = [2, 24], strides = [1, 1]} : vector<16x48xf32> to vector<2x24xf32>
    %1240 = vector.extract_strided_slice %1238 {offsets = [0, 0], sizes = [2, 24], strides = [1, 1]} : vector<4x48xf32> to vector<2x24xf32>
    %1241 = vector.extract_strided_slice %0 {offsets = [0, 4], sizes = [2, 1], strides = [1, 1]} : vector<2x8xf32> to vector<2x1xf32>
    %1242 = vector.extract_strided_slice %1239 {offsets = [0, 0], sizes = [2, 8], strides = [1, 1]} : vector<2x24xf32> to vector<2x8xf32>
    %1243 = vector.extract_strided_slice %1240 {offsets = [0, 0], sizes = [2, 8], strides = [1, 1]} : vector<2x24xf32> to vector<2x8xf32>
    %1244 = arith.addf %1242, %1243 : vector<2x8xf32>
    %1245 = vector.extract_strided_slice %825 {offsets = [0, 0], sizes = [1, 8], strides = [1, 1]} : vector<1x32xf32> to vector<1x8xf32>
    %1246 = vector.broadcast %1245 : vector<1x8xf32> to vector<2x8xf32>
    %1247 = arith.addf %1244, %1246 : vector<2x8xf32>
    %1248 = arith.negf %1247 : vector<2x8xf32>
    %1249 = math.exp %1248 : vector<2x8xf32>
    %cst_127 = arith.constant 1.000000e+00 : f32
    %1250 = vector.broadcast %cst_127 : f32 to vector<2x8xf32>
    %1251 = arith.addf %1250, %1249 : vector<2x8xf32>
    %1252 = arith.divf %1250, %1251 : vector<2x8xf32>
    %1253 = vector.extract_strided_slice %1239 {offsets = [0, 8], sizes = [2, 8], strides = [1, 1]} : vector<2x24xf32> to vector<2x8xf32>
    %1254 = vector.extract_strided_slice %1240 {offsets = [0, 8], sizes = [2, 8], strides = [1, 1]} : vector<2x24xf32> to vector<2x8xf32>
    %1255 = arith.addf %1253, %1254 : vector<2x8xf32>
    %1256 = vector.extract_strided_slice %825 {offsets = [0, 8], sizes = [1, 8], strides = [1, 1]} : vector<1x32xf32> to vector<1x8xf32>
    %1257 = vector.broadcast %1256 : vector<1x8xf32> to vector<2x8xf32>
    %1258 = arith.addf %1255, %1257 : vector<2x8xf32>
    %1259 = arith.negf %1258 : vector<2x8xf32>
    %1260 = math.exp %1259 : vector<2x8xf32>
    %cst_128 = arith.constant 1.000000e+00 : f32
    %1261 = vector.broadcast %cst_128 : f32 to vector<2x8xf32>
    %1262 = arith.addf %1261, %1260 : vector<2x8xf32>
    %1263 = arith.divf %1261, %1262 : vector<2x8xf32>
    %1264 = vector.extract_strided_slice %1239 {offsets = [0, 16], sizes = [2, 8], strides = [1, 1]} : vector<2x24xf32> to vector<2x8xf32>
    %1265 = vector.extract_strided_slice %825 {offsets = [0, 16], sizes = [1, 8], strides = [1, 1]} : vector<1x32xf32> to vector<1x8xf32>
    %1266 = vector.broadcast %1265 : vector<1x8xf32> to vector<2x8xf32>
    %1267 = arith.addf %1264, %1266 : vector<2x8xf32>
    %1268 = vector.extract_strided_slice %1240 {offsets = [0, 16], sizes = [2, 8], strides = [1, 1]} : vector<2x24xf32> to vector<2x8xf32>
    %1269 = vector.extract_strided_slice %825 {offsets = [0, 24], sizes = [1, 8], strides = [1, 1]} : vector<1x32xf32> to vector<1x8xf32>
    %1270 = vector.broadcast %1269 : vector<1x8xf32> to vector<2x8xf32>
    %1271 = arith.addf %1268, %1270 : vector<2x8xf32>
    %1272 = arith.mulf %1252, %1271 : vector<2x8xf32>
    %1273 = arith.addf %1267, %1272 : vector<2x8xf32>
    %1274 = math.tanh %1273 : vector<2x8xf32>
    %cst_129 = arith.constant 1.000000e+00 : f32
    %1275 = vector.broadcast %cst_129 : f32 to vector<2x8xf32>
    %1276 = arith.subf %1275, %1263 : vector<2x8xf32>
    %1277 = arith.mulf %1276, %1274 : vector<2x8xf32>
    %1278 = arith.mulf %1263, %1186 : vector<2x8xf32>
    %1279 = arith.addf %1277, %1278 : vector<2x8xf32>
    %1280 = vector.broadcast %1241 : vector<2x1xf32> to vector<2x8xf32>
    %1281 = arith.mulf %1280, %1279 : vector<2x8xf32>
    %1282 = vector.broadcast %1241 : vector<2x1xf32> to vector<2x8xf32>
    %1283 = arith.mulf %1282, %1279 : vector<2x8xf32>
    %cst_130 = arith.constant 1.000000e+00 : f32
    %1284 = vector.broadcast %cst_130 : f32 to vector<2x1xf32>
    %1285 = arith.subf %1284, %1241 : vector<2x1xf32>
    %1286 = vector.broadcast %1285 : vector<2x1xf32> to vector<2x8xf32>
    %1287 = arith.mulf %1286, %1186 : vector<2x8xf32>
    %1288 = arith.addf %1283, %1287 : vector<2x8xf32>
    %1289 = vector.extract_strided_slice %822 {offsets = [6, 24], sizes = [2, 24], strides = [1, 1]} : vector<16x48xf32> to vector<2x24xf32>
    %1290 = vector.extract_strided_slice %1238 {offsets = [2, 24], sizes = [2, 24], strides = [1, 1]} : vector<4x48xf32> to vector<2x24xf32>
    %1291 = vector.extract_strided_slice %0 {offsets = [0, 3], sizes = [2, 1], strides = [1, 1]} : vector<2x8xf32> to vector<2x1xf32>
    %1292 = vector.extract_strided_slice %1289 {offsets = [0, 0], sizes = [2, 8], strides = [1, 1]} : vector<2x24xf32> to vector<2x8xf32>
    %1293 = vector.extract_strided_slice %1290 {offsets = [0, 0], sizes = [2, 8], strides = [1, 1]} : vector<2x24xf32> to vector<2x8xf32>
    %1294 = arith.addf %1292, %1293 : vector<2x8xf32>
    %1295 = vector.extract_strided_slice %826 {offsets = [0, 0], sizes = [1, 8], strides = [1, 1]} : vector<1x32xf32> to vector<1x8xf32>
    %1296 = vector.broadcast %1295 : vector<1x8xf32> to vector<2x8xf32>
    %1297 = arith.addf %1294, %1296 : vector<2x8xf32>
    %1298 = arith.negf %1297 : vector<2x8xf32>
    %1299 = math.exp %1298 : vector<2x8xf32>
    %cst_131 = arith.constant 1.000000e+00 : f32
    %1300 = vector.broadcast %cst_131 : f32 to vector<2x8xf32>
    %1301 = arith.addf %1300, %1299 : vector<2x8xf32>
    %1302 = arith.divf %1300, %1301 : vector<2x8xf32>
    %1303 = vector.extract_strided_slice %1289 {offsets = [0, 8], sizes = [2, 8], strides = [1, 1]} : vector<2x24xf32> to vector<2x8xf32>
    %1304 = vector.extract_strided_slice %1290 {offsets = [0, 8], sizes = [2, 8], strides = [1, 1]} : vector<2x24xf32> to vector<2x8xf32>
    %1305 = arith.addf %1303, %1304 : vector<2x8xf32>
    %1306 = vector.extract_strided_slice %826 {offsets = [0, 8], sizes = [1, 8], strides = [1, 1]} : vector<1x32xf32> to vector<1x8xf32>
    %1307 = vector.broadcast %1306 : vector<1x8xf32> to vector<2x8xf32>
    %1308 = arith.addf %1305, %1307 : vector<2x8xf32>
    %1309 = arith.negf %1308 : vector<2x8xf32>
    %1310 = math.exp %1309 : vector<2x8xf32>
    %cst_132 = arith.constant 1.000000e+00 : f32
    %1311 = vector.broadcast %cst_132 : f32 to vector<2x8xf32>
    %1312 = arith.addf %1311, %1310 : vector<2x8xf32>
    %1313 = arith.divf %1311, %1312 : vector<2x8xf32>
    %1314 = vector.extract_strided_slice %1289 {offsets = [0, 16], sizes = [2, 8], strides = [1, 1]} : vector<2x24xf32> to vector<2x8xf32>
    %1315 = vector.extract_strided_slice %826 {offsets = [0, 16], sizes = [1, 8], strides = [1, 1]} : vector<1x32xf32> to vector<1x8xf32>
    %1316 = vector.broadcast %1315 : vector<1x8xf32> to vector<2x8xf32>
    %1317 = arith.addf %1314, %1316 : vector<2x8xf32>
    %1318 = vector.extract_strided_slice %1290 {offsets = [0, 16], sizes = [2, 8], strides = [1, 1]} : vector<2x24xf32> to vector<2x8xf32>
    %1319 = vector.extract_strided_slice %826 {offsets = [0, 24], sizes = [1, 8], strides = [1, 1]} : vector<1x32xf32> to vector<1x8xf32>
    %1320 = vector.broadcast %1319 : vector<1x8xf32> to vector<2x8xf32>
    %1321 = arith.addf %1318, %1320 : vector<2x8xf32>
    %1322 = arith.mulf %1302, %1321 : vector<2x8xf32>
    %1323 = arith.addf %1317, %1322 : vector<2x8xf32>
    %1324 = math.tanh %1323 : vector<2x8xf32>
    %cst_133 = arith.constant 1.000000e+00 : f32
    %1325 = vector.broadcast %cst_133 : f32 to vector<2x8xf32>
    %1326 = arith.subf %1325, %1313 : vector<2x8xf32>
    %1327 = arith.mulf %1326, %1324 : vector<2x8xf32>
    %1328 = arith.mulf %1313, %1236 : vector<2x8xf32>
    %1329 = arith.addf %1327, %1328 : vector<2x8xf32>
    %1330 = vector.broadcast %1291 : vector<2x1xf32> to vector<2x8xf32>
    %1331 = arith.mulf %1330, %1329 : vector<2x8xf32>
    %1332 = vector.broadcast %1291 : vector<2x1xf32> to vector<2x8xf32>
    %1333 = arith.mulf %1332, %1329 : vector<2x8xf32>
    %cst_134 = arith.constant 1.000000e+00 : f32
    %1334 = vector.broadcast %cst_134 : f32 to vector<2x1xf32>
    %1335 = arith.subf %1334, %1291 : vector<2x1xf32>
    %1336 = vector.broadcast %1335 : vector<2x1xf32> to vector<2x8xf32>
    %1337 = arith.mulf %1336, %1236 : vector<2x8xf32>
    %1338 = arith.addf %1333, %1337 : vector<2x8xf32>
    %1339 = tpu.concatenate %1288, %1338 in 0 : vector<2x8xf32>, vector<2x8xf32> -> vector<4x8xf32>
    %cst_135 = arith.constant dense<0.000000e+00> : vector<4x48xf32>
    %1340 = tpu.matmul %1339, %823, %cst_135 {dimension_numbers = #tpu.dot_dimension_numbers<[1], [0], [0], [1], [0, 0, 1, 1], [], []>} : vector<4x8xf32>, vector<8x48xf32>, vector<4x48xf32> -> vector<4x48xf32>
    %1341 = vector.extract_strided_slice %822 {offsets = [10, 0], sizes = [2, 24], strides = [1, 1]} : vector<16x48xf32> to vector<2x24xf32>
    %1342 = vector.extract_strided_slice %1340 {offsets = [0, 0], sizes = [2, 24], strides = [1, 1]} : vector<4x48xf32> to vector<2x24xf32>
    %1343 = vector.extract_strided_slice %0 {offsets = [0, 5], sizes = [2, 1], strides = [1, 1]} : vector<2x8xf32> to vector<2x1xf32>
    %1344 = vector.extract_strided_slice %1341 {offsets = [0, 0], sizes = [2, 8], strides = [1, 1]} : vector<2x24xf32> to vector<2x8xf32>
    %1345 = vector.extract_strided_slice %1342 {offsets = [0, 0], sizes = [2, 8], strides = [1, 1]} : vector<2x24xf32> to vector<2x8xf32>
    %1346 = arith.addf %1344, %1345 : vector<2x8xf32>
    %1347 = vector.extract_strided_slice %825 {offsets = [0, 0], sizes = [1, 8], strides = [1, 1]} : vector<1x32xf32> to vector<1x8xf32>
    %1348 = vector.broadcast %1347 : vector<1x8xf32> to vector<2x8xf32>
    %1349 = arith.addf %1346, %1348 : vector<2x8xf32>
    %1350 = arith.negf %1349 : vector<2x8xf32>
    %1351 = math.exp %1350 : vector<2x8xf32>
    %cst_136 = arith.constant 1.000000e+00 : f32
    %1352 = vector.broadcast %cst_136 : f32 to vector<2x8xf32>
    %1353 = arith.addf %1352, %1351 : vector<2x8xf32>
    %1354 = arith.divf %1352, %1353 : vector<2x8xf32>
    %1355 = vector.extract_strided_slice %1341 {offsets = [0, 8], sizes = [2, 8], strides = [1, 1]} : vector<2x24xf32> to vector<2x8xf32>
    %1356 = vector.extract_strided_slice %1342 {offsets = [0, 8], sizes = [2, 8], strides = [1, 1]} : vector<2x24xf32> to vector<2x8xf32>
    %1357 = arith.addf %1355, %1356 : vector<2x8xf32>
    %1358 = vector.extract_strided_slice %825 {offsets = [0, 8], sizes = [1, 8], strides = [1, 1]} : vector<1x32xf32> to vector<1x8xf32>
    %1359 = vector.broadcast %1358 : vector<1x8xf32> to vector<2x8xf32>
    %1360 = arith.addf %1357, %1359 : vector<2x8xf32>
    %1361 = arith.negf %1360 : vector<2x8xf32>
    %1362 = math.exp %1361 : vector<2x8xf32>
    %cst_137 = arith.constant 1.000000e+00 : f32
    %1363 = vector.broadcast %cst_137 : f32 to vector<2x8xf32>
    %1364 = arith.addf %1363, %1362 : vector<2x8xf32>
    %1365 = arith.divf %1363, %1364 : vector<2x8xf32>
    %1366 = vector.extract_strided_slice %1341 {offsets = [0, 16], sizes = [2, 8], strides = [1, 1]} : vector<2x24xf32> to vector<2x8xf32>
    %1367 = vector.extract_strided_slice %825 {offsets = [0, 16], sizes = [1, 8], strides = [1, 1]} : vector<1x32xf32> to vector<1x8xf32>
    %1368 = vector.broadcast %1367 : vector<1x8xf32> to vector<2x8xf32>
    %1369 = arith.addf %1366, %1368 : vector<2x8xf32>
    %1370 = vector.extract_strided_slice %1342 {offsets = [0, 16], sizes = [2, 8], strides = [1, 1]} : vector<2x24xf32> to vector<2x8xf32>
    %1371 = vector.extract_strided_slice %825 {offsets = [0, 24], sizes = [1, 8], strides = [1, 1]} : vector<1x32xf32> to vector<1x8xf32>
    %1372 = vector.broadcast %1371 : vector<1x8xf32> to vector<2x8xf32>
    %1373 = arith.addf %1370, %1372 : vector<2x8xf32>
    %1374 = arith.mulf %1354, %1373 : vector<2x8xf32>
    %1375 = arith.addf %1369, %1374 : vector<2x8xf32>
    %1376 = math.tanh %1375 : vector<2x8xf32>
    %cst_138 = arith.constant 1.000000e+00 : f32
    %1377 = vector.broadcast %cst_138 : f32 to vector<2x8xf32>
    %1378 = arith.subf %1377, %1365 : vector<2x8xf32>
    %1379 = arith.mulf %1378, %1376 : vector<2x8xf32>
    %1380 = arith.mulf %1365, %1288 : vector<2x8xf32>
    %1381 = arith.addf %1379, %1380 : vector<2x8xf32>
    %1382 = vector.broadcast %1343 : vector<2x1xf32> to vector<2x8xf32>
    %1383 = arith.mulf %1382, %1381 : vector<2x8xf32>
    %1384 = vector.broadcast %1343 : vector<2x1xf32> to vector<2x8xf32>
    %1385 = arith.mulf %1384, %1381 : vector<2x8xf32>
    %cst_139 = arith.constant 1.000000e+00 : f32
    %1386 = vector.broadcast %cst_139 : f32 to vector<2x1xf32>
    %1387 = arith.subf %1386, %1343 : vector<2x1xf32>
    %1388 = vector.broadcast %1387 : vector<2x1xf32> to vector<2x8xf32>
    %1389 = arith.mulf %1388, %1288 : vector<2x8xf32>
    %1390 = arith.addf %1385, %1389 : vector<2x8xf32>
    %1391 = vector.extract_strided_slice %822 {offsets = [4, 24], sizes = [2, 24], strides = [1, 1]} : vector<16x48xf32> to vector<2x24xf32>
    %1392 = vector.extract_strided_slice %1340 {offsets = [2, 24], sizes = [2, 24], strides = [1, 1]} : vector<4x48xf32> to vector<2x24xf32>
    %1393 = vector.extract_strided_slice %0 {offsets = [0, 2], sizes = [2, 1], strides = [1, 1]} : vector<2x8xf32> to vector<2x1xf32>
    %1394 = vector.extract_strided_slice %1391 {offsets = [0, 0], sizes = [2, 8], strides = [1, 1]} : vector<2x24xf32> to vector<2x8xf32>
    %1395 = vector.extract_strided_slice %1392 {offsets = [0, 0], sizes = [2, 8], strides = [1, 1]} : vector<2x24xf32> to vector<2x8xf32>
    %1396 = arith.addf %1394, %1395 : vector<2x8xf32>
    %1397 = vector.extract_strided_slice %826 {offsets = [0, 0], sizes = [1, 8], strides = [1, 1]} : vector<1x32xf32> to vector<1x8xf32>
    %1398 = vector.broadcast %1397 : vector<1x8xf32> to vector<2x8xf32>
    %1399 = arith.addf %1396, %1398 : vector<2x8xf32>
    %1400 = arith.negf %1399 : vector<2x8xf32>
    %1401 = math.exp %1400 : vector<2x8xf32>
    %cst_140 = arith.constant 1.000000e+00 : f32
    %1402 = vector.broadcast %cst_140 : f32 to vector<2x8xf32>
    %1403 = arith.addf %1402, %1401 : vector<2x8xf32>
    %1404 = arith.divf %1402, %1403 : vector<2x8xf32>
    %1405 = vector.extract_strided_slice %1391 {offsets = [0, 8], sizes = [2, 8], strides = [1, 1]} : vector<2x24xf32> to vector<2x8xf32>
    %1406 = vector.extract_strided_slice %1392 {offsets = [0, 8], sizes = [2, 8], strides = [1, 1]} : vector<2x24xf32> to vector<2x8xf32>
    %1407 = arith.addf %1405, %1406 : vector<2x8xf32>
    %1408 = vector.extract_strided_slice %826 {offsets = [0, 8], sizes = [1, 8], strides = [1, 1]} : vector<1x32xf32> to vector<1x8xf32>
    %1409 = vector.broadcast %1408 : vector<1x8xf32> to vector<2x8xf32>
    %1410 = arith.addf %1407, %1409 : vector<2x8xf32>
    %1411 = arith.negf %1410 : vector<2x8xf32>
    %1412 = math.exp %1411 : vector<2x8xf32>
    %cst_141 = arith.constant 1.000000e+00 : f32
    %1413 = vector.broadcast %cst_141 : f32 to vector<2x8xf32>
    %1414 = arith.addf %1413, %1412 : vector<2x8xf32>
    %1415 = arith.divf %1413, %1414 : vector<2x8xf32>
    %1416 = vector.extract_strided_slice %1391 {offsets = [0, 16], sizes = [2, 8], strides = [1, 1]} : vector<2x24xf32> to vector<2x8xf32>
    %1417 = vector.extract_strided_slice %826 {offsets = [0, 16], sizes = [1, 8], strides = [1, 1]} : vector<1x32xf32> to vector<1x8xf32>
    %1418 = vector.broadcast %1417 : vector<1x8xf32> to vector<2x8xf32>
    %1419 = arith.addf %1416, %1418 : vector<2x8xf32>
    %1420 = vector.extract_strided_slice %1392 {offsets = [0, 16], sizes = [2, 8], strides = [1, 1]} : vector<2x24xf32> to vector<2x8xf32>
    %1421 = vector.extract_strided_slice %826 {offsets = [0, 24], sizes = [1, 8], strides = [1, 1]} : vector<1x32xf32> to vector<1x8xf32>
    %1422 = vector.broadcast %1421 : vector<1x8xf32> to vector<2x8xf32>
    %1423 = arith.addf %1420, %1422 : vector<2x8xf32>
    %1424 = arith.mulf %1404, %1423 : vector<2x8xf32>
    %1425 = arith.addf %1419, %1424 : vector<2x8xf32>
    %1426 = math.tanh %1425 : vector<2x8xf32>
    %cst_142 = arith.constant 1.000000e+00 : f32
    %1427 = vector.broadcast %cst_142 : f32 to vector<2x8xf32>
    %1428 = arith.subf %1427, %1415 : vector<2x8xf32>
    %1429 = arith.mulf %1428, %1426 : vector<2x8xf32>
    %1430 = arith.mulf %1415, %1338 : vector<2x8xf32>
    %1431 = arith.addf %1429, %1430 : vector<2x8xf32>
    %1432 = vector.broadcast %1393 : vector<2x1xf32> to vector<2x8xf32>
    %1433 = arith.mulf %1432, %1431 : vector<2x8xf32>
    %1434 = vector.broadcast %1393 : vector<2x1xf32> to vector<2x8xf32>
    %1435 = arith.mulf %1434, %1431 : vector<2x8xf32>
    %cst_143 = arith.constant 1.000000e+00 : f32
    %1436 = vector.broadcast %cst_143 : f32 to vector<2x1xf32>
    %1437 = arith.subf %1436, %1393 : vector<2x1xf32>
    %1438 = vector.broadcast %1437 : vector<2x1xf32> to vector<2x8xf32>
    %1439 = arith.mulf %1438, %1338 : vector<2x8xf32>
    %1440 = arith.addf %1435, %1439 : vector<2x8xf32>
    %1441 = tpu.concatenate %1390, %1440 in 0 : vector<2x8xf32>, vector<2x8xf32> -> vector<4x8xf32>
    %cst_144 = arith.constant dense<0.000000e+00> : vector<4x48xf32>
    %1442 = tpu.matmul %1441, %823, %cst_144 {dimension_numbers = #tpu.dot_dimension_numbers<[1], [0], [0], [1], [0, 0, 1, 1], [], []>} : vector<4x8xf32>, vector<8x48xf32>, vector<4x48xf32> -> vector<4x48xf32>
    %1443 = vector.extract_strided_slice %822 {offsets = [12, 0], sizes = [2, 24], strides = [1, 1]} : vector<16x48xf32> to vector<2x24xf32>
    %1444 = vector.extract_strided_slice %1442 {offsets = [0, 0], sizes = [2, 24], strides = [1, 1]} : vector<4x48xf32> to vector<2x24xf32>
    %1445 = vector.extract_strided_slice %0 {offsets = [0, 6], sizes = [2, 1], strides = [1, 1]} : vector<2x8xf32> to vector<2x1xf32>
    %1446 = vector.extract_strided_slice %1443 {offsets = [0, 0], sizes = [2, 8], strides = [1, 1]} : vector<2x24xf32> to vector<2x8xf32>
    %1447 = vector.extract_strided_slice %1444 {offsets = [0, 0], sizes = [2, 8], strides = [1, 1]} : vector<2x24xf32> to vector<2x8xf32>
    %1448 = arith.addf %1446, %1447 : vector<2x8xf32>
    %1449 = vector.extract_strided_slice %825 {offsets = [0, 0], sizes = [1, 8], strides = [1, 1]} : vector<1x32xf32> to vector<1x8xf32>
    %1450 = vector.broadcast %1449 : vector<1x8xf32> to vector<2x8xf32>
    %1451 = arith.addf %1448, %1450 : vector<2x8xf32>
    %1452 = arith.negf %1451 : vector<2x8xf32>
    %1453 = math.exp %1452 : vector<2x8xf32>
    %cst_145 = arith.constant 1.000000e+00 : f32
    %1454 = vector.broadcast %cst_145 : f32 to vector<2x8xf32>
    %1455 = arith.addf %1454, %1453 : vector<2x8xf32>
    %1456 = arith.divf %1454, %1455 : vector<2x8xf32>
    %1457 = vector.extract_strided_slice %1443 {offsets = [0, 8], sizes = [2, 8], strides = [1, 1]} : vector<2x24xf32> to vector<2x8xf32>
    %1458 = vector.extract_strided_slice %1444 {offsets = [0, 8], sizes = [2, 8], strides = [1, 1]} : vector<2x24xf32> to vector<2x8xf32>
    %1459 = arith.addf %1457, %1458 : vector<2x8xf32>
    %1460 = vector.extract_strided_slice %825 {offsets = [0, 8], sizes = [1, 8], strides = [1, 1]} : vector<1x32xf32> to vector<1x8xf32>
    %1461 = vector.broadcast %1460 : vector<1x8xf32> to vector<2x8xf32>
    %1462 = arith.addf %1459, %1461 : vector<2x8xf32>
    %1463 = arith.negf %1462 : vector<2x8xf32>
    %1464 = math.exp %1463 : vector<2x8xf32>
    %cst_146 = arith.constant 1.000000e+00 : f32
    %1465 = vector.broadcast %cst_146 : f32 to vector<2x8xf32>
    %1466 = arith.addf %1465, %1464 : vector<2x8xf32>
    %1467 = arith.divf %1465, %1466 : vector<2x8xf32>
    %1468 = vector.extract_strided_slice %1443 {offsets = [0, 16], sizes = [2, 8], strides = [1, 1]} : vector<2x24xf32> to vector<2x8xf32>
    %1469 = vector.extract_strided_slice %825 {offsets = [0, 16], sizes = [1, 8], strides = [1, 1]} : vector<1x32xf32> to vector<1x8xf32>
    %1470 = vector.broadcast %1469 : vector<1x8xf32> to vector<2x8xf32>
    %1471 = arith.addf %1468, %1470 : vector<2x8xf32>
    %1472 = vector.extract_strided_slice %1444 {offsets = [0, 16], sizes = [2, 8], strides = [1, 1]} : vector<2x24xf32> to vector<2x8xf32>
    %1473 = vector.extract_strided_slice %825 {offsets = [0, 24], sizes = [1, 8], strides = [1, 1]} : vector<1x32xf32> to vector<1x8xf32>
    %1474 = vector.broadcast %1473 : vector<1x8xf32> to vector<2x8xf32>
    %1475 = arith.addf %1472, %1474 : vector<2x8xf32>
    %1476 = arith.mulf %1456, %1475 : vector<2x8xf32>
    %1477 = arith.addf %1471, %1476 : vector<2x8xf32>
    %1478 = math.tanh %1477 : vector<2x8xf32>
    %cst_147 = arith.constant 1.000000e+00 : f32
    %1479 = vector.broadcast %cst_147 : f32 to vector<2x8xf32>
    %1480 = arith.subf %1479, %1467 : vector<2x8xf32>
    %1481 = arith.mulf %1480, %1478 : vector<2x8xf32>
    %1482 = arith.mulf %1467, %1390 : vector<2x8xf32>
    %1483 = arith.addf %1481, %1482 : vector<2x8xf32>
    %1484 = vector.broadcast %1445 : vector<2x1xf32> to vector<2x8xf32>
    %1485 = arith.mulf %1484, %1483 : vector<2x8xf32>
    %1486 = vector.broadcast %1445 : vector<2x1xf32> to vector<2x8xf32>
    %1487 = arith.mulf %1486, %1483 : vector<2x8xf32>
    %cst_148 = arith.constant 1.000000e+00 : f32
    %1488 = vector.broadcast %cst_148 : f32 to vector<2x1xf32>
    %1489 = arith.subf %1488, %1445 : vector<2x1xf32>
    %1490 = vector.broadcast %1489 : vector<2x1xf32> to vector<2x8xf32>
    %1491 = arith.mulf %1490, %1390 : vector<2x8xf32>
    %1492 = arith.addf %1487, %1491 : vector<2x8xf32>
    %1493 = vector.extract_strided_slice %822 {offsets = [2, 24], sizes = [2, 24], strides = [1, 1]} : vector<16x48xf32> to vector<2x24xf32>
    %1494 = vector.extract_strided_slice %1442 {offsets = [2, 24], sizes = [2, 24], strides = [1, 1]} : vector<4x48xf32> to vector<2x24xf32>
    %1495 = vector.extract_strided_slice %0 {offsets = [0, 1], sizes = [2, 1], strides = [1, 1]} : vector<2x8xf32> to vector<2x1xf32>
    %1496 = vector.extract_strided_slice %1493 {offsets = [0, 0], sizes = [2, 8], strides = [1, 1]} : vector<2x24xf32> to vector<2x8xf32>
    %1497 = vector.extract_strided_slice %1494 {offsets = [0, 0], sizes = [2, 8], strides = [1, 1]} : vector<2x24xf32> to vector<2x8xf32>
    %1498 = arith.addf %1496, %1497 : vector<2x8xf32>
    %1499 = vector.extract_strided_slice %826 {offsets = [0, 0], sizes = [1, 8], strides = [1, 1]} : vector<1x32xf32> to vector<1x8xf32>
    %1500 = vector.broadcast %1499 : vector<1x8xf32> to vector<2x8xf32>
    %1501 = arith.addf %1498, %1500 : vector<2x8xf32>
    %1502 = arith.negf %1501 : vector<2x8xf32>
    %1503 = math.exp %1502 : vector<2x8xf32>
    %cst_149 = arith.constant 1.000000e+00 : f32
    %1504 = vector.broadcast %cst_149 : f32 to vector<2x8xf32>
    %1505 = arith.addf %1504, %1503 : vector<2x8xf32>
    %1506 = arith.divf %1504, %1505 : vector<2x8xf32>
    %1507 = vector.extract_strided_slice %1493 {offsets = [0, 8], sizes = [2, 8], strides = [1, 1]} : vector<2x24xf32> to vector<2x8xf32>
    %1508 = vector.extract_strided_slice %1494 {offsets = [0, 8], sizes = [2, 8], strides = [1, 1]} : vector<2x24xf32> to vector<2x8xf32>
    %1509 = arith.addf %1507, %1508 : vector<2x8xf32>
    %1510 = vector.extract_strided_slice %826 {offsets = [0, 8], sizes = [1, 8], strides = [1, 1]} : vector<1x32xf32> to vector<1x8xf32>
    %1511 = vector.broadcast %1510 : vector<1x8xf32> to vector<2x8xf32>
    %1512 = arith.addf %1509, %1511 : vector<2x8xf32>
    %1513 = arith.negf %1512 : vector<2x8xf32>
    %1514 = math.exp %1513 : vector<2x8xf32>
    %cst_150 = arith.constant 1.000000e+00 : f32
    %1515 = vector.broadcast %cst_150 : f32 to vector<2x8xf32>
    %1516 = arith.addf %1515, %1514 : vector<2x8xf32>
    %1517 = arith.divf %1515, %1516 : vector<2x8xf32>
    %1518 = vector.extract_strided_slice %1493 {offsets = [0, 16], sizes = [2, 8], strides = [1, 1]} : vector<2x24xf32> to vector<2x8xf32>
    %1519 = vector.extract_strided_slice %826 {offsets = [0, 16], sizes = [1, 8], strides = [1, 1]} : vector<1x32xf32> to vector<1x8xf32>
    %1520 = vector.broadcast %1519 : vector<1x8xf32> to vector<2x8xf32>
    %1521 = arith.addf %1518, %1520 : vector<2x8xf32>
    %1522 = vector.extract_strided_slice %1494 {offsets = [0, 16], sizes = [2, 8], strides = [1, 1]} : vector<2x24xf32> to vector<2x8xf32>
    %1523 = vector.extract_strided_slice %826 {offsets = [0, 24], sizes = [1, 8], strides = [1, 1]} : vector<1x32xf32> to vector<1x8xf32>
    %1524 = vector.broadcast %1523 : vector<1x8xf32> to vector<2x8xf32>
    %1525 = arith.addf %1522, %1524 : vector<2x8xf32>
    %1526 = arith.mulf %1506, %1525 : vector<2x8xf32>
    %1527 = arith.addf %1521, %1526 : vector<2x8xf32>
    %1528 = math.tanh %1527 : vector<2x8xf32>
    %cst_151 = arith.constant 1.000000e+00 : f32
    %1529 = vector.broadcast %cst_151 : f32 to vector<2x8xf32>
    %1530 = arith.subf %1529, %1517 : vector<2x8xf32>
    %1531 = arith.mulf %1530, %1528 : vector<2x8xf32>
    %1532 = arith.mulf %1517, %1440 : vector<2x8xf32>
    %1533 = arith.addf %1531, %1532 : vector<2x8xf32>
    %1534 = vector.broadcast %1495 : vector<2x1xf32> to vector<2x8xf32>
    %1535 = arith.mulf %1534, %1533 : vector<2x8xf32>
    %1536 = vector.broadcast %1495 : vector<2x1xf32> to vector<2x8xf32>
    %1537 = arith.mulf %1536, %1533 : vector<2x8xf32>
    %cst_152 = arith.constant 1.000000e+00 : f32
    %1538 = vector.broadcast %cst_152 : f32 to vector<2x1xf32>
    %1539 = arith.subf %1538, %1495 : vector<2x1xf32>
    %1540 = vector.broadcast %1539 : vector<2x1xf32> to vector<2x8xf32>
    %1541 = arith.mulf %1540, %1440 : vector<2x8xf32>
    %1542 = arith.addf %1537, %1541 : vector<2x8xf32>
    %1543 = tpu.concatenate %1492, %1542 in 0 : vector<2x8xf32>, vector<2x8xf32> -> vector<4x8xf32>
    %cst_153 = arith.constant dense<0.000000e+00> : vector<4x48xf32>
    %1544 = tpu.matmul %1543, %823, %cst_153 {dimension_numbers = #tpu.dot_dimension_numbers<[1], [0], [0], [1], [0, 0, 1, 1], [], []>} : vector<4x8xf32>, vector<8x48xf32>, vector<4x48xf32> -> vector<4x48xf32>
    %1545 = vector.extract_strided_slice %822 {offsets = [14, 0], sizes = [2, 24], strides = [1, 1]} : vector<16x48xf32> to vector<2x24xf32>
    %1546 = vector.extract_strided_slice %1544 {offsets = [0, 0], sizes = [2, 24], strides = [1, 1]} : vector<4x48xf32> to vector<2x24xf32>
    %1547 = vector.extract_strided_slice %0 {offsets = [0, 7], sizes = [2, 1], strides = [1, 1]} : vector<2x8xf32> to vector<2x1xf32>
    %1548 = vector.extract_strided_slice %1545 {offsets = [0, 0], sizes = [2, 8], strides = [1, 1]} : vector<2x24xf32> to vector<2x8xf32>
    %1549 = vector.extract_strided_slice %1546 {offsets = [0, 0], sizes = [2, 8], strides = [1, 1]} : vector<2x24xf32> to vector<2x8xf32>
    %1550 = arith.addf %1548, %1549 : vector<2x8xf32>
    %1551 = vector.extract_strided_slice %825 {offsets = [0, 0], sizes = [1, 8], strides = [1, 1]} : vector<1x32xf32> to vector<1x8xf32>
    %1552 = vector.broadcast %1551 : vector<1x8xf32> to vector<2x8xf32>
    %1553 = arith.addf %1550, %1552 : vector<2x8xf32>
    %1554 = arith.negf %1553 : vector<2x8xf32>
    %1555 = math.exp %1554 : vector<2x8xf32>
    %cst_154 = arith.constant 1.000000e+00 : f32
    %1556 = vector.broadcast %cst_154 : f32 to vector<2x8xf32>
    %1557 = arith.addf %1556, %1555 : vector<2x8xf32>
    %1558 = arith.divf %1556, %1557 : vector<2x8xf32>
    %1559 = vector.extract_strided_slice %1545 {offsets = [0, 8], sizes = [2, 8], strides = [1, 1]} : vector<2x24xf32> to vector<2x8xf32>
    %1560 = vector.extract_strided_slice %1546 {offsets = [0, 8], sizes = [2, 8], strides = [1, 1]} : vector<2x24xf32> to vector<2x8xf32>
    %1561 = arith.addf %1559, %1560 : vector<2x8xf32>
    %1562 = vector.extract_strided_slice %825 {offsets = [0, 8], sizes = [1, 8], strides = [1, 1]} : vector<1x32xf32> to vector<1x8xf32>
    %1563 = vector.broadcast %1562 : vector<1x8xf32> to vector<2x8xf32>
    %1564 = arith.addf %1561, %1563 : vector<2x8xf32>
    %1565 = arith.negf %1564 : vector<2x8xf32>
    %1566 = math.exp %1565 : vector<2x8xf32>
    %cst_155 = arith.constant 1.000000e+00 : f32
    %1567 = vector.broadcast %cst_155 : f32 to vector<2x8xf32>
    %1568 = arith.addf %1567, %1566 : vector<2x8xf32>
    %1569 = arith.divf %1567, %1568 : vector<2x8xf32>
    %1570 = vector.extract_strided_slice %1545 {offsets = [0, 16], sizes = [2, 8], strides = [1, 1]} : vector<2x24xf32> to vector<2x8xf32>
    %1571 = vector.extract_strided_slice %825 {offsets = [0, 16], sizes = [1, 8], strides = [1, 1]} : vector<1x32xf32> to vector<1x8xf32>
    %1572 = vector.broadcast %1571 : vector<1x8xf32> to vector<2x8xf32>
    %1573 = arith.addf %1570, %1572 : vector<2x8xf32>
    %1574 = vector.extract_strided_slice %1546 {offsets = [0, 16], sizes = [2, 8], strides = [1, 1]} : vector<2x24xf32> to vector<2x8xf32>
    %1575 = vector.extract_strided_slice %825 {offsets = [0, 24], sizes = [1, 8], strides = [1, 1]} : vector<1x32xf32> to vector<1x8xf32>
    %1576 = vector.broadcast %1575 : vector<1x8xf32> to vector<2x8xf32>
    %1577 = arith.addf %1574, %1576 : vector<2x8xf32>
    %1578 = arith.mulf %1558, %1577 : vector<2x8xf32>
    %1579 = arith.addf %1573, %1578 : vector<2x8xf32>
    %1580 = math.tanh %1579 : vector<2x8xf32>
    %cst_156 = arith.constant 1.000000e+00 : f32
    %1581 = vector.broadcast %cst_156 : f32 to vector<2x8xf32>
    %1582 = arith.subf %1581, %1569 : vector<2x8xf32>
    %1583 = arith.mulf %1582, %1580 : vector<2x8xf32>
    %1584 = arith.mulf %1569, %1492 : vector<2x8xf32>
    %1585 = arith.addf %1583, %1584 : vector<2x8xf32>
    %1586 = vector.broadcast %1547 : vector<2x1xf32> to vector<2x8xf32>
    %1587 = arith.mulf %1586, %1585 : vector<2x8xf32>
    %1588 = vector.extract_strided_slice %822 {offsets = [0, 24], sizes = [2, 24], strides = [1, 1]} : vector<16x48xf32> to vector<2x24xf32>
    %1589 = vector.extract_strided_slice %1544 {offsets = [2, 24], sizes = [2, 24], strides = [1, 1]} : vector<4x48xf32> to vector<2x24xf32>
    %1590 = vector.extract_strided_slice %0 {offsets = [0, 0], sizes = [2, 1], strides = [1, 1]} : vector<2x8xf32> to vector<2x1xf32>
    %1591 = vector.extract_strided_slice %1588 {offsets = [0, 0], sizes = [2, 8], strides = [1, 1]} : vector<2x24xf32> to vector<2x8xf32>
    %1592 = vector.extract_strided_slice %1589 {offsets = [0, 0], sizes = [2, 8], strides = [1, 1]} : vector<2x24xf32> to vector<2x8xf32>
    %1593 = arith.addf %1591, %1592 : vector<2x8xf32>
    %1594 = vector.extract_strided_slice %826 {offsets = [0, 0], sizes = [1, 8], strides = [1, 1]} : vector<1x32xf32> to vector<1x8xf32>
    %1595 = vector.broadcast %1594 : vector<1x8xf32> to vector<2x8xf32>
    %1596 = arith.addf %1593, %1595 : vector<2x8xf32>
    %1597 = arith.negf %1596 : vector<2x8xf32>
    %1598 = math.exp %1597 : vector<2x8xf32>
    %cst_157 = arith.constant 1.000000e+00 : f32
    %1599 = vector.broadcast %cst_157 : f32 to vector<2x8xf32>
    %1600 = arith.addf %1599, %1598 : vector<2x8xf32>
    %1601 = arith.divf %1599, %1600 : vector<2x8xf32>
    %1602 = vector.extract_strided_slice %1588 {offsets = [0, 8], sizes = [2, 8], strides = [1, 1]} : vector<2x24xf32> to vector<2x8xf32>
    %1603 = vector.extract_strided_slice %1589 {offsets = [0, 8], sizes = [2, 8], strides = [1, 1]} : vector<2x24xf32> to vector<2x8xf32>
    %1604 = arith.addf %1602, %1603 : vector<2x8xf32>
    %1605 = vector.extract_strided_slice %826 {offsets = [0, 8], sizes = [1, 8], strides = [1, 1]} : vector<1x32xf32> to vector<1x8xf32>
    %1606 = vector.broadcast %1605 : vector<1x8xf32> to vector<2x8xf32>
    %1607 = arith.addf %1604, %1606 : vector<2x8xf32>
    %1608 = arith.negf %1607 : vector<2x8xf32>
    %1609 = math.exp %1608 : vector<2x8xf32>
    %cst_158 = arith.constant 1.000000e+00 : f32
    %1610 = vector.broadcast %cst_158 : f32 to vector<2x8xf32>
    %1611 = arith.addf %1610, %1609 : vector<2x8xf32>
    %1612 = arith.divf %1610, %1611 : vector<2x8xf32>
    %1613 = vector.extract_strided_slice %1588 {offsets = [0, 16], sizes = [2, 8], strides = [1, 1]} : vector<2x24xf32> to vector<2x8xf32>
    %1614 = vector.extract_strided_slice %826 {offsets = [0, 16], sizes = [1, 8], strides = [1, 1]} : vector<1x32xf32> to vector<1x8xf32>
    %1615 = vector.broadcast %1614 : vector<1x8xf32> to vector<2x8xf32>
    %1616 = arith.addf %1613, %1615 : vector<2x8xf32>
    %1617 = vector.extract_strided_slice %1589 {offsets = [0, 16], sizes = [2, 8], strides = [1, 1]} : vector<2x24xf32> to vector<2x8xf32>
    %1618 = vector.extract_strided_slice %826 {offsets = [0, 24], sizes = [1, 8], strides = [1, 1]} : vector<1x32xf32> to vector<1x8xf32>
    %1619 = vector.broadcast %1618 : vector<1x8xf32> to vector<2x8xf32>
    %1620 = arith.addf %1617, %1619 : vector<2x8xf32>
    %1621 = arith.mulf %1601, %1620 : vector<2x8xf32>
    %1622 = arith.addf %1616, %1621 : vector<2x8xf32>
    %1623 = math.tanh %1622 : vector<2x8xf32>
    %cst_159 = arith.constant 1.000000e+00 : f32
    %1624 = vector.broadcast %cst_159 : f32 to vector<2x8xf32>
    %1625 = arith.subf %1624, %1612 : vector<2x8xf32>
    %1626 = arith.mulf %1625, %1623 : vector<2x8xf32>
    %1627 = arith.mulf %1612, %1542 : vector<2x8xf32>
    %1628 = arith.addf %1626, %1627 : vector<2x8xf32>
    %1629 = vector.broadcast %1590 : vector<2x1xf32> to vector<2x8xf32>
    %1630 = arith.mulf %1629, %1628 : vector<2x8xf32>
    %1631 = tpu.concatenate %873, %1630 in 1 : vector<2x8xf32>, vector<2x8xf32> -> vector<2x16xf32>
    %1632 = tpu.concatenate %975, %1535 in 1 : vector<2x8xf32>, vector<2x8xf32> -> vector<2x16xf32>
    %1633 = tpu.concatenate %1077, %1433 in 1 : vector<2x8xf32>, vector<2x8xf32> -> vector<2x16xf32>
    %1634 = tpu.concatenate %1179, %1331 in 1 : vector<2x8xf32>, vector<2x8xf32> -> vector<2x16xf32>
    %1635 = tpu.concatenate %1281, %1229 in 1 : vector<2x8xf32>, vector<2x8xf32> -> vector<2x16xf32>
    %1636 = tpu.concatenate %1383, %1127 in 1 : vector<2x8xf32>, vector<2x8xf32> -> vector<2x16xf32>
    %1637 = tpu.concatenate %1485, %1025 in 1 : vector<2x8xf32>, vector<2x8xf32> -> vector<2x16xf32>
    %1638 = tpu.concatenate %1587, %923 in 1 : vector<2x8xf32>, vector<2x8xf32> -> vector<2x16xf32>
    %1639 = tpu.concatenate %1631, %1632, %1633, %1634, %1635, %1636, %1637, %1638 in 0 : vector<2x16xf32>, vector<2x16xf32>, vector<2x16xf32>, vector<2x16xf32>, vector<2x16xf32>, vector<2x16xf32>, vector<2x16xf32>, vector<2x16xf32> -> vector<16x16xf32>
    %c0_160 = arith.constant 0 : index
    %c0_161 = arith.constant 0 : index
    %1640 = vector.load %arg8[%c0_160, %c0_161] : memref<16x1xf32, #tpu.memory_space<vmem>>, vector<16x1xf32>
    %cst_162 = arith.constant dense<0.000000e+00> : vector<16x1xf32>
    %1641 = tpu.matmul %1639, %1640, %cst_162 {dimension_numbers = #tpu.dot_dimension_numbers<[1], [0], [0], [1], [0, 0, 1, 1], [], []>} : vector<16x16xf32>, vector<16x1xf32>, vector<16x1xf32> -> vector<16x1xf32>
    %c0_163 = arith.constant 0 : index
    %c0_164 = arith.constant 0 : index
    %1642 = vector.load %arg9[%c0_163, %c0_164] : memref<1x1xf32, #tpu.memory_space<vmem>>, vector<1x1xf32>
    %1643 = vector.broadcast %1642 : vector<1x1xf32> to vector<16x1xf32>
    %1644 = arith.addf %1641, %1643 : vector<16x1xf32>
    %1645 = vector.extract_strided_slice %0 {offsets = [0, 0], sizes = [2, 1], strides = [1, 1]} : vector<2x8xf32> to vector<2x1xf32>
    %cst_165 = arith.constant 5.000000e-01 : f32
    %1646 = vector.broadcast %cst_165 : f32 to vector<2x1xf32>
    %1647 = arith.cmpf ogt, %1645, %1646 : vector<2x1xf32>
    %1648 = vector.extract_strided_slice %1644 {offsets = [0, 0], sizes = [2, 1], strides = [1, 1]} : vector<16x1xf32> to vector<2x1xf32>
    %cst_166 = arith.constant -1.000000e+02 : f32
    %1649 = vector.broadcast %cst_166 : f32 to vector<2x1xf32>
    %1650 = arith.select %1647, %1648, %1649 : vector<2x1xi1>, vector<2x1xf32>
    %1651 = vector.extract_strided_slice %0 {offsets = [0, 1], sizes = [2, 1], strides = [1, 1]} : vector<2x8xf32> to vector<2x1xf32>
    %cst_167 = arith.constant 5.000000e-01 : f32
    %1652 = vector.broadcast %cst_167 : f32 to vector<2x1xf32>
    %1653 = arith.cmpf ogt, %1651, %1652 : vector<2x1xf32>
    %1654 = vector.extract_strided_slice %1644 {offsets = [2, 0], sizes = [2, 1], strides = [1, 1]} : vector<16x1xf32> to vector<2x1xf32>
    %cst_168 = arith.constant -1.000000e+02 : f32
    %1655 = vector.broadcast %cst_168 : f32 to vector<2x1xf32>
    %1656 = arith.select %1653, %1654, %1655 : vector<2x1xi1>, vector<2x1xf32>
    %1657 = vector.extract_strided_slice %0 {offsets = [0, 2], sizes = [2, 1], strides = [1, 1]} : vector<2x8xf32> to vector<2x1xf32>
    %cst_169 = arith.constant 5.000000e-01 : f32
    %1658 = vector.broadcast %cst_169 : f32 to vector<2x1xf32>
    %1659 = arith.cmpf ogt, %1657, %1658 : vector<2x1xf32>
    %1660 = vector.extract_strided_slice %1644 {offsets = [4, 0], sizes = [2, 1], strides = [1, 1]} : vector<16x1xf32> to vector<2x1xf32>
    %cst_170 = arith.constant -1.000000e+02 : f32
    %1661 = vector.broadcast %cst_170 : f32 to vector<2x1xf32>
    %1662 = arith.select %1659, %1660, %1661 : vector<2x1xi1>, vector<2x1xf32>
    %1663 = vector.extract_strided_slice %0 {offsets = [0, 3], sizes = [2, 1], strides = [1, 1]} : vector<2x8xf32> to vector<2x1xf32>
    %cst_171 = arith.constant 5.000000e-01 : f32
    %1664 = vector.broadcast %cst_171 : f32 to vector<2x1xf32>
    %1665 = arith.cmpf ogt, %1663, %1664 : vector<2x1xf32>
    %1666 = vector.extract_strided_slice %1644 {offsets = [6, 0], sizes = [2, 1], strides = [1, 1]} : vector<16x1xf32> to vector<2x1xf32>
    %cst_172 = arith.constant -1.000000e+02 : f32
    %1667 = vector.broadcast %cst_172 : f32 to vector<2x1xf32>
    %1668 = arith.select %1665, %1666, %1667 : vector<2x1xi1>, vector<2x1xf32>
    %1669 = vector.extract_strided_slice %0 {offsets = [0, 4], sizes = [2, 1], strides = [1, 1]} : vector<2x8xf32> to vector<2x1xf32>
    %cst_173 = arith.constant 5.000000e-01 : f32
    %1670 = vector.broadcast %cst_173 : f32 to vector<2x1xf32>
    %1671 = arith.cmpf ogt, %1669, %1670 : vector<2x1xf32>
    %1672 = vector.extract_strided_slice %1644 {offsets = [8, 0], sizes = [2, 1], strides = [1, 1]} : vector<16x1xf32> to vector<2x1xf32>
    %cst_174 = arith.constant -1.000000e+02 : f32
    %1673 = vector.broadcast %cst_174 : f32 to vector<2x1xf32>
    %1674 = arith.select %1671, %1672, %1673 : vector<2x1xi1>, vector<2x1xf32>
    %1675 = vector.extract_strided_slice %0 {offsets = [0, 5], sizes = [2, 1], strides = [1, 1]} : vector<2x8xf32> to vector<2x1xf32>
    %cst_175 = arith.constant 5.000000e-01 : f32
    %1676 = vector.broadcast %cst_175 : f32 to vector<2x1xf32>
    %1677 = arith.cmpf ogt, %1675, %1676 : vector<2x1xf32>
    %1678 = vector.extract_strided_slice %1644 {offsets = [10, 0], sizes = [2, 1], strides = [1, 1]} : vector<16x1xf32> to vector<2x1xf32>
    %cst_176 = arith.constant -1.000000e+02 : f32
    %1679 = vector.broadcast %cst_176 : f32 to vector<2x1xf32>
    %1680 = arith.select %1677, %1678, %1679 : vector<2x1xi1>, vector<2x1xf32>
    %1681 = vector.extract_strided_slice %0 {offsets = [0, 6], sizes = [2, 1], strides = [1, 1]} : vector<2x8xf32> to vector<2x1xf32>
    %cst_177 = arith.constant 5.000000e-01 : f32
    %1682 = vector.broadcast %cst_177 : f32 to vector<2x1xf32>
    %1683 = arith.cmpf ogt, %1681, %1682 : vector<2x1xf32>
    %1684 = vector.extract_strided_slice %1644 {offsets = [12, 0], sizes = [2, 1], strides = [1, 1]} : vector<16x1xf32> to vector<2x1xf32>
    %cst_178 = arith.constant -1.000000e+02 : f32
    %1685 = vector.broadcast %cst_178 : f32 to vector<2x1xf32>
    %1686 = arith.select %1683, %1684, %1685 : vector<2x1xi1>, vector<2x1xf32>
    %1687 = vector.extract_strided_slice %0 {offsets = [0, 7], sizes = [2, 1], strides = [1, 1]} : vector<2x8xf32> to vector<2x1xf32>
    %cst_179 = arith.constant 5.000000e-01 : f32
    %1688 = vector.broadcast %cst_179 : f32 to vector<2x1xf32>
    %1689 = arith.cmpf ogt, %1687, %1688 : vector<2x1xf32>
    %1690 = vector.extract_strided_slice %1644 {offsets = [14, 0], sizes = [2, 1], strides = [1, 1]} : vector<16x1xf32> to vector<2x1xf32>
    %cst_180 = arith.constant -1.000000e+02 : f32
    %1691 = vector.broadcast %cst_180 : f32 to vector<2x1xf32>
    %1692 = arith.select %1689, %1690, %1691 : vector<2x1xi1>, vector<2x1xf32>
    %1693 = tpu.concatenate %1650, %1656, %1662, %1668, %1674, %1680, %1686, %1692 in 1 : vector<2x1xf32>, vector<2x1xf32>, vector<2x1xf32>, vector<2x1xf32>, vector<2x1xf32>, vector<2x1xf32>, vector<2x1xf32>, vector<2x1xf32> -> vector<2x8xf32>
    %cst_181 = arith.constant dense<0xFF800000> : vector<2xf32>
    %1694 = vector.multi_reduction <maximumf>, %1693, %cst_181 [1] : vector<2x8xf32> to vector<2xf32>
    %1695 = vector.shape_cast %1694 : vector<2xf32> to vector<2x1xf32>
    %1696 = vector.broadcast %1695 : vector<2x1xf32> to vector<2x8xf32>
    %1697 = arith.subf %1693, %1696 : vector<2x8xf32>
    %1698 = math.exp %1697 : vector<2x8xf32>
    %cst_182 = arith.constant dense<0.000000e+00> : vector<2xf32>
    %1699 = vector.multi_reduction <add>, %1698, %cst_182 [1] : vector<2x8xf32> to vector<2xf32>
    %1700 = vector.shape_cast %1699 : vector<2xf32> to vector<2x1xf32>
    %1701 = vector.broadcast %1700 : vector<2x1xf32> to vector<2x8xf32>
    %1702 = arith.divf %1698, %1701 : vector<2x8xf32>
    %cst_183 = arith.constant 0.000000e+00 : f32
    %1703 = vector.broadcast %cst_183 : f32 to vector<2x16xf32>
    %1704 = vector.extract_strided_slice %1702 {offsets = [0, 0], sizes = [2, 1], strides = [1, 1]} : vector<2x8xf32> to vector<2x1xf32>
    %1705 = vector.broadcast %1704 : vector<2x1xf32> to vector<2x16xf32>
    %1706 = arith.mulf %1705, %1631 : vector<2x16xf32>
    %1707 = arith.addf %1703, %1706 : vector<2x16xf32>
    %1708 = vector.extract_strided_slice %1702 {offsets = [0, 1], sizes = [2, 1], strides = [1, 1]} : vector<2x8xf32> to vector<2x1xf32>
    %1709 = vector.broadcast %1708 : vector<2x1xf32> to vector<2x16xf32>
    %1710 = arith.mulf %1709, %1632 : vector<2x16xf32>
    %1711 = arith.addf %1707, %1710 : vector<2x16xf32>
    %1712 = vector.extract_strided_slice %1702 {offsets = [0, 2], sizes = [2, 1], strides = [1, 1]} : vector<2x8xf32> to vector<2x1xf32>
    %1713 = vector.broadcast %1712 : vector<2x1xf32> to vector<2x16xf32>
    %1714 = arith.mulf %1713, %1633 : vector<2x16xf32>
    %1715 = arith.addf %1711, %1714 : vector<2x16xf32>
    %1716 = vector.extract_strided_slice %1702 {offsets = [0, 3], sizes = [2, 1], strides = [1, 1]} : vector<2x8xf32> to vector<2x1xf32>
    %1717 = vector.broadcast %1716 : vector<2x1xf32> to vector<2x16xf32>
    %1718 = arith.mulf %1717, %1634 : vector<2x16xf32>
    %1719 = arith.addf %1715, %1718 : vector<2x16xf32>
    %1720 = vector.extract_strided_slice %1702 {offsets = [0, 4], sizes = [2, 1], strides = [1, 1]} : vector<2x8xf32> to vector<2x1xf32>
    %1721 = vector.broadcast %1720 : vector<2x1xf32> to vector<2x16xf32>
    %1722 = arith.mulf %1721, %1635 : vector<2x16xf32>
    %1723 = arith.addf %1719, %1722 : vector<2x16xf32>
    %1724 = vector.extract_strided_slice %1702 {offsets = [0, 5], sizes = [2, 1], strides = [1, 1]} : vector<2x8xf32> to vector<2x1xf32>
    %1725 = vector.broadcast %1724 : vector<2x1xf32> to vector<2x16xf32>
    %1726 = arith.mulf %1725, %1636 : vector<2x16xf32>
    %1727 = arith.addf %1723, %1726 : vector<2x16xf32>
    %1728 = vector.extract_strided_slice %1702 {offsets = [0, 6], sizes = [2, 1], strides = [1, 1]} : vector<2x8xf32> to vector<2x1xf32>
    %1729 = vector.broadcast %1728 : vector<2x1xf32> to vector<2x16xf32>
    %1730 = arith.mulf %1729, %1637 : vector<2x16xf32>
    %1731 = arith.addf %1727, %1730 : vector<2x16xf32>
    %1732 = vector.extract_strided_slice %1702 {offsets = [0, 7], sizes = [2, 1], strides = [1, 1]} : vector<2x8xf32> to vector<2x1xf32>
    %1733 = vector.broadcast %1732 : vector<2x1xf32> to vector<2x16xf32>
    %1734 = arith.mulf %1733, %1638 : vector<2x16xf32>
    %1735 = arith.addf %1731, %1734 : vector<2x16xf32>
    %c0_184 = arith.constant 0 : index
    %c0_185 = arith.constant 0 : index
    %1736 = vector.load %arg10[%c0_184, %c0_185] : memref<16x16xf32, #tpu.memory_space<vmem>>, vector<16x16xf32>
    %cst_186 = arith.constant dense<0.000000e+00> : vector<2x16xf32>
    %1737 = tpu.matmul %1735, %1736, %cst_186 {dimension_numbers = #tpu.dot_dimension_numbers<[1], [0], [0], [1], [0, 0, 1, 1], [], []>} : vector<2x16xf32>, vector<16x16xf32>, vector<2x16xf32> -> vector<2x16xf32>
    %c0_187 = arith.constant 0 : index
    %c0_188 = arith.constant 0 : index
    %1738 = vector.load %arg11[%c0_187, %c0_188] : memref<1x16xf32, #tpu.memory_space<vmem>>, vector<1x16xf32>
    %1739 = vector.broadcast %1738 : vector<1x16xf32> to vector<2x16xf32>
    %1740 = arith.addf %1737, %1739 : vector<2x16xf32>
    %1741 = math.tanh %1740 : vector<2x16xf32>
    %c0_189 = arith.constant 0 : index
    %c0_190 = arith.constant 0 : index
    %1742 = vector.load %arg12[%c0_189, %c0_190] : memref<16x6xf32, #tpu.memory_space<vmem>>, vector<16x6xf32>
    %cst_191 = arith.constant dense<0.000000e+00> : vector<2x6xf32>
    %1743 = tpu.matmul %1741, %1742, %cst_191 {dimension_numbers = #tpu.dot_dimension_numbers<[1], [0], [0], [1], [0, 0, 1, 1], [], []>} : vector<2x16xf32>, vector<16x6xf32>, vector<2x6xf32> -> vector<2x6xf32>
    %c0_192 = arith.constant 0 : index
    %c0_193 = arith.constant 0 : index
    %1744 = vector.load %arg13[%c0_192, %c0_193] : memref<1x6xf32, #tpu.memory_space<vmem>>, vector<1x6xf32>
    %1745 = vector.broadcast %1744 : vector<1x6xf32> to vector<2x6xf32>
    %1746 = arith.addf %1743, %1745 : vector<2x6xf32>
    %c0_194 = arith.constant 0 : index
    %c0_195 = arith.constant 0 : index
    %1747 = vector.load %arg14[%c0_194, %c0_195] : memref<2x6xf32, #tpu.memory_space<vmem>>, vector<2x6xf32>
    tpu.vector_store %arg14[%c0_194, %c0_195], %1746 {strides = array<i32>} : memref<2x6xf32, #tpu.memory_space<vmem>>, vector<2x6xf32>,
    return
  }
}

</mosaic_0001>

<bundles_post_ra>
// kernel: tpu_custom_call.1
= control target key start
LH: loop header
LB: loop body
LE: loop exit
PB: predicated region body
PF: predicated region fallthrough
CT: control target
= control target key end

     0   :  { %s5277_s0 = inlined_call_operand.vmem [shape: f32[16,32], index: 0, kind: input, shape index: {}]   ;;  %s5278_s1 = inlined_call_operand.vmem [shape: f32[2,8], index: 1, kind: input, shape index: {}]   ;;  %s5279_s2 = inlined_call_operand.vmem [shape: f32[32,48], index: 2, kind: input, shape index: {}]   ;;  %s5280_s3 = inlined_call_operand.hbm [shape: f32[8,48], index: 3, kind: input, shape index: {}]   ;;  %s5281_s4 = inlined_call_operand.hbm [shape: f32[2,32], index: 4, kind: input, shape index: {}]   ;;  %s5282_s5 = inlined_call_operand.hbm [shape: f32[16,48], index: 5, kind: input, shape index: {}]   ;;  %s5283_s6 = inlined_call_operand.hbm [shape: f32[8,48], index: 6, kind: input, shape index: {}]   ;;  %s5284_s7 = inlined_call_operand.hbm [shape: f32[2,32], index: 7, kind: input, shape index: {}]   ;;  %s5285_s8 = inlined_call_operand.vmem [shape: f32[16,1], index: 8, kind: input, shape index: {}]   ;;  %s5286_s9 = inlined_call_operand.<no memory space> [shape: f32[1,1], index: 9, kind: input, shape index: {}]   ;;  %s5287_s10 = inlined_call_operand.vmem [shape: f32[16,16], index: 10, kind: input, shape index: {}]   ;;  %s5288_s11 = inlined_call_operand.vmem [shape: f32[1,16], index: 11, kind: input, shape index: {}]   ;;  %s5289_s12 = inlined_call_operand.vmem [shape: f32[16,6], index: 12, kind: input, shape index: {}]   ;;  %s5290_s13 = inlined_call_operand.vmem [shape: f32[1,6], index: 13, kind: input, shape index: {}]   ;;  %s5291_s14 = inlined_call_operand.hbm [shape: f32[2,6], index: 14, kind: output, shape index: {}]  }
   0x1   :  { %v19_v0 = vstv %s5286_s9 }
   0x2   :  { %20 = vst [vmem:[#allocation2] sm:$0x1] %v19_v0 }
   0x3   :  { %21 = vsyncpa [#allocation4], 0 }
   0x4   :  { %22 = vsyncpa [#allocation7], 0 }
   0x5   :  { %23 = vsyncpa [#allocation10], 0 }
   0x6   :  { %24 = vsyncpa [#allocation5], 0  ;;  %s4141_s15 = smov [#allocation6]   ;;  %s4142_s17 = smov [#allocation9]  }
   0x7   :  { %s47_s16 = sshll.u32 %s4141_s15, 4  ;;  %s69_s18 = sshll.u32 %s4142_s17, 4  ;;  %s48_s16 = int_to_ptr.vmem [resolvable:$true] %s47_s16  ;;  %s70_s18 = int_to_ptr.vmem [resolvable:$true] %s69_s18 }
   0x8   :  { %s4001_s21 = scalar_lea.hbm %s5281_s4, 32 }
   0x9   :  { %p4002_p0 = scmp.ne.s32.totalorder %s5281_s4, %s4001_s21  ;;  %p4005_p1 = scmp.lt.u32.totalorder %s4001_s21, %s5281_s4 }
   0xb   :  { %p4007_p2 = pnand %p4005_p1, %p4002_p0 }
   0xd   :  { %4010 = shalt.err (!%p4007_p2)
}
   0xe   :  { %s4011_s25 = scalar_lea.vmem %s48_s16, 32  ;;  %p4016_p4 = scmp.lt.s32.totalorder %s48_s16, %s48_s16 }
   0xf   :  { %p4012_p3 = scmp.ne.s32.totalorder %s48_s16, %s4011_s25  ;;  %p4017_p5 = scmp.lt.s32.totalorder %s4011_s25, %s4011_s25 }
  0x11   :  { %p4018_p6 = por %p4017_p5, %p4016_p4 }
  0x13   :  { %p4019_p7 = pnand %p4018_p6, %p4012_p3 }
  0x15   :  { %4022 = shalt.err (!%p4019_p7)
}
  0x16   :  { %50 = dma.hbm_to_vmem [thread:$0]  %s5281_s4, 32, %s48_s16, [#allocation7]  }
  0x17   :  { %s4023_s30 = scalar_lea.hbm %s5283_s6, 128 }
  0x18   :  { %p4024_p8 = scmp.ne.s32.totalorder %s5283_s6, %s4023_s30  ;;  %p4027_p9 = scmp.lt.u32.totalorder %s4023_s30, %s5283_s6 }
  0x1a   :  { %p4029_p10 = pnand %p4027_p9, %p4024_p8 }
  0x1c   :  { %4032 = shalt.err (!%p4029_p10)
}
  0x1d   :  { %s4033_s21 = scalar_lea.vmem %s70_s18, 128  ;;  %p4038_p12 = scmp.lt.s32.totalorder %s70_s18, %s70_s18 }
  0x1e   :  { %p4034_p11 = scmp.ne.s32.totalorder %s70_s18, %s4033_s21  ;;  %p4039_p13 = scmp.lt.s32.totalorder %s4033_s21, %s4033_s21 }
  0x20   :  { %p4040_p0 = por %p4039_p13, %p4038_p12 }
  0x22   :  { %p4041_p1 = pnand %p4040_p0, %p4034_p11 }
  0x24   :  { %4044 = shalt.err (!%p4041_p1)
}
  0x25   :  { %72 = dma.hbm_to_vmem [thread:$0]  %s5283_s6, 128, %s70_s18, [#allocation10]  }
  0x26   :  { %s4143_s22 = smov [#allocation3]   ;;  %s4144_s9 = smov [#allocation8]  }
  0x27   :  { %s37_s23 = sshll.u32 %s4143_s22, 4  ;;  %s56_s24 = sshll.u32 %s4144_s9, 4  ;;  %s38_s23 = int_to_ptr.vmem [resolvable:$true] %s37_s23  ;;  %s4276_s24 = int_to_ptr.vmem [resolvable:$true] %s56_s24 }
  0x28   :  { %s4045_s27 = scalar_lea.hbm %s5280_s3, 128 }
  0x29   :  { %p4046_p2 = scmp.ne.s32.totalorder %s5280_s3, %s4045_s27  ;;  %p4049_p3 = scmp.lt.u32.totalorder %s4045_s27, %s5280_s3 }
  0x2b   :  { %p4051_p4 = pnand %p4049_p3, %p4046_p2 }
  0x2d   :  { %4054 = shalt.err (!%p4051_p4)
}
  0x2e   :  { %s4055_s6 = scalar_lea.vmem %s38_s23, 128  ;;  %p4060_p6 = scmp.lt.s32.totalorder %s38_s23, %s38_s23 }
  0x2f   :  { %p4056_p5 = scmp.ne.s32.totalorder %s38_s23, %s4055_s6  ;;  %p4061_p7 = scmp.lt.s32.totalorder %s4055_s6, %s4055_s6 }
  0x31   :  { %p4062_p8 = por %p4061_p7, %p4060_p6 }
  0x33   :  { %p4063_p9 = pnand %p4062_p8, %p4056_p5 }
  0x35   :  { %4066 = shalt.err (!%p4063_p9)
}
  0x36   :  { %40 = dma.hbm_to_vmem [thread:$0]  %s5280_s3, 128, %s38_s23, [#allocation4]  }
  0x37   :  { %s4067_s21 = scalar_lea.hbm %s5282_s5, 256 }
  0x38   :  { %p4068_p10 = scmp.ne.s32.totalorder %s5282_s5, %s4067_s21  ;;  %p4071_p11 = scmp.lt.u32.totalorder %s4067_s21, %s5282_s5 }
  0x3a   :  { %p4073_p12 = pnand %p4071_p11, %p4068_p10 }
  0x3c   :  { %4076 = shalt.err (!%p4073_p12)
}
  0x3d   :  { %s4077_s25 = scalar_lea.vmem %s4276_s24, 256  ;;  %p4082_p0 = scmp.lt.s32.totalorder %s4276_s24, %s4276_s24 }
  0x3e   :  { %p4078_p13 = scmp.ne.s32.totalorder %s4276_s24, %s4077_s25  ;;  %p4083_p1 = scmp.lt.s32.totalorder %s4077_s25, %s4077_s25 }
  0x40   :  { %p4084_p2 = por %p4083_p1, %p4082_p0 }
  0x42   :  { %p4085_p3 = pnand %p4084_p2, %p4078_p13 }
  0x44   :  { %4088 = shalt.err (!%p4085_p3)
}
  0x45   :  { %s4145_s3 = smov 128   ;;  %s4146_s23 = smov 8  }
  0x46   :  { %62 = dma.hbm_to_vmem [thread:$0]  %s5282_s5, 256, %s4276_s24, [#allocation7], %s4145_s3, %s4145_s3, %s4146_s23  }
  0x47   :  { %s4147_s28 = smov [#allocation11]   ;;  %s4089_s6 = scalar_lea.hbm %s5284_s7, 32 }
  0x48   :  { %s79_s29 = sshll.u32 %s4147_s28, 4  ;;  %p4090_p4 = scmp.ne.s32.totalorder %s5284_s7, %s4089_s6  ;;  %s80_s29 = int_to_ptr.vmem [resolvable:$true] %s79_s29 }
  0x49   :  { %p4093_p5 = scmp.lt.u32.totalorder %s4089_s6, %s5284_s7 }
  0x4b   :  { %p4095_p6 = pnand %p4093_p5, %p4090_p4 }
  0x4d   :  { %4098 = shalt.err (!%p4095_p6)
}
  0x4e   :  { %s4099_s21 = scalar_lea.vmem %s80_s29, 32  ;;  %p4104_p8 = scmp.lt.s32.totalorder %s80_s29, %s80_s29 }
  0x4f   :  { %p4100_p7 = scmp.ne.s32.totalorder %s80_s29, %s4099_s21  ;;  %p4105_p9 = scmp.lt.s32.totalorder %s4099_s21, %s4099_s21 }
  0x51   :  { %p4106_p10 = por %p4105_p9, %p4104_p8 }
  0x53   :  { %p4107_p11 = pnand %p4106_p10, %p4100_p7 }
  0x55   :  { %4110 = shalt.err (!%p4107_p11)
}
  0x56   :  { %82 = dma.hbm_to_vmem [thread:$0]  %s5284_s7, 32, %s80_s29, [#allocation10]  }
  0x57   :  { %4133 = dma.done.wait [#allocation4], 128  }
  0x58   :  { %4134 = vsyncadd [#allocation4], 4294967168 }
  0x59   :  { %4135 = dma.done.wait [#allocation7], 288  }
  0x5a   :  { %4136 = vsyncadd [#allocation7], 4294967008 }
  0x5b   :  { %4137 = dma.done.wait [#allocation10], 160  }
  0x5c   :  { %4138 = vsyncadd [#allocation10], 4294967136  ;;  %v276_v1 = vlaneseq  ;;  %v4148_v2 = vmov 0.0   ;;  %vm4149_vm0 = vmmov 0   ;;  %vm117_vm1 = vcmask 261120   ;;  %v4327_v6 = vld [vmem:[#allocation3] sm:$0xff] }
  0x5d   :  { %3614 = vmatprep.subr.mxu1 %v4148_v2  ;;  %3616 = vmatprep.mubr.msk.f32.mxu1 %vm4149_vm0, %v4148_v2  ;;  %v113_v7 = vld [vmem:[%s5279_s2] sm:$0xff]  ;;  %v114_v8 = vld [vmem:[%s5279_s2 + $0x8] sm:$0xff]  ;;  %v115_v10 = vld [vmem:[%s5279_s2 + $0x10] sm:$0xff]  ;;  %s4151_s15 = smov 24   ;;  %s4153_s6 = smov 120   ;;  %v4154_v37 = vmov 7  }
  0x5e   :  { %v4323_v3 = vshrl.u32 %v276_v1, 7  ;;  %3615 = vmatpush3.msra.mxu1 %v4327_v6  ;;  %v3722_v9 = vpack.c.bf16 %v114_v8, %v113_v7  ;;  %v116_v11 = vld [vmem:[%s5279_s2 + $0x18] sm:$0xff]  ;;  %v111_v12 = vld [vmem:[%s5277_s0] sm:$0xff]  ;;  %v200_v14 = vld [vmem:[#allocation6] sm:$0x3]  ;;  %s4150_s2 = smov 16   ;;  %3778 = vset.pattern.permute.xlu1 %v4154_v37 }
  0x5f   :  { %3617 = vmatmul.mubr.f32.vlgmr.msra.gmra.mrb[0].mxu1 %v4148_v2  ;;  %v3726_v13 = vpack.c.bf16 %v116_v11, %v115_v10  ;;  %3611 = vmatprep.mubr.msk.f32.mxu0 %vm117_vm1, %v111_v12  ;;  %v112_v17 = vld [vmem:[%s5277_s0 + $0x8] sm:$0xff]  ;;  %s4152_s0 = smov 112   ;;  %v4400_v48 = vld [vmem:[%s5278_s1] sm:$0x3]  ;;  %v4155_v52 = vmov 0   ;;  %s4156_s19 = smov 96  }
  0x60   :  { %v278_v4 = vsub.s32 0, %v4323_v3  ;;  %v332_v5 = vsub.s32 1, %v4323_v3  ;;  %3723 = vmatprep.subr.bf16.mxu0 %v3722_v9  ;;  %3619 = vmatprep.subr.mxu1 %v4148_v2  ;;  %v4404_v50 = vsub.f32 1.0, %v4400_v48  ;;  %vm391_vm2 = vcmask 1041408   ;;  %s4158_s20 = smov 32   ;;  %s4164_s21 = smov 104  }
  0x61   :  { %3725 = vmatpush3.bf16.msra.mxu0 %v3722_v9  ;;  %3620 = vmatpush3.msra.mxu1 %v4327_v6  ;;  %vm201_vm3 = vcmask 64512   ;;  %vm1642_vm4 = vcmask 1043456   ;;  %vm1644_vm5 = vcmask 1045504   ;;  %vm1651_vm6 = vcmask 130048   ;;  %s4167_s16 = smov 2   ;;  %s4168_s22 = smov 1  }
  0x62   :  { %v333_v15 = vrot.slane %v200_v14, %v332_v5  ;;  %v4351_v16 = vrot.slane %v200_v14, %v278_v4  ;;  %3727 = vmatprep.subr.bf16.mxu0 %v3726_v13  ;;  %3621 = vmatprep.mubr.msk.f32.mxu1 %vm4149_vm0, %v4148_v2  ;;  %s4169_s9 = smov 6   ;;  %s4170_s25 = smov 3   ;;  %vm3235_vm8 = vcmask 7168   ;;  %vm3237_vm9 = vcmask 15360  }
  0x63   :  { %3624 = vmatprep.subr.mxu1 %v4148_v2  ;;  %3777 = vset.pattern.permute.xlu0 %v4154_v37  ;;  %s4171_s3 = smov 7   ;;  %vm3239_vm10 = vcmask 23552   ;;  %vm3241_vm11 = vcmask 31744   ;;  %vm3243_vm12 = vcmask 39936   ;;  %vm3245_vm13 = vcmask 48128  }
  0x64   :  { %346 = vrot.lane.b32.xlu0 %v333_v15, %s4150_s2  ;;  %vm3247_vm14 = vcmask 56320   ;;  %vm3249_vm15 = vcmask 58368  }
  0x65   :  { %3729 = vmatpush3.bf16.msra.mxu0 %v3726_v13 }
  0x66   :  { %3629 = vmatprep.subr.mxu0 %v4148_v2 }
  0x68   :  { %335 = vrot.lane.b32.xlu0 %v333_v15, %s4151_s15  ;;  %3612 = vmatmul.mubr.msk.f32.vlgmr.msra.gmra.mrb[0].mxu0 %vm117_vm1, %v112_v17 }
  0x69   :  { %3630 = vmatpush3.msra.mxu0 %v4327_v6  ;;  %3631 = vmatprep.mubr.msk.f32.mxu0 %vm4149_vm0, %v4148_v2 }
  0x6a   :  { %3639 = vmatprep.subr.mxu0 %v4148_v2 }
  0xd6   :  { %v4369_v18 = vpop.permute.xlu0 %346 }
  0xda   :  { %v4381_v28 = vpop.permute.xlu0 %335 }
 0x132   :  { %v271_v19 = vpop.f32.mrb[0].mxu1 }
 0x133   :  { %v3618_v20 = vpop.f32.mrb[1].mxu1  ;;  %v349_v21 = vadd.f32 %v4369_v18, %v271_v19  ;;  %v327_v23 = vrot.slane %v271_v19, 4 }
 0x135   :  { %v351_v22 = vrot.slane %v349_v21, 4 }
 0x137   :  { %352 = vrot.lane.b32.xlu1 %v351_v22, %s4152_s0 }
 0x13b   :  { %289 = vrot.lane.b32.xlu1 %v4351_v16, %s4153_s6  ;;  %v4375_v24 = vpop.f32.mrb[0].mxu0 }
 0x13c   :  { %v329_v25 = vadd.f32 %v4375_v24, %v327_v23  ;;  %v4378_v26 = vpop.f32.mrb[1].mxu0  ;;  %v4394_v43 = vadd.f32 %v4375_v24, %v4381_v28 }
 0x13d   :  { %v275_v27 = vadd.f32 %v271_v19, %v4378_v26  ;;  %v4414_v54 = vadd.f32 %v4351_v16, %v4378_v26 }
 0x13e   :  { %v338_v29 = vadd.f32 %v4381_v28, %v329_v25 }
 0x13f   :  { %v280_v39 = vadd.f32 %v4351_v16, %v275_v27 }
 0x140   :  { %v3497_v30 = vmul.f32 -1.442695, %v338_v29 }
 0x141   :  { %v3496_v40 = vmul.f32 -1.442695, %v280_v39 }
 0x142   :  { %3802 = vpow2.f32 %v3497_v30 }
 0x14c   :  { %v3803_v31 = vpop.eup %3802 }
 0x14d   :  { %v342_v32 = vadd.f32 1.0, %v3803_v31 }
 0x14f   :  { %3804 = vrcp.f32 %v342_v32 }
 0x150   :  { %3806 = vpow2.f32 %v3496_v40 }
 0x159   :  { %v3805_v33 = vpop.eup %3804 }
 0x15a   :  { %v3807_v41 = vpop.eup %3806  ;;  %v362_v55 = vsub.f32 1.0, %v3805_v33  ;;  %v368_v58 = vmul.f32 0.0, %v3805_v33 }
 0x15b   :  { %v284_v42 = vadd.f32 1.0, %v3807_v41 }
 0x15d   :  { %3808 = vrcp.f32 %v284_v42 }
 0x167   :  { %v3809_v46 = vpop.eup %3808 }
 0x168   :  { %v304_v13 = vsub.f32 1.0, %v3809_v46  ;;  %v310_v15 = vmul.f32 0.0, %v3809_v46 }
 0x1a9   :  { %v353_v34 = vpop.permute.xlu1 %352 }
 0x1aa   :  { %v355_v35 = vmul.f32 %v3805_v33, %v353_v34 }
 0x1ac   :  { %357 = vrot.lane.b32.xlu0 %v355_v35, %s4150_s2 }
 0x1ad   :  { %v4385_v36 = vpop.permute.xlu1 %289 }
 0x1ae   :  { %v292_v38 = vadd.f32 %v4385_v36, %v271_v19 }
 0x1b0   :  { %294 = vrot.lane.b32.xlu1 %v292_v38, %s4152_s0 }
 0x21e   :  { %v358_v44 = vpop.permute.xlu0 %357 }
 0x21f   :  { %v360_v45 = vadd.f32 %v358_v44, %v4394_v43 }
 0x221   :  { %3810 = vtanh.f32 %v360_v45 }
 0x222   :  { %v295_v47 = vpop.permute.xlu1 %294 }
 0x223   :  { %v297_v49 = vmul.f32 %v3809_v46, %v295_v47 }
 0x225   :  { %299 = vrot.lane.b32.xlu1 %v297_v49, %s4150_s2 }
 0x229   :  { %381 = vperm.xlu1 %3778, %v4404_v50  }
 0x22b   :  { %v3811_v51 = vpop.eup %3810 }
 0x22c   :  { %364 = vrot.lane.b32.xlu0 %v3811_v51, %s4153_s6 }
 0x22d   :  { %3780 = vset.pattern.permute.xlu1 %v4155_v52 }
 0x230   :  { %371 = vperm.xlu0 %3777, %v4400_v48  }
 0x234   :  { %3779 = vset.pattern.permute.xlu0 %v4155_v52 }
 0x235   :  { %314 = vperm.xlu0 %3779, %v4400_v48  }
 0x297   :  { %v300_v53 = vpop.permute.xlu1 %299 }
 0x298   :  { %v302_v56 = vadd.f32 %v300_v53, %v4414_v54 }
 0x29a   :  { %3812 = vtanh.f32 %v302_v56 }
 0x29e   :  { %v365_v57 = vpop.permute.xlu0 %364 }
 0x29f   :  { %v367_v59 = vmul.f32 %v365_v57, %v362_v55 }
 0x2a1   :  { %v369_v60 = vadd.f32 %v368_v58, %v367_v59 }
 0x2a3   :  { %v375_v61 = vrot.slane %v369_v60, 6  ;;  %v4157_v60 = vmov 1  }
 0x2a4   :  { %v3813_v62 = vpop.eup %3812  ;;  %3781 = vset.pattern.permute.xlu0 %v4157_v60 }
 0x2a5   :  { %376 = vrot.lane.b32.xlu1 %v375_v61, %s4156_s19  ;;  %v5292_v61 = vmov 6  }
 0x2a8   :  { %v382_v63 = vpop.permute.xlu1 %381 }
 0x2a9   :  { %321 = vperm.xlu1 %3780, %v4404_v50   ;;  %v4422_v7 = vmul.f32 0.0, %v382_v63 }
 0x2ad   :  { %306 = vrot.lane.b32.xlu1 %v3813_v62, %s4153_s6 }
 0x2ae   :  { %3782 = vset.pattern.permute.xlu1 %v5292_v61 }
 0x2af   :  { %v4420_v0 = vpop.permute.xlu0 %371 }
 0x2b4   :  { %v4433_v19 = vpop.permute.xlu0 %314 }
 0x317   :  { %v377_v1 = vpop.permute.xlu1 %376 }
 0x318   :  { %v4425_v8 = vmul.f32 %v377_v1, %v4420_v0 }
 0x31a   :  { %v4429_v9 = vadd.f32 %v4422_v7, %v4425_v8 }
 0x31c   :  { %v387_v10 = vrot.slane %v4429_v9, 6  ;;  %v550_v59 = vrot.slane %v4429_v9, 4 }
 0x31e   :  { %388 = vrot.lane.b32.xlu0 %v387_v10, %s4146_s23 }
 0x328   :  { %v322_v11 = vpop.permute.xlu1 %321 }
 0x329   :  { %v4435_v20 = vmul.f32 0.0, %v322_v11 }
 0x32c   :  { %v307_v12 = vpop.permute.xlu1 %306 }
 0x32d   :  { %v309_v14 = vmul.f32 %v307_v12, %v304_v13 }
 0x32f   :  { %v311_v17 = vadd.f32 %v310_v15, %v309_v14 }
 0x331   :  { %v4438_v21 = vmul.f32 %v4433_v19, %v311_v17 }
 0x333   :  { %v4442_v22 = vadd.f32 %v4435_v20, %v4438_v21 }
 0x390   :  { %v389_v23 = vpop.permute.xlu0 %388 }
 0x391   :  { %v392_v25 = vsel %vm391_vm2, %v4442_v22, %v389_v23  ;;  %v499_v23 = vrot.slane %v4442_v22, 6 }
 0x392   :  { %394 = vrot.lane.b32.xlu1 %v392_v25, %s4153_s6 }
 0x404   :  { %v395_v27 = vpop.permute.xlu1 %394 }
 0x405   :  { %3622 = vmatmul.mubr.msk.f32.vlgmr.msra.gmra.mrb[2].mxu1 %vm201_vm3, %v395_v27 }
 0x406   :  { %3625 = vmatpush3.msra.mxu1 %v4327_v6  ;;  %3626 = vmatprep.mubr.msk.f32.mxu1 %vm4149_vm0, %v4148_v2 }
 0x407   :  { %3634 = vmatprep.subr.mxu1 %v4148_v2 }
 0x4d8   :  { %v464_v29 = vpop.f32.mrb[2].mxu1 }
 0x4d9   :  { %v469_v30 = vrot.slane %v464_v29, 6  ;;  %v479_v31 = vadd.f32 %v464_v29, %v4385_v36  ;;  %v531_v32 = vadd.f32 %v464_v29, %v4369_v18  ;;  %v3623_v33 = vpop.f32.mrb[3].mxu1 }
 0x4db   :  { %v471_v34 = vadd.f32 %v469_v30, %v4378_v26  ;;  %v523_v35 = vadd.f32 %v4375_v24, %v469_v30  ;;  %v533_v38 = vrot.slane %v531_v32, 6  ;;  %v481_v39 = vrot.slane %v479_v31, 6 }
 0x4dd   :  { %534 = vrot.lane.b32.xlu0 %v533_v38, %s4152_s0  ;;  %482 = vrot.lane.b32.xlu1 %v481_v39, %s4152_s0  ;;  %v472_v40 = vadd.f32 %v471_v34, %v4351_v16  ;;  %v524_v41 = vadd.f32 %v523_v35, %v4381_v28 }
 0x4df   :  { %v3499_v42 = vmul.f32 -1.442695, %v472_v40  ;;  %v3500_v44 = vmul.f32 -1.442695, %v524_v41 }
 0x4e1   :  { %3814 = vpow2.f32 %v3499_v42 }
 0x4e2   :  { %3816 = vpow2.f32 %v3500_v44 }
 0x4eb   :  { %v3815_v45 = vpop.eup %3814 }
 0x4ec   :  { %v3817_v46 = vpop.eup %3816  ;;  %v476_v47 = vadd.f32 1.0, %v3815_v45 }
 0x4ed   :  { %v528_v49 = vadd.f32 1.0, %v3817_v46 }
 0x4ee   :  { %3818 = vrcp.f32 %v476_v47 }
 0x4ef   :  { %3820 = vrcp.f32 %v528_v49 }
 0x4f8   :  { %v3819_v51 = vpop.eup %3818 }
 0x4f9   :  { %v3821_v53 = vpop.eup %3820  ;;  %v492_v17 = vsub.f32 1.0, %v3819_v51  ;;  %v501_v30 = vmul.f32 %v3819_v51, %v499_v23 }
 0x4fa   :  { %v544_v14 = vsub.f32 1.0, %v3821_v53 }
 0x54f   :  { %v535_v55 = vpop.permute.xlu0 %534  ;;  %v483_v56 = vpop.permute.xlu1 %482 }
 0x550   :  { %v537_v57 = vmul.f32 %v3821_v53, %v535_v55  ;;  %v485_v58 = vmul.f32 %v3819_v51, %v483_v56 }
 0x552   :  { %539 = vrot.lane.b32.xlu0 %v537_v57, %s4150_s2  ;;  %487 = vrot.lane.b32.xlu1 %v485_v58, %s4150_s2 }
 0x556   :  { %551 = vrot.lane.b32.xlu1 %v550_v59, %s4158_s20 }
 0x5c4   :  { %v540_v62 = vpop.permute.xlu0 %539  ;;  %v488_v63 = vpop.permute.xlu1 %487 }
 0x5c5   :  { %v542_v1 = vadd.f32 %v540_v62, %v4394_v43  ;;  %v490_v10 = vadd.f32 %v488_v63, %v4414_v54 }
 0x5c7   :  { %3822 = vtanh.f32 %v542_v1 }
 0x5c8   :  { %3824 = vtanh.f32 %v490_v10  ;;  %v552_v13 = vpop.permute.xlu1 %551 }
 0x5c9   :  { %v554_v25 = vmul.f32 %v3821_v53, %v552_v13 }
 0x5d1   :  { %v3823_v11 = vpop.eup %3822 }
 0x5d2   :  { %v3825_v12 = vpop.eup %3824  ;;  %546 = vrot.lane.b32.xlu0 %v3823_v11, %s4153_s6  ;;  %v5293_v11 = vmov 5  }
 0x5d3   :  { %494 = vrot.lane.b32.xlu1 %v3825_v12, %s4153_s6 }
 0x5d6   :  { %514 = vperm.xlu0 %3781, %v4404_v50  }
 0x5d7   :  { %557 = vperm.xlu1 %3782, %v4400_v48  }
 0x5da   :  { %3783 = vset.pattern.permute.xlu0 %v5292_v61 }
 0x5db   :  { %567 = vperm.xlu0 %3783, %v4404_v50   ;;  %3784 = vset.pattern.permute.xlu1 %v4157_v60 }
 0x5dc   :  { %504 = vperm.xlu1 %3784, %v4400_v48  }
 0x5df   :  { %3785 = vset.pattern.permute.xlu0 %v5293_v11 }
 0x5e0   :  { %3786 = vset.pattern.permute.xlu1 %v5293_v11 }
 0x644   :  { %v547_v15 = vpop.permute.xlu0 %546 }
 0x645   :  { %v549_v27 = vmul.f32 %v547_v15, %v544_v14  ;;  %v495_v29 = vpop.permute.xlu1 %494 }
 0x646   :  { %v497_v31 = vmul.f32 %v495_v29, %v492_v17 }
 0x647   :  { %v555_v32 = vadd.f32 %v554_v25, %v549_v27 }
 0x648   :  { %v502_v33 = vadd.f32 %v501_v30, %v497_v31 }
 0x649   :  { %v561_v34 = vrot.slane %v555_v32, 4 }
 0x64a   :  { %v508_v35 = vrot.slane %v502_v33, 2 }
 0x64b   :  { %562 = vrot.lane.b32.xlu1 %v561_v34, %s4156_s19 }
 0x64c   :  { %509 = vrot.lane.b32.xlu0 %v508_v35, %s4153_s6 }
 0x655   :  { %v4479_v38 = vpop.permute.xlu0 %514 }
 0x656   :  { %v517_v39 = vmul.f32 %v4479_v38, %v4442_v22  ;;  %v4484_v40 = vpop.permute.xlu1 %557 }
 0x658   :  { %519 = vrot.lane.b32.xlu1 %v517_v39, %s4153_s6  ;;  %v4161_v39 = vmov 2  }
 0x65a   :  { %v4488_v44 = vpop.permute.xlu0 %567 }
 0x65b   :  { %v4486_v41 = vpop.permute.xlu1 %504  ;;  %v570_v46 = vmul.f32 %v4488_v44, %v4429_v9 }
 0x6bd   :  { %v563_v42 = vpop.permute.xlu1 %562 }
 0x6be   :  { %v4491_v45 = vmul.f32 %v563_v42, %v4484_v40  ;;  %v510_v47 = vpop.permute.xlu0 %509 }
 0x6bf   :  { %v4499_v22 = vmul.f32 %v510_v47, %v4486_v41 }
 0x6c0   :  { %v4496_v49 = vadd.f32 %v570_v46, %v4491_v45 }
 0x6c2   :  { %v573_v53 = vrot.slane %v4496_v49, 6 }
 0x6ca   :  { %v520_v51 = vpop.permute.xlu1 %519 }
 0x6cb   :  { %v4503_v55 = vadd.f32 %v520_v51, %v4499_v22 }
 0x6cd   :  { %v575_v56 = vsel %vm391_vm2, %v4503_v55, %v573_v53  ;;  %v680_v35 = vrot.slane %v4503_v55, 4 }
 0x6ce   :  { %3627 = vmatmul.mubr.msk.f32.vlgmr.msra.gmra.mrb[4].mxu1 %vm201_vm3, %v575_v56 }
 0x6cf   :  { %3635 = vmatpush3.msra.mxu1 %v4327_v6  ;;  %3636 = vmatprep.mubr.msk.f32.mxu1 %vm4149_vm0, %v4148_v2 }
 0x6d0   :  { %3644 = vmatprep.subr.mxu1 %v4148_v2 }
 0x7a1   :  { %v645_v9 = vpop.f32.mrb[4].mxu1 }
 0x7a2   :  { %v650_v57 = vrot.slane %v645_v9, 4  ;;  %v702_v58 = vadd.f32 %v4375_v24, %v645_v9  ;;  %v3628_v59 = vpop.f32.mrb[5].mxu1  ;;  %v710_v62 = vadd.f32 %v645_v9, %v4369_v18  ;;  %v660_v63 = vadd.f32 %v645_v9, %v4385_v36 }
 0x7a4   :  { %v652_v1 = vadd.f32 %v650_v57, %v4378_v26  ;;  %712 = vrot.lane.b32.xlu0 %v710_v62, %s4152_s0  ;;  %v662_v10 = vrot.slane %v660_v63, 4  ;;  %v703_v12 = vadd.f32 %v702_v58, %v4381_v28 }
 0x7a6   :  { %663 = vrot.lane.b32.xlu1 %v662_v10, %s4152_s0  ;;  %v653_v13 = vadd.f32 %v652_v1, %v4351_v16  ;;  %v3503_v14 = vmul.f32 -1.442695, %v703_v12 }
 0x7a8   :  { %v3502_v15 = vmul.f32 -1.442695, %v653_v13  ;;  %3826 = vpow2.f32 %v3503_v14 }
 0x7aa   :  { %3828 = vpow2.f32 %v3502_v15 }
 0x7b2   :  { %v3827_v17 = vpop.eup %3826 }
 0x7b3   :  { %v707_v25 = vadd.f32 1.0, %v3827_v17 }
 0x7b4   :  { %v3829_v23 = vpop.eup %3828 }
 0x7b5   :  { %v657_v27 = vadd.f32 1.0, %v3829_v23  ;;  %3830 = vrcp.f32 %v707_v25 }
 0x7b7   :  { %3832 = vrcp.f32 %v657_v27 }
 0x7bf   :  { %v3831_v29 = vpop.eup %3830 }
 0x7c0   :  { %v722_v57 = vsub.f32 1.0, %v3831_v29 }
 0x7c1   :  { %v3833_v32 = vpop.eup %3832 }
 0x7c2   :  { %v673_v10 = vsub.f32 1.0, %v3833_v32 }
 0x816   :  { %v713_v30 = vpop.permute.xlu0 %712 }
 0x817   :  { %v715_v31 = vmul.f32 %v3831_v29, %v713_v30 }
 0x818   :  { %v664_v33 = vpop.permute.xlu1 %663 }
 0x819   :  { %v666_v34 = vmul.f32 %v3833_v32, %v664_v33  ;;  %717 = vrot.lane.b32.xlu0 %v715_v31, %s4150_s2 }
 0x81b   :  { %668 = vrot.lane.b32.xlu1 %v666_v34, %s4150_s2 }
 0x81f   :  { %728 = vrot.lane.b32.xlu1 %v573_v53, %s4158_s20 }
 0x823   :  { %681 = vrot.lane.b32.xlu1 %v680_v35, %s4146_s23 }
 0x827   :  { %744 = vperm.xlu1 %3786, %v4404_v50  }
 0x82b   :  { %3787 = vset.pattern.permute.xlu1 %v4161_v39 }
 0x82c   :  { %687 = vperm.xlu1 %3787, %v4400_v48  }
 0x88b   :  { %v718_v42 = vpop.permute.xlu0 %717 }
 0x88c   :  { %v720_v46 = vadd.f32 %v718_v42, %v4394_v43 }
 0x88d   :  { %v669_v47 = vpop.permute.xlu1 %668 }
 0x88e   :  { %3834 = vtanh.f32 %v720_v46  ;;  %v671_v51 = vadd.f32 %v669_v47, %v4414_v54 }
 0x890   :  { %3836 = vtanh.f32 %v671_v51 }
 0x891   :  { %v729_v9 = vpop.permute.xlu1 %728 }
 0x892   :  { %v731_v59 = vmul.f32 %v3831_v29, %v729_v9 }
 0x895   :  { %v682_v63 = vpop.permute.xlu1 %681 }
 0x896   :  { %v684_v13 = vmul.f32 %v3833_v32, %v682_v63 }
 0x898   :  { %v3835_v53 = vpop.eup %3834 }
 0x899   :  { %724 = vrot.lane.b32.xlu0 %v3835_v53, %s4153_s6 }
 0x89a   :  { %v3837_v56 = vpop.eup %3836 }
 0x89d   :  { %675 = vrot.lane.b32.xlu0 %v3837_v56, %s4153_s6 }
 0x8a1   :  { %734 = vperm.xlu0 %3785, %v4400_v48  }
 0x8a5   :  { %3788 = vset.pattern.permute.xlu0 %v4161_v39 }
 0x8a6   :  { %697 = vperm.xlu0 %3788, %v4404_v50   ;;  %v4539_v25 = vpop.permute.xlu1 %744 }
 0x8a7   :  { %v747_v31 = vmul.f32 %v4539_v25, %v4496_v49 }
 0x8ab   :  { %v4541_v27 = vpop.permute.xlu1 %687 }
 0x90b   :  { %v725_v58 = vpop.permute.xlu0 %724 }
 0x90c   :  { %v727_v62 = vmul.f32 %v725_v58, %v722_v57 }
 0x90e   :  { %v732_v1 = vadd.f32 %v731_v59, %v727_v62 }
 0x90f   :  { %v676_v12 = vpop.permute.xlu0 %675 }
 0x910   :  { %v678_v14 = vmul.f32 %v676_v12, %v673_v10  ;;  %v738_v15 = vrot.slane %v732_v1, 2 }
 0x912   :  { %v685_v17 = vadd.f32 %v684_v13, %v678_v14  ;;  %739 = vrot.lane.b32.xlu1 %v738_v15, %s4156_s19 }
 0x914   :  { %v691_v23 = vrot.slane %v685_v17, 4 }
 0x916   :  { %692 = vrot.lane.b32.xlu1 %v691_v23, %s4153_s6 }
 0x920   :  { %v4543_v30 = vpop.permute.xlu0 %734 }
 0x925   :  { %v4550_v33 = vpop.permute.xlu0 %697 }
 0x926   :  { %v700_v42 = vmul.f32 %v4550_v33, %v4503_v55  ;;  %v4162_v55 = vmov 4  }
 0x927   :  { %3789 = vset.pattern.permute.xlu0 %v4162_v55  ;;  %3790 = vset.pattern.permute.xlu1 %v4162_v55 }
 0x984   :  { %v740_v29 = vpop.permute.xlu1 %739 }
 0x985   :  { %v4548_v32 = vmul.f32 %v740_v29, %v4543_v30 }
 0x987   :  { %v4553_v34 = vadd.f32 %v747_v31, %v4548_v32 }
 0x988   :  { %v693_v35 = vpop.permute.xlu1 %692 }
 0x989   :  { %v4558_v46 = vmul.f32 %v693_v35, %v4541_v27  ;;  %v750_v47 = vrot.slane %v4553_v34, 6 }
 0x98b   :  { %v4562_v51 = vadd.f32 %v700_v42, %v4558_v46 }
 0x98d   :  { %v752_v49 = vsel %vm391_vm2, %v4562_v51, %v750_v47 }
 0x98e   :  { %3632 = vmatmul.mubr.msk.f32.vlgmr.msra.gmra.mrb[2].mxu0 %vm201_vm3, %v752_v49 }
 0x98f   :  { %3640 = vmatpush3.msra.mxu0 %v4327_v6  ;;  %3641 = vmatprep.mubr.msk.f32.mxu0 %vm4149_vm0, %v4148_v2 }
 0x990   :  { %3649 = vmatprep.subr.mxu0 %v4148_v2 }
 0xa61   :  { %v822_v53 = vpop.f32.mrb[2].mxu0 }
 0xa62   :  { %v827_v56 = vrot.slane %v822_v53, 2  ;;  %v837_v9 = vadd.f32 %v822_v53, %v4385_v36  ;;  %v887_v57 = vadd.f32 %v822_v53, %v4369_v18  ;;  %v3633_v58 = vpop.f32.mrb[3].mxu0 }
 0xa64   :  { %v829_v59 = vadd.f32 %v827_v56, %v4378_v26  ;;  %v879_v62 = vadd.f32 %v4375_v24, %v827_v56  ;;  %v889_v63 = vrot.slane %v887_v57, 2  ;;  %v839_v1 = vrot.slane %v837_v9, 2 }
 0xa65   :  { %v857_v56 = vrot.slane %v4562_v51, 2  ;;  %v4163_v9 = vmov 3  }
 0xa66   :  { %890 = vrot.lane.b32.xlu1 %v889_v63, %s4152_s0  ;;  %840 = vrot.lane.b32.xlu0 %v839_v1, %s4152_s0  ;;  %v830_v10 = vadd.f32 %v829_v59, %v4351_v16  ;;  %v880_v12 = vadd.f32 %v879_v62, %v4381_v28 }
 0xa68   :  { %v3505_v13 = vmul.f32 -1.442695, %v830_v10  ;;  %v3506_v14 = vmul.f32 -1.442695, %v880_v12 }
 0xa6a   :  { %3838 = vpow2.f32 %v3505_v13 }
 0xa6b   :  { %3840 = vpow2.f32 %v3506_v14 }
 0xa74   :  { %v3839_v15 = vpop.eup %3838 }
 0xa75   :  { %v3841_v17 = vpop.eup %3840  ;;  %v834_v23 = vadd.f32 1.0, %v3839_v15 }
 0xa76   :  { %v884_v29 = vadd.f32 1.0, %v3841_v17 }
 0xa77   :  { %3842 = vrcp.f32 %v834_v23 }
 0xa78   :  { %3844 = vrcp.f32 %v884_v29 }
 0xa81   :  { %v3843_v31 = vpop.eup %3842 }
 0xa82   :  { %v3845_v35 = vpop.eup %3844 }
 0xa83   :  { %v900_v23 = vsub.f32 1.0, %v3845_v35 }
 0xad8   :  { %v891_v42 = vpop.permute.xlu1 %890  ;;  %v841_v47 = vpop.permute.xlu0 %840 }
 0xad9   :  { %v893_v49 = vmul.f32 %v3845_v35, %v891_v42  ;;  %v843_v53 = vmul.f32 %v3843_v31, %v841_v47 }
 0xadb   :  { %895 = vrot.lane.b32.xlu1 %v893_v49, %s4150_s2  ;;  %845 = vrot.lane.b32.xlu0 %v843_v53, %s4150_s2 }
 0xadf   :  { %917 = vperm.xlu0 %3789, %v4404_v50   ;;  %912 = vperm.xlu1 %3790, %v4400_v48  }
 0xae3   :  { %858 = vrot.lane.b32.xlu0 %v857_v56, %s4146_s23  ;;  %3792 = vset.pattern.permute.xlu1 %v4163_v9 }
 0xae4   :  { %3791 = vset.pattern.permute.xlu0 %v4163_v9 }
 0xae7   :  { %906 = vrot.lane.b32.xlu0 %v4553_v34, %s4158_s20 }
 0xaeb   :  { %864 = vperm.xlu0 %3791, %v4400_v48  }
 0xaef   :  { %3793 = vset.pattern.permute.xlu0 %v4155_v52 }
 0xb4d   :  { %v846_v57 = vpop.permute.xlu0 %845  ;;  %v896_v58 = vpop.permute.xlu1 %895 }
 0xb4e   :  { %v848_v59 = vadd.f32 %v846_v57, %v4414_v54  ;;  %v898_v62 = vadd.f32 %v896_v58, %v4394_v43  ;;  %v850_v54 = vsub.f32 1.0, %v3843_v31 }
 0xb50   :  { %3846 = vtanh.f32 %v848_v59 }
 0xb51   :  { %3848 = vtanh.f32 %v898_v62 }
 0xb5a   :  { %v3847_v63 = vpop.eup %3846 }
 0xb5b   :  { %852 = vrot.lane.b32.xlu1 %v3847_v63, %s4153_s6  ;;  %v3849_v1 = vpop.eup %3848 }
 0xb5e   :  { %v4596_v10 = vpop.permute.xlu0 %917  ;;  %v4604_v43 = vpop.permute.xlu1 %912 }
 0xb5f   :  { %902 = vrot.lane.b32.xlu1 %v3849_v1, %s4153_s6  ;;  %v920_v48 = vmul.f32 %v4596_v10, %v4553_v34 }
 0xb62   :  { %v859_v52 = vpop.permute.xlu0 %858 }
 0xb63   :  { %922 = vrot.lane.b32.xlu1 %v920_v48, %s4158_s20  ;;  %v861_v13 = vmul.f32 %v3843_v31, %v859_v52 }
 0xb66   :  { %v907_v15 = vpop.permute.xlu0 %906 }
 0xb67   :  { %874 = vperm.xlu1 %3792, %v4404_v50   ;;  %v909_v42 = vmul.f32 %v3845_v35, %v907_v15 }
 0xb6a   :  { %v4614_v58 = vpop.permute.xlu0 %864 }
 0xb6b   :  { %3794 = vset.pattern.permute.xlu1 %v4157_v60 }
 0xbcd   :  { %v853_v12 = vpop.permute.xlu1 %852 }
 0xbce   :  { %v855_v14 = vmul.f32 %v853_v12, %v850_v54 }
 0xbd0   :  { %v862_v17 = vadd.f32 %v861_v13, %v855_v14 }
 0xbd1   :  { %v903_v29 = vpop.permute.xlu1 %902 }
 0xbd2   :  { %v905_v47 = vmul.f32 %v903_v29, %v900_v23  ;;  %v868_v34 = vrot.slane %v862_v17, 6 }
 0xbd4   :  { %v910_v49 = vadd.f32 %v909_v42, %v905_v47  ;;  %869 = vrot.lane.b32.xlu1 %v868_v34, %s4153_s6 }
 0xbd5   :  { %v923_v60 = vpop.permute.xlu1 %922 }
 0xbd6   :  { %v4608_v50 = vmul.f32 %v4604_v43, %v910_v49 }
 0xbd8   :  { %v925_v53 = vadd.f32 %v923_v60, %v4608_v50 }
 0xbda   :  { %v927_v56 = vrot.slane %v925_v53, 6 }
 0xbdc   :  { %928 = vrot.lane.b32.xlu0 %v927_v56, %s4156_s19 }
 0xbe6   :  { %v4612_v31 = vpop.permute.xlu1 %874 }
 0xbe7   :  { %v877_v59 = vmul.f32 %v4612_v31, %v4562_v51 }
 0xc46   :  { %v870_v57 = vpop.permute.xlu1 %869 }
 0xc47   :  { %v4617_v35 = vmul.f32 %v870_v57, %v4614_v58 }
 0xc49   :  { %v878_v62 = vadd.f32 %v877_v59, %v4617_v35 }
 0xc4e   :  { %v929_v63 = vpop.permute.xlu0 %928 }
 0xc4f   :  { %v931_v1 = vsel %vm391_vm2, %v878_v62, %v929_v63 }
 0xc50   :  { %3637 = vmatmul.mubr.msk.f32.vlgmr.msra.gmra.mrb[6].mxu1 %vm201_vm3, %v931_v1 }
 0xc51   :  { %3645 = vmatpush3.msra.mxu1 %v4327_v6  ;;  %3646 = vmatprep.mubr.msk.f32.mxu1 %vm4149_vm0, %v4148_v2 }
 0xd23   :  { %v1001_v48 = vpop.f32.mrb[6].mxu1 }
 0xd24   :  { %v1005_v52 = vadd.f32 %v4375_v24, %v1001_v48  ;;  %v1046_v54 = vrot.slane %v1001_v48, 4  ;;  %v3638_v12 = vpop.f32.mrb[7].mxu1  ;;  %v1057_v13 = vadd.f32 %v1001_v48, %v4369_v18  ;;  %v1014_v15 = vadd.f32 %v1001_v48, %v4385_v36 }
 0xd26   :  { %v1048_v51 = vadd.f32 %v1046_v54, %v4378_v26  ;;  %v1059_v14 = vrot.slane %v1057_v13, 4  ;;  %v1006_v23 = vadd.f32 %v1005_v52, %v4351_v16  ;;  %v1086_v52 = vmul.f32 %v925_v53, %v4612_v31 }
 0xd27   :  { %v4642_v54 = vadd.f32 %v4381_v28, %v4378_v26 }
 0xd28   :  { %1060 = vrot.lane.b32.xlu1 %v1059_v14, %s4152_s0  ;;  %v1049_v17 = vadd.f32 %v1048_v51, %v4381_v28  ;;  %v3508_v42 = vmul.f32 -1.442695, %v1006_v23  ;;  %v1076_v23 = vrot.slane %v925_v53, 2 }
 0xd2a   :  { %v3509_v29 = vmul.f32 -1.442695, %v1049_v17 }
 0xd2c   :  { %1016 = vrot.lane.b32.xlu1 %v1014_v15, %s4152_s0  ;;  %3850 = vpow2.f32 %v3509_v29  ;;  %v4648_v15 = vadd.f32 %v4375_v24, %v4351_v16 }
 0xd2d   :  { %3852 = vpow2.f32 %v3508_v42 }
 0xd36   :  { %v3851_v47 = vpop.eup %3850 }
 0xd37   :  { %v1053_v34 = vadd.f32 1.0, %v3851_v47  ;;  %v3853_v49 = vpop.eup %3852 }
 0xd38   :  { %v1010_v60 = vadd.f32 1.0, %v3853_v49 }
 0xd39   :  { %3854 = vrcp.f32 %v1053_v34 }
 0xd3a   :  { %3856 = vrcp.f32 %v1010_v60 }
 0xd43   :  { %v3855_v56 = vpop.eup %3854 }
 0xd44   :  { %v3857_v63 = vpop.eup %3856  ;;  %v1070_v29 = vsub.f32 1.0, %v3855_v56  ;;  %v1078_v47 = vmul.f32 %v3855_v56, %v1076_v23 }
 0xd9a   :  { %v1061_v57 = vpop.permute.xlu1 %1060 }
 0xd9b   :  { %v1063_v59 = vmul.f32 %v3855_v56, %v1061_v57 }
 0xd9d   :  { %1065 = vrot.lane.b32.xlu0 %v1063_v59, %s4150_s2  ;;  %v1039_v59 = vmul.f32 %v4596_v10, %v878_v62 }
 0xd9e   :  { %v1017_v1 = vpop.permute.xlu1 %1016 }
 0xd9f   :  { %v1019_v48 = vmul.f32 %v3857_v63, %v1017_v1 }
 0xda1   :  { %1021 = vrot.lane.b32.xlu1 %v1019_v48, %s4150_s2 }
 0xda5   :  { %1088 = vrot.lane.b32.xlu1 %v1086_v52, %s4156_s19 }
 0xda9   :  { %1033 = vrot.lane.b32.xlu1 %v878_v62, %s4146_s23 }
 0xe0f   :  { %v1066_v12 = vpop.permute.xlu0 %1065 }
 0xe10   :  { %v1068_v13 = vadd.f32 %v1066_v12, %v4642_v54 }
 0xe12   :  { %3858 = vtanh.f32 %v1068_v13  ;;  %v1026_v13 = vsub.f32 1.0, %v3857_v63 }
 0xe13   :  { %v1022_v14 = vpop.permute.xlu1 %1021 }
 0xe14   :  { %v1024_v17 = vadd.f32 %v1022_v14, %v4648_v15 }
 0xe16   :  { %3860 = vtanh.f32 %v1024_v17 }
 0xe17   :  { %v1089_v53 = vpop.permute.xlu1 %1088 }
 0xe1c   :  { %v3859_v51 = vpop.eup %3858 }
 0xe1d   :  { %1072 = vrot.lane.b32.xlu0 %v3859_v51, %s4153_s6  ;;  %v1034_v51 = vpop.permute.xlu1 %1033 }
 0xe1e   :  { %v1036_v17 = vmul.f32 %v3857_v63, %v1034_v51 }
 0xe20   :  { %v3861_v57 = vpop.eup %3860 }
 0xe8f   :  { %v1073_v42 = vpop.permute.xlu0 %1072 }
 0xe90   :  { %v1075_v34 = vmul.f32 %v1073_v42, %v1070_v29 }
 0xe92   :  { %v1079_v49 = vadd.f32 %v1078_v47, %v1075_v34 }
 0xe94   :  { %v1081_v60 = vrot.slane %v1079_v49, 6 }
 0xe96   :  { %1082 = vrot.lane.b32.xlu0 %v1081_v60, %s4156_s19 }
 0xe9a   :  { %1028 = vrot.lane.b32.xlu0 %v3861_v57, %s4153_s6 }
 0xe9e   :  { %1041 = vrot.lane.b32.xlu0 %v1039_v59, %s4146_s23 }
 0xf08   :  { %v1083_v1 = vpop.permute.xlu0 %1082 }
 0xf09   :  { %v4656_v48 = vmul.f32 %v1083_v1, %v4614_v58 }
 0xf0b   :  { %v4659_v52 = vadd.f32 %v1089_v53, %v4656_v48 }
 0xf0c   :  { %v1029_v12 = vpop.permute.xlu0 %1028 }
 0xf0d   :  { %v1093_v56 = vrot.slane %v4659_v52, 6  ;;  %v1031_v14 = vmul.f32 %v1029_v12, %v1026_v13 }
 0xf0f   :  { %1094 = vrot.lane.b32.xlu1 %v1093_v56, %s4146_s23  ;;  %v1037_v62 = vadd.f32 %v1036_v17, %v1031_v14 }
 0xf10   :  { %v1042_v29 = vpop.permute.xlu0 %1041 }
 0xf11   :  { %v4664_v23 = vmul.f32 %v1037_v62, %v4604_v43 }
 0xf13   :  { %v4667_v42 = vadd.f32 %v1042_v29, %v4664_v23 }
 0xf81   :  { %v1095_v47 = vpop.permute.xlu1 %1094 }
 0xf82   :  { %v1097_v34 = vsel %vm391_vm2, %v4667_v42, %v1095_v47 }
 0xf83   :  { %1099 = vrot.lane.b32.xlu0 %v1097_v34, %s4153_s6 }
 0xff5   :  { %v1100_v49 = vpop.permute.xlu0 %1099 }
 0xff6   :  { %3642 = vmatmul.mubr.msk.f32.vlgmr.msra.gmra.mrb[4].mxu0 %vm201_vm3, %v1100_v49 }
 0xff7   :  { %3650 = vmatpush3.msra.mxu0 %v4327_v6  ;;  %3651 = vmatprep.mubr.msk.f32.mxu0 %vm4149_vm0, %v4148_v2 }
 0xff8   :  { %3661 = vmatprep.subr.mxu0 %v4148_v2 }
0x10c9   :  { %v1169_v63 = vpop.f32.mrb[4].mxu0 }
0x10ca   :  { %v1174_v60 = vrot.slane %v1169_v63, 6  ;;  %v1184_v57 = vadd.f32 %v1169_v63, %v4385_v36  ;;  %v1228_v59 = vadd.f32 %v1169_v63, %v4369_v18  ;;  %v3643_v1 = vpop.f32.mrb[5].mxu0 }
0x10cc   :  { %v1176_v53 = vadd.f32 %v4375_v24, %v1174_v60  ;;  %v1220_v56 = vadd.f32 %v1174_v60, %v4378_v26  ;;  %v1230_v12 = vrot.slane %v1228_v59, 6  ;;  %v1186_v13 = vrot.slane %v1184_v57, 6 }
0x10ce   :  { %1231 = vrot.lane.b32.xlu1 %v1230_v12, %s4152_s0  ;;  %1187 = vrot.lane.b32.xlu0 %v1186_v13, %s4152_s0  ;;  %v1177_v6 = vadd.f32 %v1176_v53, %v4351_v16  ;;  %v1221_v51 = vadd.f32 %v1220_v56, %v4381_v28  ;;  %v1247_v53 = vrot.slane %v4659_v52, 4 }
0x10d0   :  { %v3511_v14 = vmul.f32 -1.442695, %v1177_v6  ;;  %v3512_v17 = vmul.f32 -1.442695, %v1221_v51 }
0x10d2   :  { %3862 = vpow2.f32 %v3511_v14 }
0x10d3   :  { %3864 = vpow2.f32 %v3512_v17 }
0x10dc   :  { %v3863_v62 = vpop.eup %3862 }
0x10dd   :  { %v3865_v29 = vpop.eup %3864  ;;  %v1181_v47 = vadd.f32 1.0, %v3863_v62 }
0x10de   :  { %v1225_v34 = vadd.f32 1.0, %v3865_v29 }
0x10df   :  { %3866 = vrcp.f32 %v1181_v47 }
0x10e0   :  { %3868 = vrcp.f32 %v1225_v34 }
0x10e9   :  { %v3867_v49 = vpop.eup %3866 }
0x10ea   :  { %v3869_v63 = vpop.eup %3868 }
0x10eb   :  { %v1241_v62 = vsub.f32 1.0, %v3869_v63 }
0x1140   :  { %v1232_v60 = vpop.permute.xlu1 %1231  ;;  %v1188_v57 = vpop.permute.xlu0 %1187 }
0x1141   :  { %v1234_v59 = vmul.f32 %v3869_v63, %v1232_v60  ;;  %v1190_v1 = vmul.f32 %v3867_v49, %v1188_v57  ;;  %v1204_v60 = vrot.slane %v4667_v42, 6 }
0x1143   :  { %1236 = vrot.lane.b32.xlu1 %v1234_v59, %s4150_s2  ;;  %1192 = vrot.lane.b32.xlu0 %v1190_v1, %s4150_s2  ;;  %v1197_v59 = vsub.f32 1.0, %v3867_v49 }
0x1147   :  { %1248 = vrot.lane.b32.xlu0 %v1247_v53, %s4158_s20  ;;  %v1206_v53 = vmul.f32 %v3867_v49, %v1204_v60 }
0x11b5   :  { %v1237_v56 = vpop.permute.xlu1 %1236  ;;  %v1193_v12 = vpop.permute.xlu0 %1192 }
0x11b6   :  { %v1239_v13 = vadd.f32 %v1237_v56, %v4642_v54  ;;  %v1195_v6 = vadd.f32 %v1193_v12, %v4648_v15 }
0x11b8   :  { %3870 = vtanh.f32 %v1239_v13 }
0x11b9   :  { %3872 = vtanh.f32 %v1195_v6  ;;  %v1249_v17 = vpop.permute.xlu0 %1248 }
0x11ba   :  { %v1251_v47 = vmul.f32 %v3869_v63, %v1249_v17 }
0x11c2   :  { %v3871_v51 = vpop.eup %3870 }
0x11c3   :  { %1243 = vrot.lane.b32.xlu1 %v3871_v51, %s4153_s6  ;;  %v3873_v14 = vpop.eup %3872  ;;  %v1214_v51 = vmul.f32 %v4667_v42, %v4539_v25 }
0x11c7   :  { %1199 = vrot.lane.b32.xlu1 %v3873_v14, %s4153_s6  ;;  %v1259_v14 = vmul.f32 %v4659_v52, %v4550_v33 }
0x1235   :  { %v1244_v29 = vpop.permute.xlu1 %1243 }
0x1236   :  { %v1246_v34 = vmul.f32 %v1244_v29, %v1241_v62 }
0x1238   :  { %v1252_v57 = vadd.f32 %v1251_v47, %v1246_v34 }
0x1239   :  { %v1200_v1 = vpop.permute.xlu1 %1199 }
0x123a   :  { %v1202_v56 = vmul.f32 %v1200_v1, %v1197_v59  ;;  %v1254_v12 = vrot.slane %v1252_v57, 4 }
0x123c   :  { %v1207_v13 = vadd.f32 %v1206_v53, %v1202_v56  ;;  %1255 = vrot.lane.b32.xlu0 %v1254_v12, %s4156_s19 }
0x123e   :  { %v1209_v6 = vrot.slane %v1207_v13, 2 }
0x1240   :  { %1210 = vrot.lane.b32.xlu1 %v1209_v6, %s4153_s6  ;;  %1216 = vrot.lane.b32.xlu0 %v1214_v51, %s4153_s6 }
0x12ae   :  { %v1256_v63 = vpop.permute.xlu0 %1255 }
0x12af   :  { %v4702_v17 = vmul.f32 %v1256_v63, %v4541_v27 }
0x12b1   :  { %v4705_v49 = vadd.f32 %v1259_v14, %v4702_v17 }
0x12b2   :  { %v1211_v62 = vpop.permute.xlu1 %1210  ;;  %v1217_v47 = vpop.permute.xlu0 %1216 }
0x12b3   :  { %v4708_v29 = vmul.f32 %v1211_v62, %v4543_v30  ;;  %v1262_v42 = vrot.slane %v4705_v49, 6 }
0x12b5   :  { %v4712_v34 = vadd.f32 %v1217_v47, %v4708_v29 }
0x12b7   :  { %v1264_v60 = vsel %vm391_vm2, %v4712_v34, %v1262_v42 }
0x12b8   :  { %3647 = vmatmul.mubr.msk.f32.vlgmr.msra.gmra.mrb[8].mxu1 %vm201_vm3, %v1264_v60 }
0x138b   :  { %v1334_v52 = vpop.f32.mrb[8].mxu1 }
0x138c   :  { %v1339_v57 = vrot.slane %v1334_v52, 4  ;;  %v1383_v59 = vadd.f32 %v1334_v52, %v4378_v26  ;;  %v3648_v1 = vpop.f32.mrb[9].mxu1  ;;  %v1391_v53 = vadd.f32 %v1334_v52, %v4369_v18  ;;  %v1349_v56 = vadd.f32 %v1334_v52, %v4385_v36 }
0x138e   :  { %v1341_v12 = vadd.f32 %v4375_v24, %v1339_v57  ;;  %1393 = vrot.lane.b32.xlu1 %v1391_v53, %s4152_s0  ;;  %v1351_v13 = vrot.slane %v1349_v56, 4  ;;  %v1384_v6 = vadd.f32 %v1383_v59, %v4381_v28  ;;  %v1369_v59 = vrot.slane %v4712_v34, 4 }
0x1390   :  { %1352 = vrot.lane.b32.xlu0 %v1351_v13, %s4152_s0  ;;  %v1342_v51 = vadd.f32 %v1341_v12, %v4351_v16  ;;  %v3515_v63 = vmul.f32 -1.442695, %v1384_v6 }
0x1392   :  { %v3514_v14 = vmul.f32 -1.442695, %v1342_v51  ;;  %3874 = vpow2.f32 %v3515_v63 }
0x1394   :  { %3876 = vpow2.f32 %v3514_v14 }
0x139c   :  { %v3875_v62 = vpop.eup %3874 }
0x139d   :  { %v1388_v60 = vadd.f32 1.0, %v3875_v62 }
0x139e   :  { %v3877_v47 = vpop.eup %3876 }
0x139f   :  { %v1346_v1 = vadd.f32 1.0, %v3877_v47  ;;  %3878 = vrcp.f32 %v1388_v60 }
0x13a1   :  { %3880 = vrcp.f32 %v1346_v1 }
0x13a9   :  { %v3879_v52 = vpop.eup %3878 }
0x13ab   :  { %v3881_v56 = vpop.eup %3880 }
0x1400   :  { %v1394_v57 = vpop.permute.xlu1 %1393 }
0x1401   :  { %v1396_v53 = vmul.f32 %v3879_v52, %v1394_v57 }
0x1402   :  { %v1353_v61 = vpop.permute.xlu0 %1352 }
0x1403   :  { %v1355_v13 = vmul.f32 %v3881_v56, %v1353_v61  ;;  %1398 = vrot.lane.b32.xlu1 %v1396_v53, %s4150_s2 }
0x1405   :  { %1357 = vrot.lane.b32.xlu0 %v1355_v13, %s4150_s2  ;;  %v1362_v13 = vsub.f32 1.0, %v3881_v56 }
0x1409   :  { %1409 = vrot.lane.b32.xlu0 %v1262_v42, %s4158_s20  ;;  %v1403_v42 = vsub.f32 1.0, %v3879_v52 }
0x140d   :  { %1370 = vrot.lane.b32.xlu0 %v1369_v59, %s4146_s23 }
0x1475   :  { %v1399_v12 = vpop.permute.xlu1 %1398 }
0x1476   :  { %v1401_v6 = vadd.f32 %v1399_v12, %v4642_v54 }
0x1477   :  { %v1358_v51 = vpop.permute.xlu0 %1357 }
0x1478   :  { %3882 = vtanh.f32 %v1401_v6  ;;  %v1360_v63 = vadd.f32 %v1358_v51, %v4648_v15 }
0x147a   :  { %3884 = vtanh.f32 %v1360_v63 }
0x147b   :  { %v1410_v62 = vpop.permute.xlu0 %1409 }
0x147c   :  { %v1412_v60 = vmul.f32 %v3879_v52, %v1410_v62 }
0x147f   :  { %v1371_v57 = vpop.permute.xlu0 %1370 }
0x1480   :  { %v1373_v12 = vmul.f32 %v3881_v56, %v1371_v57 }
0x1482   :  { %v3883_v14 = vpop.eup %3882 }
0x1483   :  { %1405 = vrot.lane.b32.xlu1 %v3883_v14, %s4153_s6 }
0x1484   :  { %v3885_v61 = vpop.eup %3884 }
0x1487   :  { %1364 = vrot.lane.b32.xlu1 %v3885_v61, %s4153_s6  ;;  %v1420_v61 = vmul.f32 %v4705_v49, %v4479_v38 }
0x14f5   :  { %v1406_v47 = vpop.permute.xlu1 %1405 }
0x14f6   :  { %v1408_v1 = vmul.f32 %v1406_v47, %v1403_v42  ;;  %v1381_v47 = vmul.f32 %v4712_v34, %v4488_v44 }
0x14f8   :  { %v1413_v53 = vadd.f32 %v1412_v60, %v1408_v1 }
0x14f9   :  { %v1365_v59 = vpop.permute.xlu1 %1364 }
0x14fa   :  { %v1367_v6 = vmul.f32 %v1365_v59, %v1362_v13  ;;  %v1415_v11 = vrot.slane %v1413_v53, 2 }
0x14fc   :  { %v1374_v51 = vadd.f32 %v1373_v12, %v1367_v6  ;;  %1416 = vrot.lane.b32.xlu1 %v1415_v11, %s4156_s19 }
0x14fe   :  { %v1376_v63 = vrot.slane %v1374_v51, 4 }
0x1500   :  { %1377 = vrot.lane.b32.xlu0 %v1376_v63, %s4153_s6 }
0x156e   :  { %v1417_v14 = vpop.permute.xlu1 %1416 }
0x156f   :  { %v1419_v52 = vmul.f32 %v1417_v14, %v4486_v41 }
0x1571   :  { %v1421_v62 = vadd.f32 %v1420_v61, %v1419_v52 }
0x1572   :  { %v1378_v42 = vpop.permute.xlu0 %1377 }
0x1573   :  { %v4742_v56 = vmul.f32 %v1378_v42, %v4484_v40  ;;  %v1423_v60 = vrot.slane %v1421_v62, 6 }
0x1575   :  { %v1382_v11 = vadd.f32 %v1381_v47, %v4742_v56 }
0x1577   :  { %v1425_v1 = vsel %vm391_vm2, %v1382_v11, %v1423_v60 }
0x1578   :  { %3652 = vmatmul.mubr.msk.f32.vlgmr.msra.gmra.mrb[6].mxu0 %vm201_vm3, %v1425_v1 }
0x1579   :  { %3663 = vmatprep.mubr.msk.f32.mxu0 %vm4149_vm0, %v4148_v2 }
0x164b   :  { %v1495_v49 = vpop.f32.mrb[6].mxu0 }
0x164c   :  { %v1500_v57 = vrot.slane %v1495_v49, 2  ;;  %v1510_v53 = vadd.f32 %v1495_v49, %v4385_v36  ;;  %v1550_v13 = vadd.f32 %v1495_v49, %v4369_v18  ;;  %v3653_v34 = vpop.f32.mrb[7].mxu0 }
0x164e   :  { %v1502_v59 = vadd.f32 %v4375_v24, %v1500_v57  ;;  %v1512_v12 = vrot.slane %v1510_v53, 2  ;;  %v1542_v6 = vadd.f32 %v1500_v57, %v4378_v26  ;;  %v1552_v51 = vrot.slane %v1550_v13, 2 }
0x1650   :  { %1553 = vrot.lane.b32.xlu0 %v1552_v51, %s4152_s0  ;;  %1513 = vrot.lane.b32.xlu1 %v1512_v12, %s4152_s0  ;;  %v1503_v63 = vadd.f32 %v1502_v59, %v4351_v16  ;;  %v1543_v14 = vadd.f32 %v1542_v6, %v4381_v28  ;;  %v1530_v16 = vrot.slane %v1382_v11, 2 }
0x1652   :  { %v3517_v61 = vmul.f32 -1.442695, %v1503_v63  ;;  %v3518_v42 = vmul.f32 -1.442695, %v1543_v14 }
0x1654   :  { %3886 = vpow2.f32 %v3517_v61 }
0x1655   :  { %3888 = vpow2.f32 %v3518_v42 }
0x165e   :  { %v3887_v18 = vpop.eup %3886 }
0x165f   :  { %v3889_v36 = vpop.eup %3888  ;;  %v1507_v47 = vadd.f32 1.0, %v3887_v18 }
0x1660   :  { %v1547_v24 = vadd.f32 1.0, %v3889_v36 }
0x1661   :  { %3890 = vrcp.f32 %v1507_v47 }
0x1662   :  { %3892 = vrcp.f32 %v1547_v24 }
0x166b   :  { %v3891_v26 = vpop.eup %3890 }
0x166c   :  { %v3893_v60 = vpop.eup %3892 }
0x166d   :  { %v1563_v63 = vsub.f32 1.0, %v3893_v60 }
0x16c2   :  { %v1554_v1 = vpop.permute.xlu0 %1553  ;;  %v1514_v49 = vpop.permute.xlu1 %1513 }
0x16c3   :  { %v1556_v57 = vmul.f32 %v3893_v60, %v1554_v1  ;;  %v1516_v53 = vmul.f32 %v3891_v26, %v1514_v49 }
0x16c5   :  { %1558 = vrot.lane.b32.xlu0 %v1556_v57, %s4150_s2  ;;  %1518 = vrot.lane.b32.xlu1 %v1516_v53, %s4150_s2 }
0x16c9   :  { %1531 = vrot.lane.b32.xlu0 %v1530_v16, %s4146_s23 }
0x16cd   :  { %1569 = vrot.lane.b32.xlu0 %v1421_v62, %s4158_s20 }
0x16d1   :  { %1609 = vrot.lane.b32.xlu0 %v4548_v32, %s4146_s23  ;;  %v1734_v32 = vld [vmem:[#allocation11] sm:$0x3] }
0x16d5   :  { %1614 = vrot.lane.b32.xlu0 %v4491_v45, %s4146_s23  ;;  %v4772_v45 = vld [vmem:[#allocation9] sm:$0xff] }
0x16d6   :  { %3662 = vmatpush3.msra.mxu0 %v4772_v45 }
0x16d7   :  { %3664 = vmatmul.mubr.f32.vlgmr.msra.gmra.mrb[8].mxu0 %v4148_v2  ;;  %3671 = vmatprep.subr.mxu0 %v4148_v2 }
0x16d8   :  { %3673 = vmatprep.mubr.msk.f32.mxu0 %vm4149_vm0, %v4148_v2  ;;  %3672 = vmatpush3.msra.mxu0 %v4772_v45 }
0x16d9   :  { %3681 = vmatprep.subr.mxu0 %v4148_v2 }
0x1737   :  { %v1519_v28 = vpop.permute.xlu1 %1518  ;;  %v1559_v13 = vpop.permute.xlu0 %1558 }
0x1738   :  { %v1521_v34 = vadd.f32 %v1519_v28, %v4648_v15  ;;  %v1561_v59 = vadd.f32 %v1559_v13, %v4642_v54  ;;  %v4793_v54 = vrot.slane %v1734_v32, %v278_v4 }
0x173a   :  { %3894 = vtanh.f32 %v1521_v34 }
0x173b   :  { %3896 = vtanh.f32 %v1561_v59  ;;  %v1532_v15 = vpop.permute.xlu0 %1531 }
0x173c   :  { %v1534_v6 = vmul.f32 %v3891_v26, %v1532_v15 }
0x173f   :  { %v1570_v51 = vpop.permute.xlu0 %1569 }
0x1740   :  { %v1572_v4 = vmul.f32 %v3893_v60, %v1570_v51 }
0x1743   :  { %v1610_v57 = vpop.permute.xlu0 %1609 }
0x1744   :  { %v3895_v12 = vpop.eup %3894 }
0x1745   :  { %1525 = vrot.lane.b32.xlu1 %v3895_v12, %s4153_s6  ;;  %v3897_v11 = vpop.eup %3896 }
0x1749   :  { %1565 = vrot.lane.b32.xlu1 %v3897_v11, %s4153_s6 }
0x174d   :  { %1585 = vrot.lane.b32.xlu1 %v1419_v52, %s4146_s23 }
0x1751   :  { %1590 = vrot.lane.b32.xlu1 %v4702_v17, %s4146_s23  ;;  %v1649_v17 = vld [vmem:[#allocation8] sm:$0xff] }
0x1755   :  { %1576 = vrot.lane.b32.xlu1 %v4438_v21, %s4153_s6  ;;  %v1851_v21 = vrot.slane %v1734_v32, %v332_v5 }
0x1759   :  { %1595 = vrot.lane.b32.xlu1 %v4656_v48, %s4146_s23  ;;  %v1523_v48 = vsub.f32 1.0, %v3891_v26 }
0x175d   :  { %1600 = vrot.lane.b32.xlu1 %v4664_v23, %s4153_s6  ;;  %v1650_v23 = vld [vmem:[#allocation8 + $0x8] sm:$0xff] }
0x175e   :  { %v3730_v62 = vpack.c.bf16 %v1650_v23, %v1649_v17 }
0x1760   :  { %3731 = vmatprep.subr.bf16.mxu1 %v3730_v62 }
0x1761   :  { %1619 = vrot.lane.b32.xlu1 %v4425_v8, %s4146_s23  ;;  %3733 = vmatpush3.bf16.msra.mxu1 %v3730_v62 }
0x1762   :  { %3666 = vmatprep.subr.mxu1 %v4148_v2 }
0x1765   :  { %1853 = vrot.lane.b32.xlu1 %v1851_v21, %s4151_s15 }
0x1769   :  { %1819 = vrot.lane.b32.xlu1 %v4793_v54, %s4153_s6 }
0x17aa   :  { %v1801_v16 = vpop.f32.mrb[8].mxu0 }
0x17ab   :  { %v3665_v28 = vpop.f32.mrb[9].mxu0 }
0x17b7   :  { %v1526_v52 = vpop.permute.xlu1 %1525 }
0x17b8   :  { %v1528_v5 = vmul.f32 %v1526_v52, %v1523_v48  ;;  %v1612_v48 = vsel %vm201_vm3, %v4708_v29, %v1610_v57 }
0x17ba   :  { %v1535_v8 = vadd.f32 %v1534_v6, %v1528_v5  ;;  %v1633_v6 = vrot.slane %v1612_v48, 6 }
0x17bb   :  { %v1566_v3 = vpop.permute.xlu1 %1565 }
0x17bc   :  { %v1568_v14 = vmul.f32 %v1566_v3, %v1563_v63  ;;  %v1537_v61 = vrot.slane %v1535_v8, 6 }
0x17be   :  { %v1573_v42 = vadd.f32 %v1572_v4, %v1568_v14  ;;  %1538 = vrot.lane.b32.xlu0 %v1537_v61, %s4153_s6 }
0x17bf   :  { %v1586_v36 = vpop.permute.xlu1 %1585 }
0x17c0   :  { %v1574_v18 = vmul.f32 %v1573_v42, %v4433_v19  ;;  %v1588_v59 = vsel %vm201_vm3, %v4499_v22, %v1586_v36 }
0x17c2   :  { %1580 = vrot.lane.b32.xlu0 %v1574_v18, %s4164_s21  ;;  %v1845_v18 = vrot.slane %v1801_v16, 4 }
0x17c3   :  { %v1591_v47 = vpop.permute.xlu1 %1590 }
0x17c4   :  { %v1593_v12 = vsel %vm201_vm3, %v4558_v46, %v1591_v47 }
0x17c5   :  { %v1627_v17 = vrot.slane %v1593_v12, 4 }
0x17c6   :  { %1604 = vrot.lane.b32.xlu0 %v4608_v50, %s4164_s21  ;;  %v1615_v50 = vpop.permute.xlu0 %1614 }
0x17c7   :  { %v1577_v24 = vpop.permute.xlu1 %1576  ;;  %v1617_v22 = vsel %vm201_vm3, %v4742_v56, %v1615_v50 }
0x17c8   :  { %v1636_v29 = vrot.slane %v1617_v22, 4 }
0x17ca   :  { %1864 = vrot.lane.b32.xlu0 %v1851_v21, %s4150_s2  ;;  %v1624_v21 = vrot.slane %v1588_v59, 6 }
0x17cb   :  { %v1596_v26 = vpop.permute.xlu1 %1595 }
0x17cc   :  { %v1598_v11 = vsel %vm201_vm3, %v4617_v35, %v1596_v26 }
0x17cd   :  { %v1630_v52 = vrot.slane %v1598_v11, 2 }
0x17cf   :  { %v1601_v60 = vpop.permute.xlu1 %1600 }
0x17d3   :  { %v1620_v1 = vpop.permute.xlu1 %1619 }
0x17d7   :  { %v4805_v49 = vpop.permute.xlu1 %1853 }
0x17db   :  { %v4807_v53 = vpop.permute.xlu1 %1819 }
0x17dc   :  { %v1822_v13 = vadd.f32 %v4807_v53, %v1801_v16 }
0x17de   :  { %1824 = vrot.lane.b32.xlu1 %v1822_v13, %s4152_s0 }
0x1830   :  { %v1539_v34 = vpop.permute.xlu0 %1538 }
0x1831   :  { %v1541_v32 = vmul.f32 %v1539_v34, %v4420_v0 }
0x1833   :  { %v1622_v35 = vsel %vm201_vm3, %v1541_v32, %v1620_v1 }
0x1834   :  { %v1581_v15 = vpop.permute.xlu0 %1580  ;;  %v1639_v63 = vrot.slane %v1622_v35, 2 }
0x1835   :  { %v1583_v23 = vsel %vm201_vm3, %v1577_v24, %v1581_v15 }
0x1836   :  { %v1641_v46 = vsel %vm391_vm2, %v1583_v23, %v1624_v21 }
0x1837   :  { %v1643_v62 = vsel %vm1642_vm4, %v1641_v46, %v1627_v17 }
0x1838   :  { %v1605_v5 = vpop.permute.xlu0 %1604  ;;  %v1645_v51 = vsel %vm1644_vm5, %v1643_v62, %v1630_v52 }
0x1839   :  { %v1607_v8 = vsel %vm201_vm3, %v1601_v60, %v1605_v5  ;;  %3658 = vmatprep.mubr.msk.f32.mxu1 %vm1651_vm6, %v1645_v51 }
0x183a   :  { %v1646_v56 = vsel %vm391_vm2, %v1607_v8, %v1633_v6 }
0x183b   :  { %v1647_v3 = vsel %vm1642_vm4, %v1646_v56, %v1636_v29 }
0x183c   :  { %v1648_v4 = vsel %vm1644_vm5, %v1647_v3, %v1639_v63  ;;  %v4832_v14 = vpop.permute.xlu0 %1864 }
0x183d   :  { %3659 = vmatmul.mubr.msk.f32.vlgmr.msra.gmra.mrb[10].mxu1 %vm1651_vm6, %v1648_v4  ;;  %v1867_v61 = vadd.f32 %v4832_v14, %v1801_v16 }
0x183e   :  { %3667 = vmatpush3.msra.mxu1 %v4772_v45  ;;  %3668 = vmatprep.mubr.msk.f32.mxu1 %vm4149_vm0, %v4148_v2 }
0x183f   :  { %v1869_v42 = vrot.slane %v1867_v61, 4  ;;  %3676 = vmatprep.subr.mxu1 %v4148_v2 }
0x1841   :  { %1870 = vrot.lane.b32.xlu0 %v1869_v42, %s4152_s0 }
0x1850   :  { %v1825_v21 = vpop.permute.xlu1 %1824 }
0x18b3   :  { %v1871_v12 = vpop.permute.xlu0 %1870 }
0x1910   :  { %v4841_v36 = vpop.f32.mrb[10].mxu1 }
0x1911   :  { %v1847_v47 = vadd.f32 %v4841_v36, %v1845_v18  ;;  %v4844_v24 = vpop.f32.mrb[11].mxu1  ;;  %v4853_v48 = vadd.f32 %v4841_v36, %v4805_v49 }
0x1912   :  { %v1805_v26 = vadd.f32 %v1801_v16, %v4844_v24  ;;  %v4857_v23 = vadd.f32 %v4793_v54, %v4844_v24 }
0x1913   :  { %v1856_v60 = vadd.f32 %v4805_v49, %v1847_v47 }
0x1914   :  { %v1810_v1 = vadd.f32 %v4793_v54, %v1805_v26 }
0x1915   :  { %v3522_v57 = vmul.f32 -1.442695, %v1856_v60 }
0x1916   :  { %v3521_v28 = vmul.f32 -1.442695, %v1810_v1 }
0x1917   :  { %3898 = vpow2.f32 %v3522_v57 }
0x1918   :  { %3900 = vpow2.f32 %v3521_v28 }
0x1921   :  { %v3899_v13 = vpop.eup %3898 }
0x1922   :  { %v3901_v50 = vpop.eup %3900  ;;  %v1860_v34 = vadd.f32 1.0, %v3899_v13 }
0x1923   :  { %v1814_v59 = vadd.f32 1.0, %v3901_v50 }
0x1924   :  { %3902 = vrcp.f32 %v1860_v34 }
0x1925   :  { %3904 = vrcp.f32 %v1814_v59 }
0x192e   :  { %v3903_v11 = vpop.eup %3902 }
0x192f   :  { %v3905_v32 = vpop.eup %3904  ;;  %v1873_v15 = vmul.f32 %v3903_v11, %v1871_v12  ;;  %v1880_v6 = vsub.f32 1.0, %v3903_v11  ;;  %v1886_v51 = vmul.f32 0.0, %v3903_v11 }
0x1930   :  { %v1827_v16 = vmul.f32 %v3905_v32, %v1825_v21  ;;  %v1834_v18 = vsub.f32 1.0, %v3905_v32  ;;  %v1840_v26 = vmul.f32 0.0, %v3905_v32 }
0x1931   :  { %1875 = vrot.lane.b32.xlu0 %v1873_v15, %s4150_s2 }
0x1932   :  { %1829 = vrot.lane.b32.xlu1 %v1827_v16, %s4150_s2 }
0x19a3   :  { %v1876_v17 = vpop.permute.xlu0 %1875 }
0x19a4   :  { %v1878_v22 = vadd.f32 %v1876_v17, %v4853_v48  ;;  %v1830_v52 = vpop.permute.xlu1 %1829 }
0x19a5   :  { %v1832_v46 = vadd.f32 %v1830_v52, %v4857_v23 }
0x19a6   :  { %3906 = vtanh.f32 %v1878_v22 }
0x19a7   :  { %3908 = vtanh.f32 %v1832_v46 }
0x19b0   :  { %v3907_v35 = vpop.eup %3906 }
0x19b1   :  { %v3909_v62 = vpop.eup %3908  ;;  %1882 = vrot.lane.b32.xlu0 %v3907_v35, %s4153_s6 }
0x19b2   :  { %1836 = vrot.lane.b32.xlu1 %v3909_v62, %s4153_s6 }
0x1a23   :  { %v1883_v5 = vpop.permute.xlu0 %1882 }
0x1a24   :  { %v1885_v29 = vmul.f32 %v1883_v5, %v1880_v6  ;;  %v1837_v42 = vpop.permute.xlu1 %1836 }
0x1a25   :  { %v1839_v47 = vmul.f32 %v1837_v42, %v1834_v18 }
0x1a26   :  { %v1887_v8 = vadd.f32 %v1886_v51, %v1885_v29 }
0x1a27   :  { %v1841_v60 = vadd.f32 %v1840_v26, %v1839_v47 }
0x1a28   :  { %v1889_v63 = vrot.slane %v1887_v8, 6 }
0x1a29   :  { %v4874_v1 = vmul.f32 %v1841_v60, %v4433_v19 }
0x1a2a   :  { %1890 = vrot.lane.b32.xlu0 %v1889_v63, %s4156_s19 }
0x1a2b   :  { %v4878_v57 = vadd.f32 %v4874_v1, %v4435_v20 }
0x1a9c   :  { %v1891_v56 = vpop.permute.xlu0 %1890 }
0x1a9d   :  { %v4865_v3 = vmul.f32 %v1891_v56, %v4420_v0 }
0x1a9f   :  { %v4869_v4 = vadd.f32 %v4865_v3, %v4422_v7 }
0x1aa1   :  { %v1896_v61 = vrot.slane %v4869_v4, 6 }
0x1aa3   :  { %1897 = vrot.lane.b32.xlu0 %v1896_v61, %s4146_s23  ;;  %v2050_v61 = vrot.slane %v4869_v4, 4 }
0x1b15   :  { %v1898_v28 = vpop.permute.xlu0 %1897 }
0x1b16   :  { %v1900_v7 = vsel %vm391_vm2, %v4878_v57, %v1898_v28 }
0x1b17   :  { %1902 = vrot.lane.b32.xlu1 %v1900_v7, %s4153_s6 }
0x1b89   :  { %v1903_v13 = vpop.permute.xlu1 %1902 }
0x1b8a   :  { %3669 = vmatmul.mubr.msk.f32.vlgmr.msra.gmra.mrb[12].mxu1 %vm201_vm3, %v1903_v13 }
0x1b8b   :  { %3677 = vmatpush3.msra.mxu1 %v4772_v45  ;;  %3678 = vmatprep.mubr.msk.f32.mxu1 %vm4149_vm0, %v4148_v2 }
0x1b8c   :  { %3686 = vmatprep.subr.mxu1 %v4148_v2 }
0x1c5d   :  { %v1972_v50 = vpop.f32.mrb[12].mxu1 }
0x1c5e   :  { %v1977_v34 = vrot.slane %v1972_v50, 6  ;;  %v1987_v20 = vadd.f32 %v1972_v50, %v4807_v53  ;;  %v2031_v59 = vadd.f32 %v1972_v50, %v4832_v14  ;;  %v3670_v12 = vpop.f32.mrb[13].mxu1 }
0x1c60   :  { %v1979_v11 = vadd.f32 %v1977_v34, %v4844_v24  ;;  %v1989_v32 = vrot.slane %v1987_v20, 6  ;;  %v2023_v21 = vadd.f32 %v4841_v36, %v1977_v34  ;;  %v2033_v15 = vrot.slane %v2031_v59, 6 }
0x1c62   :  { %2034 = vrot.lane.b32.xlu0 %v2033_v15, %s4152_s0  ;;  %1990 = vrot.lane.b32.xlu1 %v1989_v32, %s4152_s0  ;;  %v1980_v16 = vadd.f32 %v1979_v11, %v4793_v54  ;;  %v2024_v17 = vadd.f32 %v2023_v21, %v4805_v49  ;;  %v2007_v11 = vrot.slane %v4878_v57, 6 }
0x1c64   :  { %v3524_v22 = vmul.f32 -1.442695, %v1980_v16  ;;  %v3525_v52 = vmul.f32 -1.442695, %v2024_v17 }
0x1c66   :  { %3910 = vpow2.f32 %v3524_v22 }
0x1c67   :  { %3912 = vpow2.f32 %v3525_v52  ;;  %v2017_v52 = vmul.f32 %v4878_v57, %v4479_v38 }
0x1c70   :  { %v3911_v46 = vpop.eup %3910 }
0x1c71   :  { %v3913_v35 = vpop.eup %3912  ;;  %v1984_v62 = vadd.f32 1.0, %v3911_v46 }
0x1c72   :  { %v2028_v6 = vadd.f32 1.0, %v3913_v35  ;;  %v2062_v35 = vmul.f32 %v4869_v4, %v4488_v44 }
0x1c73   :  { %3914 = vrcp.f32 %v1984_v62 }
0x1c74   :  { %3916 = vrcp.f32 %v2028_v6 }
0x1c7d   :  { %v3915_v5 = vpop.eup %3914 }
0x1c7e   :  { %v3917_v51 = vpop.eup %3916  ;;  %v2000_v12 = vsub.f32 1.0, %v3915_v5  ;;  %v2009_v15 = vmul.f32 %v3915_v5, %v2007_v11 }
0x1c7f   :  { %v2044_v13 = vsub.f32 1.0, %v3917_v51 }
0x1cd4   :  { %v2035_v29 = vpop.permute.xlu0 %2034  ;;  %v1991_v8 = vpop.permute.xlu1 %1990 }
0x1cd5   :  { %v2037_v63 = vmul.f32 %v3917_v51, %v2035_v29  ;;  %v1993_v56 = vmul.f32 %v3915_v5, %v1991_v8 }
0x1cd7   :  { %2039 = vrot.lane.b32.xlu0 %v2037_v63, %s4150_s2  ;;  %1995 = vrot.lane.b32.xlu1 %v1993_v56, %s4150_s2 }
0x1cdb   :  { %2051 = vrot.lane.b32.xlu1 %v2050_v61, %s4158_s20 }
0x1d49   :  { %v2040_v42 = vpop.permute.xlu0 %2039  ;;  %v1996_v18 = vpop.permute.xlu1 %1995 }
0x1d4a   :  { %v2042_v47 = vadd.f32 %v2040_v42, %v4853_v48  ;;  %v1998_v26 = vadd.f32 %v1996_v18, %v4857_v23 }
0x1d4c   :  { %3918 = vtanh.f32 %v2042_v47 }
0x1d4d   :  { %3920 = vtanh.f32 %v1998_v26  ;;  %v2052_v7 = vpop.permute.xlu1 %2051 }
0x1d4e   :  { %v2054_v34 = vmul.f32 %v3917_v51, %v2052_v7 }
0x1d56   :  { %v3919_v60 = vpop.eup %3918 }
0x1d57   :  { %2046 = vrot.lane.b32.xlu0 %v3919_v60, %s4153_s6  ;;  %v3921_v28 = vpop.eup %3920 }
0x1d5b   :  { %2002 = vrot.lane.b32.xlu0 %v3921_v28, %s4153_s6 }
0x1dc9   :  { %v2047_v50 = vpop.permute.xlu0 %2046 }
0x1dca   :  { %v2049_v20 = vmul.f32 %v2047_v50, %v2044_v13 }
0x1dcc   :  { %v2055_v59 = vadd.f32 %v2054_v34, %v2049_v20 }
0x1dcd   :  { %v2003_v32 = vpop.permute.xlu0 %2002 }
0x1dce   :  { %v2057_v21 = vrot.slane %v2055_v59, 4  ;;  %v2005_v16 = vmul.f32 %v2003_v32, %v2000_v12 }
0x1dd0   :  { %v2010_v17 = vadd.f32 %v2009_v15, %v2005_v16  ;;  %2058 = vrot.lane.b32.xlu1 %v2057_v21, %s4156_s19 }
0x1dd2   :  { %v2012_v22 = vrot.slane %v2010_v17, 2 }
0x1dd4   :  { %2013 = vrot.lane.b32.xlu0 %v2012_v22, %s4153_s6  ;;  %2019 = vrot.lane.b32.xlu1 %v2017_v52, %s4153_s6 }
0x1e42   :  { %v2059_v46 = vpop.permute.xlu1 %2058 }
0x1e43   :  { %v4913_v62 = vmul.f32 %v2059_v46, %v4484_v40 }
0x1e45   :  { %v4916_v6 = vadd.f32 %v2062_v35, %v4913_v62 }
0x1e46   :  { %v2014_v5 = vpop.permute.xlu0 %2013  ;;  %v2020_v29 = vpop.permute.xlu1 %2019 }
0x1e47   :  { %v4919_v51 = vmul.f32 %v2014_v5, %v4486_v41  ;;  %v2065_v57 = vrot.slane %v4916_v6, 6 }
0x1e49   :  { %v4923_v8 = vadd.f32 %v2020_v29, %v4919_v51 }
0x1e4b   :  { %v2067_v63 = vsel %vm391_vm2, %v4923_v8, %v2065_v57  ;;  %v2172_v22 = vrot.slane %v4923_v8, 4 }
0x1e4c   :  { %3674 = vmatmul.mubr.msk.f32.vlgmr.msra.gmra.mrb[10].mxu0 %vm201_vm3, %v2067_v63 }
0x1e4d   :  { %3682 = vmatpush3.msra.mxu0 %v4772_v45  ;;  %3683 = vmatprep.mubr.msk.f32.mxu0 %vm4149_vm0, %v4148_v2 }
0x1e4e   :  { %3691 = vmatprep.subr.mxu0 %v4148_v2 }
0x1f1f   :  { %v2137_v4 = vpop.f32.mrb[10].mxu0 }
0x1f20   :  { %v2142_v56 = vrot.slane %v2137_v4, 4  ;;  %v2152_v61 = vadd.f32 %v2137_v4, %v4807_v53  ;;  %v2186_v42 = vadd.f32 %v4841_v36, %v2137_v4  ;;  %v2194_v18 = vadd.f32 %v2137_v4, %v4832_v14  ;;  %v3675_v47 = vpop.f32.mrb[11].mxu0 }
0x1f22   :  { %v2144_v26 = vadd.f32 %v2142_v56, %v4844_v24  ;;  %v2154_v60 = vrot.slane %v2152_v61, 4  ;;  %2196 = vrot.lane.b32.xlu0 %v2194_v18, %s4152_s0  ;;  %v2187_v28 = vadd.f32 %v2186_v42, %v4805_v49 }
0x1f24   :  { %2155 = vrot.lane.b32.xlu1 %v2154_v60, %s4152_s0  ;;  %v2145_v7 = vadd.f32 %v2144_v26, %v4793_v54  ;;  %v3528_v13 = vmul.f32 -1.442695, %v2187_v28 }
0x1f26   :  { %v3527_v50 = vmul.f32 -1.442695, %v2145_v7  ;;  %3922 = vpow2.f32 %v3528_v13 }
0x1f28   :  { %3924 = vpow2.f32 %v3527_v50 }
0x1f30   :  { %v3923_v34 = vpop.eup %3922 }
0x1f31   :  { %v2191_v59 = vadd.f32 1.0, %v3923_v34 }
0x1f32   :  { %v3925_v20 = vpop.eup %3924 }
0x1f33   :  { %v2149_v12 = vadd.f32 1.0, %v3925_v20  ;;  %3926 = vrcp.f32 %v2191_v59  ;;  %v2223_v59 = vmul.f32 %v4916_v6, %v4539_v25 }
0x1f35   :  { %3928 = vrcp.f32 %v2149_v12 }
0x1f3d   :  { %v3927_v11 = vpop.eup %3926 }
0x1f3f   :  { %v3929_v15 = vpop.eup %3928 }
0x1f40   :  { %v2165_v26 = vsub.f32 1.0, %v3929_v15 }
0x1f94   :  { %v2197_v32 = vpop.permute.xlu0 %2196 }
0x1f95   :  { %v2199_v21 = vmul.f32 %v3927_v11, %v2197_v32 }
0x1f96   :  { %v2156_v16 = vpop.permute.xlu1 %2155 }
0x1f97   :  { %v2158_v17 = vmul.f32 %v3929_v15, %v2156_v16  ;;  %2201 = vrot.lane.b32.xlu0 %v2199_v21, %s4150_s2  ;;  %v2184_v21 = vmul.f32 %v4923_v8, %v4550_v33 }
0x1f99   :  { %2160 = vrot.lane.b32.xlu1 %v2158_v17, %s4150_s2 }
0x1f9d   :  { %2212 = vrot.lane.b32.xlu1 %v2065_v57, %s4158_s20  ;;  %v2206_v57 = vsub.f32 1.0, %v3927_v11 }
0x1fa1   :  { %2173 = vrot.lane.b32.xlu1 %v2172_v22, %s4146_s23 }
0x2009   :  { %v2202_v52 = vpop.permute.xlu0 %2201 }
0x200a   :  { %v2204_v46 = vadd.f32 %v2202_v52, %v4853_v48 }
0x200b   :  { %v2161_v35 = vpop.permute.xlu1 %2160 }
0x200c   :  { %3930 = vtanh.f32 %v2204_v46  ;;  %v2163_v5 = vadd.f32 %v2161_v35, %v4857_v23 }
0x200e   :  { %3932 = vtanh.f32 %v2163_v5 }
0x200f   :  { %v2213_v4 = vpop.permute.xlu1 %2212 }
0x2010   :  { %v2215_v61 = vmul.f32 %v3927_v11, %v2213_v4 }
0x2013   :  { %v2174_v18 = vpop.permute.xlu1 %2173 }
0x2014   :  { %v2176_v28 = vmul.f32 %v3929_v15, %v2174_v18 }
0x2016   :  { %v3931_v29 = vpop.eup %3930 }
0x2017   :  { %2208 = vrot.lane.b32.xlu0 %v3931_v29, %s4153_s6 }
0x2018   :  { %v3933_v63 = vpop.eup %3932 }
0x201b   :  { %2167 = vrot.lane.b32.xlu0 %v3933_v63, %s4153_s6 }
0x2089   :  { %v2209_v56 = vpop.permute.xlu0 %2208 }
0x208a   :  { %v2211_v42 = vmul.f32 %v2209_v56, %v2206_v57 }
0x208c   :  { %v2216_v47 = vadd.f32 %v2215_v61, %v2211_v42 }
0x208d   :  { %v2168_v60 = vpop.permute.xlu0 %2167 }
0x208e   :  { %v2218_v7 = vrot.slane %v2216_v47, 2  ;;  %v2170_v13 = vmul.f32 %v2168_v60, %v2165_v26 }
0x2090   :  { %v2177_v50 = vadd.f32 %v2176_v28, %v2170_v13  ;;  %2219 = vrot.lane.b32.xlu0 %v2218_v7, %s4156_s19 }
0x2092   :  { %v2179_v34 = vrot.slane %v2177_v50, 4 }
0x2094   :  { %2180 = vrot.lane.b32.xlu1 %v2179_v34, %s4153_s6 }
0x2102   :  { %v2220_v20 = vpop.permute.xlu0 %2219 }
0x2103   :  { %v4954_v12 = vmul.f32 %v2220_v20, %v4543_v30 }
0x2105   :  { %v2224_v11 = vadd.f32 %v2223_v59, %v4954_v12 }
0x2106   :  { %v2181_v32 = vpop.permute.xlu1 %2180 }
0x2107   :  { %v4960_v15 = vmul.f32 %v2181_v32, %v4541_v27  ;;  %v2226_v16 = vrot.slane %v2224_v11, 6 }
0x2109   :  { %v4963_v17 = vadd.f32 %v2184_v21, %v4960_v15 }
0x210b   :  { %v2228_v22 = vsel %vm391_vm2, %v4963_v17, %v2226_v16  ;;  %v2333_v59 = vrot.slane %v4963_v17, 2 }
0x210c   :  { %3679 = vmatmul.mubr.msk.f32.vlgmr.msra.gmra.mrb[14].mxu1 %vm201_vm3, %v2228_v22 }
0x210d   :  { %3687 = vmatpush3.msra.mxu1 %v4772_v45  ;;  %3688 = vmatprep.mubr.msk.f32.mxu1 %vm4149_vm0, %v4148_v2 }
0x210e   :  { %3696 = vmatprep.subr.mxu1 %v4148_v2 }
0x21df   :  { %v2298_v6 = vpop.f32.mrb[14].mxu1 }
0x21e0   :  { %v2303_v8 = vrot.slane %v2298_v6, 2  ;;  %v2313_v52 = vadd.f32 %v2298_v6, %v4807_v53  ;;  %v2355_v46 = vadd.f32 %v2298_v6, %v4832_v14  ;;  %v3680_v35 = vpop.f32.mrb[15].mxu1 }
0x21e2   :  { %v2305_v5 = vadd.f32 %v2303_v8, %v4844_v24  ;;  %v2315_v29 = vrot.slane %v2313_v52, 2  ;;  %v2347_v63 = vadd.f32 %v4841_v36, %v2303_v8  ;;  %v2357_v4 = vrot.slane %v2355_v46, 2 }
0x21e3   :  { %v2380_v52 = vmul.f32 %v2224_v11, %v4596_v10 }
0x21e4   :  { %2358 = vrot.lane.b32.xlu1 %v2357_v4, %s4152_s0  ;;  %2316 = vrot.lane.b32.xlu0 %v2315_v29, %s4152_s0  ;;  %v2306_v57 = vadd.f32 %v2305_v5, %v4793_v54  ;;  %v2348_v56 = vadd.f32 %v2347_v63, %v4805_v49 }
0x21e6   :  { %v3530_v61 = vmul.f32 -1.442695, %v2306_v57  ;;  %v3531_v42 = vmul.f32 -1.442695, %v2348_v56 }
0x21e8   :  { %3934 = vpow2.f32 %v3530_v61 }
0x21e9   :  { %3936 = vpow2.f32 %v3531_v42 }
0x21f2   :  { %v3935_v18 = vpop.eup %3934 }
0x21f3   :  { %v3937_v47 = vpop.eup %3936  ;;  %v2310_v26 = vadd.f32 1.0, %v3935_v18 }
0x21f4   :  { %v2352_v60 = vadd.f32 1.0, %v3937_v47 }
0x21f5   :  { %3938 = vrcp.f32 %v2310_v26 }
0x21f6   :  { %3940 = vrcp.f32 %v2352_v60 }
0x21ff   :  { %v3939_v28 = vpop.eup %3938 }
0x2200   :  { %v3941_v7 = vpop.eup %3940  ;;  %v2326_v35 = vsub.f32 1.0, %v3939_v28 }
0x2256   :  { %v2359_v13 = vpop.permute.xlu1 %2358  ;;  %v2317_v50 = vpop.permute.xlu0 %2316 }
0x2257   :  { %v2361_v34 = vmul.f32 %v3941_v7, %v2359_v13  ;;  %v2319_v20 = vmul.f32 %v3939_v28, %v2317_v50 }
0x2259   :  { %2363 = vrot.lane.b32.xlu1 %v2361_v34, %s4150_s2  ;;  %2321 = vrot.lane.b32.xlu0 %v2319_v20, %s4150_s2 }
0x225d   :  { %2334 = vrot.lane.b32.xlu1 %v2333_v59, %s4146_s23 }
0x2261   :  { %2374 = vrot.lane.b32.xlu1 %v2224_v11, %s4158_s20 }
0x22cb   :  { %v2322_v32 = vpop.permute.xlu0 %2321  ;;  %v2364_v21 = vpop.permute.xlu1 %2363 }
0x22cc   :  { %v2324_v16 = vadd.f32 %v2322_v32, %v4857_v23  ;;  %v2366_v22 = vadd.f32 %v2364_v21, %v4853_v48  ;;  %v2368_v48 = vsub.f32 1.0, %v3941_v7 }
0x22ce   :  { %3942 = vtanh.f32 %v2324_v16 }
0x22cf   :  { %3944 = vtanh.f32 %v2366_v22  ;;  %v2335_v46 = vpop.permute.xlu1 %2334 }
0x22d0   :  { %v2337_v29 = vmul.f32 %v3939_v28, %v2335_v46 }
0x22d3   :  { %v2375_v23 = vpop.permute.xlu1 %2374 }
0x22d4   :  { %v2377_v56 = vmul.f32 %v3941_v7, %v2375_v23  ;;  %v2345_v7 = vmul.f32 %v4963_v17, %v4612_v31 }
0x22d8   :  { %v3943_v6 = vpop.eup %3942 }
0x22d9   :  { %2328 = vrot.lane.b32.xlu0 %v3943_v6, %s4153_s6  ;;  %v3945_v8 = vpop.eup %3944 }
0x22dd   :  { %2370 = vrot.lane.b32.xlu0 %v3945_v8, %s4153_s6 }
0x22e1   :  { %2382 = vrot.lane.b32.xlu0 %v2380_v52, %s4158_s20 }
0x234b   :  { %v2329_v5 = vpop.permute.xlu0 %2328 }
0x234c   :  { %v2331_v63 = vmul.f32 %v2329_v5, %v2326_v35 }
0x234e   :  { %v2338_v4 = vadd.f32 %v2337_v29, %v2331_v63 }
0x234f   :  { %v2371_v57 = vpop.permute.xlu0 %2370 }
0x2350   :  { %v2340_v61 = vrot.slane %v2338_v4, 6  ;;  %v2373_v42 = vmul.f32 %v2371_v57, %v2368_v48 }
0x2352   :  { %v2378_v18 = vadd.f32 %v2377_v56, %v2373_v42  ;;  %2341 = vrot.lane.b32.xlu1 %v2340_v61, %s4153_s6 }
0x2353   :  { %v2383_v11 = vpop.permute.xlu0 %2382 }
0x2354   :  { %v4993_v47 = vmul.f32 %v2378_v18, %v4604_v43 }
0x2356   :  { %v2385_v26 = vadd.f32 %v2383_v11, %v4993_v47 }
0x2358   :  { %v2387_v60 = vrot.slane %v2385_v26, 6  ;;  %v2546_v11 = vmul.f32 %v2385_v26, %v4612_v31 }
0x235a   :  { %2388 = vrot.lane.b32.xlu0 %v2387_v60, %s4156_s19  ;;  %v5023_v60 = vadd.f32 %v4805_v49, %v4844_v24 }
0x23c4   :  { %v2342_v28 = vpop.permute.xlu1 %2341 }
0x23c5   :  { %v4998_v13 = vmul.f32 %v2342_v28, %v4614_v58 }
0x23c7   :  { %v2346_v50 = vadd.f32 %v2345_v7, %v4998_v13 }
0x23cc   :  { %v2389_v34 = vpop.permute.xlu0 %2388 }
0x23cd   :  { %v2391_v20 = vsel %vm391_vm2, %v2346_v50, %v2389_v34 }
0x23ce   :  { %3684 = vmatmul.mubr.msk.f32.vlgmr.msra.gmra.mrb[12].mxu0 %vm201_vm3, %v2391_v20 }
0x23cf   :  { %3692 = vmatpush3.msra.mxu0 %v4772_v45  ;;  %3693 = vmatprep.mubr.msk.f32.mxu0 %vm4149_vm0, %v4148_v2 }
0x24a1   :  { %v2461_v59 = vpop.f32.mrb[12].mxu0 }
0x24a2   :  { %v2465_v32 = vadd.f32 %v4841_v36, %v2461_v59  ;;  %v2506_v21 = vrot.slane %v2461_v59, 4  ;;  %v2517_v16 = vadd.f32 %v2461_v59, %v4832_v14  ;;  %v3685_v22 = vpop.f32.mrb[13].mxu0  ;;  %v2474_v8 = vadd.f32 %v2461_v59, %v4807_v53 }
0x24a3   :  { %v5029_v59 = vadd.f32 %v4841_v36, %v4793_v54 }
0x24a4   :  { %v2508_v17 = vadd.f32 %v2506_v21, %v4844_v24  ;;  %v2519_v6 = vrot.slane %v2517_v16, 4  ;;  %v2466_v46 = vadd.f32 %v2465_v32, %v4793_v54  ;;  %v2536_v32 = vrot.slane %v2385_v26, 2 }
0x24a6   :  { %2520 = vrot.lane.b32.xlu1 %v2519_v6, %s4152_s0  ;;  %v2509_v52 = vadd.f32 %v2508_v17, %v4805_v49  ;;  %v3533_v5 = vmul.f32 -1.442695, %v2466_v46  ;;  %v2499_v46 = vmul.f32 %v2346_v50, %v4596_v10 }
0x24a8   :  { %v3534_v35 = vmul.f32 -1.442695, %v2509_v52 }
0x24aa   :  { %2476 = vrot.lane.b32.xlu1 %v2474_v8, %s4152_s0  ;;  %3946 = vpow2.f32 %v3534_v35 }
0x24ab   :  { %3948 = vpow2.f32 %v3533_v5 }
0x24b4   :  { %v3947_v29 = vpop.eup %3946 }
0x24b5   :  { %v2513_v63 = vadd.f32 1.0, %v3947_v29  ;;  %v3949_v23 = vpop.eup %3948 }
0x24b6   :  { %v2470_v4 = vadd.f32 1.0, %v3949_v23 }
0x24b7   :  { %3950 = vrcp.f32 %v2513_v63 }
0x24b8   :  { %3952 = vrcp.f32 %v2470_v4 }
0x24c1   :  { %v3951_v48 = vpop.eup %3950 }
0x24c2   :  { %v3953_v61 = vpop.eup %3952  ;;  %v2530_v21 = vsub.f32 1.0, %v3951_v48  ;;  %v2538_v22 = vmul.f32 %v3951_v48, %v2536_v32 }
0x24c3   :  { %v2486_v4 = vsub.f32 1.0, %v3953_v61 }
0x2518   :  { %v2521_v57 = vpop.permute.xlu1 %2520 }
0x2519   :  { %v2523_v56 = vmul.f32 %v3951_v48, %v2521_v57 }
0x251b   :  { %2525 = vrot.lane.b32.xlu0 %v2523_v56, %s4150_s2 }
0x251c   :  { %v2477_v42 = vpop.permute.xlu1 %2476 }
0x251d   :  { %v2479_v18 = vmul.f32 %v3953_v61, %v2477_v42 }
0x251f   :  { %2481 = vrot.lane.b32.xlu1 %v2479_v18, %s4150_s2 }
0x2523   :  { %2548 = vrot.lane.b32.xlu1 %v2546_v11, %s4156_s19 }
0x2527   :  { %2493 = vrot.lane.b32.xlu1 %v2346_v50, %s4146_s23 }
0x258d   :  { %v2526_v28 = vpop.permute.xlu0 %2525 }
0x258e   :  { %v2528_v7 = vadd.f32 %v2526_v28, %v5023_v60 }
0x2590   :  { %3954 = vtanh.f32 %v2528_v7 }
0x2591   :  { %v2482_v20 = vpop.permute.xlu1 %2481 }
0x2592   :  { %v2484_v31 = vadd.f32 %v2482_v20, %v5029_v59 }
0x2594   :  { %3956 = vtanh.f32 %v2484_v31 }
0x2595   :  { %v2549_v26 = vpop.permute.xlu1 %2548 }
0x2599   :  { %v2494_v48 = vpop.permute.xlu1 %2493 }
0x259a   :  { %v3955_v34 = vpop.eup %3954  ;;  %v2496_v56 = vmul.f32 %v3953_v61, %v2494_v48 }
0x259b   :  { %2532 = vrot.lane.b32.xlu0 %v3955_v34, %s4153_s6 }
0x259e   :  { %v3957_v52 = vpop.eup %3956 }
0x260d   :  { %v2533_v16 = vpop.permute.xlu0 %2532 }
0x260e   :  { %v2535_v17 = vmul.f32 %v2533_v16, %v2530_v21 }
0x2610   :  { %v2539_v6 = vadd.f32 %v2538_v22, %v2535_v17 }
0x2612   :  { %v2541_v8 = vrot.slane %v2539_v6, 6 }
0x2614   :  { %2542 = vrot.lane.b32.xlu0 %v2541_v8, %s4156_s19 }
0x2618   :  { %2488 = vrot.lane.b32.xlu0 %v3957_v52, %s4153_s6 }
0x261c   :  { %2501 = vrot.lane.b32.xlu0 %v2499_v46, %s4146_s23 }
0x2686   :  { %v2543_v35 = vpop.permute.xlu0 %2542 }
0x2687   :  { %v5037_v5 = vmul.f32 %v2543_v35, %v4614_v58 }
0x2689   :  { %v5040_v29 = vadd.f32 %v2549_v26, %v5037_v5 }
0x268a   :  { %v2489_v23 = vpop.permute.xlu0 %2488 }
0x268b   :  { %v2553_v63 = vrot.slane %v5040_v29, 6  ;;  %v2491_v57 = vmul.f32 %v2489_v23, %v2486_v4 }
0x268d   :  { %2554 = vrot.lane.b32.xlu1 %v2553_v63, %s4146_s23  ;;  %v2497_v10 = vadd.f32 %v2496_v56, %v2491_v57  ;;  %v2707_v56 = vrot.slane %v5040_v29, 4 }
0x268e   :  { %v2502_v42 = vpop.permute.xlu0 %2501 }
0x268f   :  { %v5045_v50 = vmul.f32 %v2497_v10, %v4604_v43 }
0x2691   :  { %v5048_v58 = vadd.f32 %v2502_v42, %v5045_v50 }
0x26ff   :  { %v2555_v18 = vpop.permute.xlu1 %2554 }
0x2700   :  { %v2557_v11 = vsel %vm391_vm2, %v5048_v58, %v2555_v18 }
0x2701   :  { %2559 = vrot.lane.b32.xlu0 %v2557_v11, %s4153_s6 }
0x2773   :  { %v2560_v28 = vpop.permute.xlu0 %2559 }
0x2774   :  { %3689 = vmatmul.mubr.msk.f32.vlgmr.msra.gmra.mrb[16].mxu1 %vm201_vm3, %v2560_v28 }
0x2775   :  { %3697 = vmatpush3.msra.mxu1 %v4772_v45  ;;  %3698 = vmatprep.mubr.msk.f32.mxu1 %vm4149_vm0, %v4148_v2 }
0x2847   :  { %v2629_v43 = vpop.f32.mrb[16].mxu1 }
0x2848   :  { %v2634_v61 = vrot.slane %v2629_v43, 6  ;;  %v2644_v7 = vadd.f32 %v2629_v43, %v4807_v53  ;;  %v2688_v34 = vadd.f32 %v2629_v43, %v4832_v14  ;;  %v3690_v20 = vpop.f32.mrb[17].mxu1 }
0x284a   :  { %v2636_v31 = vadd.f32 %v4841_v36, %v2634_v61  ;;  %v2646_v32 = vrot.slane %v2644_v7, 6  ;;  %v2680_v21 = vadd.f32 %v2634_v61, %v4844_v24  ;;  %v2690_v16 = vrot.slane %v2688_v34, 6 }
0x284c   :  { %2691 = vrot.lane.b32.xlu1 %v2690_v16, %s4152_s0  ;;  %2647 = vrot.lane.b32.xlu0 %v2646_v32, %s4152_s0  ;;  %v2637_v45 = vadd.f32 %v2636_v31, %v4793_v54  ;;  %v2681_v22 = vadd.f32 %v2680_v21, %v4805_v49  ;;  %v2664_v32 = vrot.slane %v5048_v58, 6 }
0x284e   :  { %v3536_v17 = vmul.f32 -1.442695, %v2637_v45  ;;  %v3537_v6 = vmul.f32 -1.442695, %v2681_v22 }
0x2850   :  { %3958 = vpow2.f32 %v3536_v17 }
0x2851   :  { %3960 = vpow2.f32 %v3537_v6 }
0x285a   :  { %v3959_v8 = vpop.eup %3958 }
0x285b   :  { %v3961_v52 = vpop.eup %3960  ;;  %v2641_v46 = vadd.f32 1.0, %v3959_v8 }
0x285c   :  { %v2685_v35 = vadd.f32 1.0, %v3961_v52  ;;  %v2674_v52 = vmul.f32 %v5048_v58, %v4539_v25 }
0x285d   :  { %3962 = vrcp.f32 %v2641_v46 }
0x285e   :  { %3964 = vrcp.f32 %v2685_v35 }
0x2867   :  { %v3963_v26 = vpop.eup %3962 }
0x2868   :  { %v3965_v63 = vpop.eup %3964  ;;  %v2657_v16 = vsub.f32 1.0, %v3963_v26  ;;  %v2666_v17 = vmul.f32 %v3963_v26, %v2664_v32 }
0x2869   :  { %v2701_v7 = vsub.f32 1.0, %v3965_v63 }
0x28be   :  { %v2692_v23 = vpop.permute.xlu1 %2691  ;;  %v2648_v4 = vpop.permute.xlu0 %2647 }
0x28bf   :  { %v2694_v48 = vmul.f32 %v3965_v63, %v2692_v23  ;;  %v2650_v57 = vmul.f32 %v3963_v26, %v2648_v4 }
0x28c1   :  { %2696 = vrot.lane.b32.xlu1 %v2694_v48, %s4150_s2  ;;  %2652 = vrot.lane.b32.xlu0 %v2650_v57, %s4150_s2 }
0x28c5   :  { %2708 = vrot.lane.b32.xlu0 %v2707_v56, %s4158_s20 }
0x2933   :  { %v2697_v10 = vpop.permute.xlu1 %2696  ;;  %v2653_v42 = vpop.permute.xlu0 %2652 }
0x2934   :  { %v2699_v18 = vadd.f32 %v2697_v10, %v5023_v60  ;;  %v2655_v11 = vadd.f32 %v2653_v42, %v5029_v59 }
0x2936   :  { %3966 = vtanh.f32 %v2699_v18 }
0x2937   :  { %3968 = vtanh.f32 %v2655_v11  ;;  %v2709_v61 = vpop.permute.xlu0 %2708 }
0x2938   :  { %v2711_v20 = vmul.f32 %v3965_v63, %v2709_v61  ;;  %v2719_v63 = vmul.f32 %v5040_v29, %v4550_v33 }
0x2940   :  { %v3967_v28 = vpop.eup %3966 }
0x2941   :  { %2703 = vrot.lane.b32.xlu1 %v3967_v28, %s4153_s6  ;;  %v3969_v43 = vpop.eup %3968 }
0x2945   :  { %2659 = vrot.lane.b32.xlu1 %v3969_v43, %s4153_s6 }
0x29b3   :  { %v2704_v34 = vpop.permute.xlu1 %2703 }
0x29b4   :  { %v2706_v31 = vmul.f32 %v2704_v34, %v2701_v7 }
0x29b6   :  { %v2712_v21 = vadd.f32 %v2711_v20, %v2706_v31 }
0x29b7   :  { %v2660_v45 = vpop.permute.xlu1 %2659 }
0x29b8   :  { %v2714_v22 = vrot.slane %v2712_v21, 4  ;;  %v2662_v6 = vmul.f32 %v2660_v45, %v2657_v16 }
0x29ba   :  { %v2667_v8 = vadd.f32 %v2666_v17, %v2662_v6  ;;  %2715 = vrot.lane.b32.xlu0 %v2714_v22, %s4156_s19 }
0x29bc   :  { %v2669_v46 = vrot.slane %v2667_v8, 2 }
0x29be   :  { %2670 = vrot.lane.b32.xlu1 %v2669_v46, %s4153_s6  ;;  %2676 = vrot.lane.b32.xlu0 %v2674_v52, %s4153_s6 }
0x2a2c   :  { %v2716_v35 = vpop.permute.xlu0 %2715 }
0x2a2d   :  { %v5082_v23 = vmul.f32 %v2716_v35, %v4541_v27 }
0x2a2f   :  { %v5085_v26 = vadd.f32 %v2719_v63, %v5082_v23 }
0x2a30   :  { %v2671_v4 = vpop.permute.xlu1 %2670  ;;  %v2677_v25 = vpop.permute.xlu0 %2676 }
0x2a31   :  { %v5088_v48 = vmul.f32 %v2671_v4, %v4543_v30  ;;  %v2722_v58 = vrot.slane %v5085_v26, 6 }
0x2a33   :  { %v5092_v57 = vadd.f32 %v2677_v25, %v5088_v48 }
0x2a35   :  { %v2724_v56 = vsel %vm391_vm2, %v5092_v57, %v2722_v58  ;;  %v2829_v8 = vrot.slane %v5092_v57, 4 }
0x2a36   :  { %3694 = vmatmul.mubr.msk.f32.vlgmr.msra.gmra.mrb[14].mxu0 %vm201_vm3, %v2724_v56 }
0x2b09   :  { %v2794_v27 = vpop.f32.mrb[14].mxu0 }
0x2b0a   :  { %v2799_v33 = vrot.slane %v2794_v27, 4  ;;  %v2809_v29 = vadd.f32 %v2794_v27, %v4807_v53  ;;  %v2843_v10 = vadd.f32 %v2794_v27, %v4844_v24  ;;  %v2851_v30 = vadd.f32 %v2794_v27, %v4832_v14  ;;  %v3695_v42 = vpop.f32.mrb[15].mxu0 }
0x2b0c   :  { %v2801_v18 = vadd.f32 %v4841_v36, %v2799_v33  ;;  %v2811_v11 = vrot.slane %v2809_v29, 4  ;;  %2853 = vrot.lane.b32.xlu1 %v2851_v30, %s4152_s0  ;;  %v2844_v28 = vadd.f32 %v2843_v10, %v4805_v49 }
0x2b0e   :  { %2812 = vrot.lane.b32.xlu0 %v2811_v11, %s4152_s0  ;;  %v2802_v43 = vadd.f32 %v2801_v18, %v4793_v54  ;;  %v3540_v61 = vmul.f32 -1.442695, %v2844_v28 }
0x2b10   :  { %v3539_v7 = vmul.f32 -1.442695, %v2802_v43  ;;  %3970 = vpow2.f32 %v3540_v61 }
0x2b12   :  { %3972 = vpow2.f32 %v3539_v7 }
0x2b1a   :  { %v3971_v34 = vpop.eup %3970 }
0x2b1b   :  { %v2848_v31 = vadd.f32 1.0, %v3971_v34 }
0x2b1c   :  { %v3973_v20 = vpop.eup %3972 }
0x2b1d   :  { %v2806_v32 = vadd.f32 1.0, %v3973_v20  ;;  %3974 = vrcp.f32 %v2848_v31  ;;  %v2880_v20 = vmul.f32 %v5085_v26, %v4479_v38 }
0x2b1f   :  { %3976 = vrcp.f32 %v2806_v32 }
0x2b27   :  { %v3975_v21 = vpop.eup %3974 }
0x2b29   :  { %v3977_v22 = vpop.eup %3976 }
0x2b2a   :  { %v2822_v42 = vsub.f32 1.0, %v3977_v22 }
0x2b7e   :  { %v2854_v16 = vpop.permute.xlu1 %2853 }
0x2b7f   :  { %v2856_v45 = vmul.f32 %v3975_v21, %v2854_v16  ;;  %v2841_v16 = vmul.f32 %v5092_v57, %v4488_v44 }
0x2b80   :  { %v2813_v17 = vpop.permute.xlu0 %2812 }
0x2b81   :  { %v2815_v6 = vmul.f32 %v3977_v22, %v2813_v17  ;;  %2858 = vrot.lane.b32.xlu1 %v2856_v45, %s4150_s2 }
0x2b83   :  { %2817 = vrot.lane.b32.xlu0 %v2815_v6, %s4150_s2 }
0x2b87   :  { %2869 = vrot.lane.b32.xlu0 %v2722_v58, %s4158_s20  ;;  %v2863_v58 = vsub.f32 1.0, %v3975_v21 }
0x2b8b   :  { %2830 = vrot.lane.b32.xlu0 %v2829_v8, %s4146_s23 }
0x2bf3   :  { %v2859_v52 = vpop.permute.xlu1 %2858 }
0x2bf4   :  { %v2861_v46 = vadd.f32 %v2859_v52, %v5023_v60 }
0x2bf5   :  { %v2818_v35 = vpop.permute.xlu0 %2817 }
0x2bf6   :  { %3978 = vtanh.f32 %v2861_v46  ;;  %v2820_v63 = vadd.f32 %v2818_v35, %v5029_v59 }
0x2bf8   :  { %3980 = vtanh.f32 %v2820_v63 }
0x2bf9   :  { %v2870_v56 = vpop.permute.xlu0 %2869 }
0x2bfa   :  { %v2872_v33 = vmul.f32 %v3975_v21, %v2870_v56 }
0x2bfd   :  { %v2831_v10 = vpop.permute.xlu0 %2830 }
0x2bfe   :  { %v2833_v11 = vmul.f32 %v3977_v22, %v2831_v10 }
0x2c00   :  { %v3979_v4 = vpop.eup %3978 }
0x2c01   :  { %2865 = vrot.lane.b32.xlu1 %v3979_v4, %s4153_s6 }
0x2c02   :  { %v3981_v25 = vpop.eup %3980 }
0x2c05   :  { %2824 = vrot.lane.b32.xlu1 %v3981_v25, %s4153_s6 }
0x2c73   :  { %v2866_v27 = vpop.permute.xlu1 %2865 }
0x2c74   :  { %v2868_v29 = vmul.f32 %v2866_v27, %v2863_v58 }
0x2c76   :  { %v2873_v30 = vadd.f32 %v2872_v33, %v2868_v29 }
0x2c77   :  { %v2825_v18 = vpop.permute.xlu1 %2824 }
0x2c78   :  { %v2875_v28 = vrot.slane %v2873_v30, 2  ;;  %v2827_v43 = vmul.f32 %v2825_v18, %v2822_v42 }
0x2c7a   :  { %v2834_v61 = vadd.f32 %v2833_v11, %v2827_v43  ;;  %2876 = vrot.lane.b32.xlu1 %v2875_v28, %s4156_s19 }
0x2c7c   :  { %v2836_v7 = vrot.slane %v2834_v61, 4 }
0x2c7e   :  { %2837 = vrot.lane.b32.xlu0 %v2836_v7, %s4153_s6 }
0x2cec   :  { %v2877_v34 = vpop.permute.xlu1 %2876 }
0x2ced   :  { %v2879_v31 = vmul.f32 %v2877_v34, %v4486_v41 }
0x2cef   :  { %v2881_v32 = vadd.f32 %v2880_v20, %v2879_v31 }
0x2cf0   :  { %v2838_v21 = vpop.permute.xlu0 %2837 }
0x2cf1   :  { %v5122_v45 = vmul.f32 %v2838_v21, %v4484_v40  ;;  %v2883_v22 = vrot.slane %v2881_v32, 6 }
0x2cf3   :  { %v2842_v17 = vadd.f32 %v2841_v16, %v5122_v45 }
0x2cf5   :  { %v2885_v6 = vsel %vm391_vm2, %v2842_v17, %v2883_v22 }
0x2cf6   :  { %3699 = vmatmul.mubr.msk.f32.vlgmr.msra.gmra.mrb[18].mxu1 %vm201_vm3, %v2885_v6 }
0x2cf7   :  { %3712 = vmatprep.mubr.msk.f32.mxu1 %vm4149_vm0, %v4148_v2 }
0x2dc9   :  { %v2955_v38 = vpop.f32.mrb[18].mxu1 }
0x2dca   :  { %v2960_v41 = vrot.slane %v2955_v38, 2  ;;  %v2970_v26 = vadd.f32 %v2955_v38, %v4807_v53  ;;  %v3010_v8 = vadd.f32 %v2955_v38, %v4832_v14  ;;  %v3700_v44 = vpop.f32.mrb[19].mxu1 }
0x2dcc   :  { %v2962_v40 = vadd.f32 %v4841_v36, %v2960_v41  ;;  %v2972_v57 = vrot.slane %v2970_v26, 2  ;;  %v3002_v52 = vadd.f32 %v2960_v41, %v4844_v24  ;;  %v3012_v46 = vrot.slane %v3010_v8, 2 }
0x2dce   :  { %3013 = vrot.lane.b32.xlu0 %v3012_v46, %s4152_s0  ;;  %2973 = vrot.lane.b32.xlu1 %v2972_v57, %s4152_s0  ;;  %v2963_v35 = vadd.f32 %v2962_v40, %v4793_v54  ;;  %v3003_v63 = vadd.f32 %v3002_v52, %v4805_v49  ;;  %v2990_v54 = vrot.slane %v2842_v17, 2 }
0x2dd0   :  { %v3542_v4 = vmul.f32 -1.442695, %v2963_v35  ;;  %v3543_v25 = vmul.f32 -1.442695, %v3003_v63 }
0x2dd2   :  { %3982 = vpow2.f32 %v3542_v4 }
0x2dd3   :  { %3984 = vpow2.f32 %v3543_v25 }
0x2ddc   :  { %v3983_v53 = vpop.eup %3982 }
0x2ddd   :  { %v3985_v14 = vpop.eup %3984  ;;  %v2967_v56 = vadd.f32 1.0, %v3983_v53 }
0x2dde   :  { %v3007_v36 = vadd.f32 1.0, %v3985_v14 }
0x2ddf   :  { %3986 = vrcp.f32 %v2967_v56 }
0x2de0   :  { %3988 = vrcp.f32 %v3007_v36 }
0x2de9   :  { %v3987_v24 = vpop.eup %3986 }
0x2dea   :  { %v3989_v58 = vpop.eup %3988 }
0x2deb   :  { %v3023_v7 = vsub.f32 1.0, %v3989_v58 }
0x2e40   :  { %v3014_v27 = vpop.permute.xlu0 %3013  ;;  %v2974_v33 = vpop.permute.xlu1 %2973 }
0x2e41   :  { %v3016_v29 = vmul.f32 %v3989_v58, %v3014_v27  ;;  %v2976_v10 = vmul.f32 %v3987_v24, %v2974_v33  ;;  %v3544_v33 = vld [vmem:[#allocation2] ss:$0 sm:$0xff] }
0x2e43   :  { %3018 = vrot.lane.b32.xlu0 %v3016_v29, %s4150_s2  ;;  %2978 = vrot.lane.b32.xlu1 %v2976_v10, %s4150_s2 }
0x2e47   :  { %2991 = vrot.lane.b32.xlu0 %v2990_v54, %s4146_s23 }
0x2e4b   :  { %3029 = vrot.lane.b32.xlu0 %v2881_v32, %s4158_s20  ;;  %s4173_s20 = smov [#allocation12]  }
0x2e4f   :  { %3069 = vrot.lane.b32.xlu0 %v4954_v12, %s4146_s23  ;;  %v2983_v12 = vsub.f32 1.0, %v3987_v24 }
0x2e53   :  { %3074 = vrot.lane.b32.xlu0 %v4913_v62, %s4146_s23 }
0x2eb5   :  { %v2979_v49 = vpop.permute.xlu1 %2978  ;;  %v3019_v30 = vpop.permute.xlu0 %3018 }
0x2eb6   :  { %v2981_v42 = vadd.f32 %v2979_v49, %v5029_v59  ;;  %v3021_v18 = vadd.f32 %v3019_v30, %v5023_v60  ;;  %v3107_v60 = vld [vmem:[%s5285_s8] sm:$0xff]  ;;  %v3108_v59 = vld [vmem:[%s5285_s8 + $0x8] sm:$0xff]  ;;  %s4165_s8 = smov 4  }
0x2eb8   :  { %3990 = vtanh.f32 %v2981_v42 }
0x2eb9   :  { %3992 = vtanh.f32 %v3021_v18  ;;  %v2992_v62 = vpop.permute.xlu0 %2991 }
0x2eba   :  { %v2994_v43 = vmul.f32 %v3987_v24, %v2992_v62 }
0x2ebd   :  { %v3030_v61 = vpop.permute.xlu0 %3029 }
0x2ebe   :  { %v3032_v34 = vmul.f32 %v3989_v58, %v3030_v61 }
0x2ec1   :  { %v3070_v6 = vpop.permute.xlu0 %3069 }
0x2ec2   :  { %v3991_v11 = vpop.eup %3990  ;;  %v5187_v46 = vsel %vm201_vm3, %v5088_v48, %v3070_v6 }
0x2ec3   :  { %2985 = vrot.lane.b32.xlu1 %v3991_v11, %s4153_s6  ;;  %v3993_v28 = vpop.eup %3992  ;;  %v3093_v25 = vrot.slane %v5187_v46, 6 }
0x2ec5   :  { %v3075_v41 = vpop.permute.xlu0 %3074 }
0x2ec7   :  { %3025 = vrot.lane.b32.xlu1 %v3993_v28, %s4153_s6 }
0x2ecb   :  { %3045 = vrot.lane.b32.xlu1 %v2879_v31, %s4146_s23 }
0x2ecf   :  { %3050 = vrot.lane.b32.xlu1 %v5082_v23, %s4146_s23  ;;  %v3734_v23 = vpack.c.bf16 %v3108_v59, %v3107_v60  ;;  %v4000_v60 = vld [vmem:[%s5278_s1] sm:$0x3] }
0x2ed0   :  { %vm3197_vm7 = vcmp.gt.f32.partialorder %v4000_v60, 0.5 }
0x2ed1   :  { %3735 = vmatprep.subr.bf16.mxu0 %v3734_v23 }
0x2ed2   :  { %3737 = vmatpush3.bf16.msra.mxu0 %v3734_v23 }
0x2ed3   :  { %3036 = vrot.lane.b32.xlu1 %v4874_v1, %s4153_s6 }
0x2ed7   :  { %3055 = vrot.lane.b32.xlu1 %v5037_v5, %s4146_s23 }
0x2edb   :  { %3060 = vrot.lane.b32.xlu1 %v5045_v50, %s4153_s6 }
0x2edf   :  { %3079 = vrot.lane.b32.xlu1 %v4865_v3, %s4146_s23  ;;  %s4166_s23 = smov 5  }
0x2f35   :  { %v2986_v1 = vpop.permute.xlu1 %2985 }
0x2f36   :  { %v2988_v5 = vmul.f32 %v2986_v1, %v2983_v12 }
0x2f38   :  { %v2995_v50 = vadd.f32 %v2994_v43, %v2988_v5 }
0x2f39   :  { %v3026_v3 = vpop.permute.xlu1 %3025 }
0x2f3a   :  { %v2997_v20 = vrot.slane %v2995_v50, 6  ;;  %v3028_v31 = vmul.f32 %v3026_v3, %v3023_v7 }
0x2f3c   :  { %v3033_v32 = vadd.f32 %v3032_v34, %v3028_v31  ;;  %2998 = vrot.lane.b32.xlu0 %v2997_v20, %s4153_s6 }
0x2f3d   :  { %v3046_v16 = vpop.permute.xlu1 %3045 }
0x2f3e   :  { %v3034_v21 = vmul.f32 %v3033_v32, %v4433_v19  ;;  %v5173_v44 = vsel %vm201_vm3, %v4919_v51, %v3046_v16 }
0x2f3f   :  { %v3084_v57 = vrot.slane %v5173_v44, 6 }
0x2f40   :  { %3040 = vrot.lane.b32.xlu0 %v3034_v21, %s4164_s21 }
0x2f41   :  { %v3051_v22 = vpop.permute.xlu1 %3050 }
0x2f42   :  { %v5177_v19 = vsel %vm201_vm3, %v4960_v15, %v3051_v22  ;;  %v5195_v15 = vsel %vm201_vm3, %v5122_v45, %v3075_v41 }
0x2f43   :  { %v3087_v51 = vrot.slane %v5177_v19, 4  ;;  %v3096_v56 = vrot.slane %v5195_v15, 4 }
0x2f44   :  { %3064 = vrot.lane.b32.xlu0 %v4993_v47, %s4164_s21  ;;  %s3483_s21 = sshll.u32 %s4173_s20, 4  ;;  %s3484_s21 = int_to_ptr.vmem [resolvable:$true] %s3483_s21 }
0x2f45   :  { %v3037_v17 = vpop.permute.xlu1 %3036  ;;  %p4116_p13 = scmp.lt.s32.totalorder %s3484_s21, %s3484_s21 }
0x2f49   :  { %v3056_v38 = vpop.permute.xlu1 %3055 }
0x2f4a   :  { %v5181_v40 = vsel %vm201_vm3, %v4998_v13, %v3056_v38 }
0x2f4b   :  { %v3090_v13 = vrot.slane %v5181_v40, 2 }
0x2f4d   :  { %v3061_v26 = vpop.permute.xlu1 %3060 }
0x2f51   :  { %v3080_v63 = vpop.permute.xlu1 %3079 }
0x2fae   :  { %v2999_v8 = vpop.permute.xlu0 %2998 }
0x2faf   :  { %v3001_v47 = vmul.f32 %v2999_v8, %v4420_v0 }
0x2fb1   :  { %v5201_v4 = vsel %vm201_vm3, %v3001_v47, %v3080_v63 }
0x2fb2   :  { %v3041_v52 = vpop.permute.xlu0 %3040  ;;  %v3099_v36 = vrot.slane %v5201_v4, 2 }
0x2fb3   :  { %v5191_v35 = vsel %vm201_vm3, %v3037_v17, %v3041_v52 }
0x2fb4   :  { %v3101_v0 = vsel %vm391_vm2, %v5191_v35, %v3084_v57 }
0x2fb5   :  { %v3102_v48 = vsel %vm1642_vm4, %v3101_v0, %v3087_v51 }
0x2fb6   :  { %v3065_v53 = vpop.permute.xlu0 %3064  ;;  %v3103_v14 = vsel %vm1644_vm5, %v3102_v48, %v3090_v13  ;;  %v5294_v48 = vmov 5  }
0x2fb7   :  { %v5208_v45 = vsel %vm201_vm3, %v3061_v26, %v3065_v53  ;;  %3705 = vmatprep.mubr.msk.f32.mxu0 %vm1651_vm6, %v3103_v14  ;;  %v4172_v53 = vmov 0.0|0.0  }
0x2fb8   :  { %v3104_v24 = vsel %vm391_vm2, %v5208_v45, %v3093_v25  ;;  %v5295_v25 = vmov 6   ;;  %3738 = vmatprep.subr.bf16.mxu1 %v4172_v53  ;;  %3741 = vmatprep.subr.bf16.mxu0 %v4172_v53 }
0x2fb9   :  { %v3105_v58 = vsel %vm1642_vm4, %v3104_v24, %v3096_v56 }
0x2fba   :  { %v3106_v27 = vsel %vm1644_vm5, %v3105_v58, %v3099_v36 }
0x2fbb   :  { %3706 = vmatmul.mubr.msk.f32.vlgmr.msra.gmra.mrb[16].mxu0 %vm1651_vm6, %v3106_v27 }
0x2fbc   :  { %3719 = vmatprep.mubr.msk.f32.mxu0 %vm4149_vm0, %v4148_v2  ;;  %vm3475_vm0 = vcmask 41984  }
0x308e   :  { %v3707_v29 = vpop.f32.mrb[16].mxu0 }
0x308f   :  { %v3194_v10 = vadd.f32 %v3707_v29, %v3544_v33  ;;  %v3188_v54 = vpop.f32.mrb[17].mxu0 }
0x3090   :  { %v3189_v49 = vadd.f32 %v3544_v33, %v3188_v54 }
0x3091   :  { %3216 = vrot.lane.b32.xlu1 %v3194_v10, %s4165_s8  ;;  %v3220_v30 = vrot.slane %v3194_v10, 2  ;;  %v3225_v11 = vrot.slane %v3194_v10, 4  ;;  %v3230_v28 = vrot.slane %v3194_v10, 6 }
0x3092   :  { %v3205_v42 = vrot.slane %v3189_v49, 4  ;;  %v3200_v18 = vrot.slane %v3189_v49, 2  ;;  %v3210_v2 = vrot.slane %v3189_v49, 6  ;;  %v3198_v23 = vsel %vm3197_vm7, %v3189_v49, -100.0 }
0x3093   :  { %3221 = vrot.lane.b32.xlu0 %v3220_v30, %s4166_s23 }
0x3095   :  { %3206 = vrot.lane.b32.xlu1 %v3205_v42, %s4167_s16 }
0x3097   :  { %3201 = vrot.lane.b32.xlu0 %v3200_v18, %s4168_s22 }
0x3099   :  { %3226 = vrot.lane.b32.xlu1 %v3225_v11, %s4169_s9 }
0x309b   :  { %3211 = vrot.lane.b32.xlu0 %v3210_v2, %s4170_s25 }
0x309f   :  { %3231 = vrot.lane.b32.xlu0 %v3230_v28, %s4171_s3 }
0x3103   :  { %v3217_v62 = vpop.permute.xlu1 %3216 }
0x3104   :  { %v3219_v20 = vsel %vm3197_vm7, %v3217_v62, -100.0 }
0x3105   :  { %v3222_v12 = vpop.permute.xlu0 %3221 }
0x3106   :  { %v3224_v32 = vsel %vm3197_vm7, %v3222_v12, -100.0 }
0x3107   :  { %v3207_v59 = vpop.permute.xlu1 %3206 }
0x3108   :  { %v3209_v61 = vsel %vm3197_vm7, %v3207_v59, -100.0 }
0x3109   :  { %v3202_v1 = vpop.permute.xlu0 %3201 }
0x310a   :  { %v3204_v43 = vsel %vm3197_vm7, %v3202_v1, -100.0 }
0x310b   :  { %v3236_v5 = vsel %vm3235_vm8, %v3198_v23, %v3204_v43  ;;  %v3227_v7 = vpop.permute.xlu1 %3226  ;;  %v3549_v23 = vld [vmem:[%s5290_s13] ss:$0 sm:$0xff] }
0x310c   :  { %v3238_v34 = vsel %vm3237_vm9, %v3236_v5, %v3209_v61  ;;  %v3229_v16 = vsel %vm3197_vm7, %v3227_v7, -100.0 }
0x310d   :  { %v3212_v50 = vpop.permute.xlu0 %3211 }
0x310e   :  { %v3214_v3 = vsel %vm3197_vm7, %v3212_v50, -100.0 }
0x310f   :  { %v3240_v31 = vsel %vm3239_vm10, %v3238_v34, %v3214_v3 }
0x3110   :  { %v3242_v21 = vsel %vm3241_vm11, %v3240_v31, %v3219_v20 }
0x3111   :  { %v3232_v22 = vpop.permute.xlu0 %3231  ;;  %v3244_v17 = vsel %vm3243_vm12, %v3242_v21, %v3224_v32 }
0x3112   :  { %v3234_v6 = vsel %vm3197_vm7, %v3232_v22, -100.0  ;;  %v3246_v38 = vsel %vm3245_vm13, %v3244_v17, %v3229_v16 }
0x3113   :  { %v3248_v41 = vsel %vm3247_vm14, %v3246_v38, %v3234_v6 }
0x3114   :  { %v3250_v26 = vsel %vm3249_vm15, %v3248_v41, -inf }
0x3115   :  { %3251 = vmax.xlane.f32.xlu1 %v3250_v26 }
0x31a2   :  { %v3252_v8 = vpop.xlane.xlu1 %3251 }
0x31a3   :  { %v3253_v47 = vsub.f32 %v3248_v41, %v3252_v8 }
0x31a5   :  { %v3254_v57 = vmul.f32 1.442695, %v3253_v47 }
0x31a7   :  { %3994 = vpow2.f32 %v3254_v57 }
0x31b1   :  { %v3995_v52 = vpop.eup %3994 }
0x31b2   :  { %v3256_v51 = vsel %vm3249_vm15, %v3995_v52, 0.0 }
0x31b3   :  { %3257 = vadd.xlane.f32.xlu0 %v3256_v51 }
0x3240   :  { %v3258_v13 = vpop.xlane.xlu0 %3257 }
0x3241   :  { %3996 = vrcp.f32 %v3258_v13 }
0x324b   :  { %v3997_v63 = vpop.eup %3996 }
0x324c   :  { %v3260_v0 = vmul.f32 %v3997_v63, %v3995_v52 }
0x324e   :  { %3269 = vperm.xlu1 %3794, %v3260_v0   ;;  %3263 = vperm.xlu0 %3793, %v3260_v0  }
0x3252   :  { %3795 = vset.pattern.permute.xlu1 %v4161_v39  ;;  %3801 = vset.pattern.permute.xlu0 %v4154_v37  ;;  %v3310_v39 = vld [vmem:[%s5287_s10] sm:$0xff] }
0x3253   :  { %3275 = vperm.xlu1 %3795, %v3260_v0  }
0x3257   :  { %3796 = vset.pattern.permute.xlu1 %v4163_v9  ;;  %v3311_v9 = vld [vmem:[%s5287_s10 + $0x8] sm:$0xff] }
0x3258   :  { %3281 = vperm.xlu1 %3796, %v3260_v0  }
0x325c   :  { %3797 = vset.pattern.permute.xlu1 %v4162_v55  ;;  %v3739_v55 = vpack.c.bf16 %v3311_v9, %v3310_v39 }
0x325d   :  { %3287 = vperm.xlu1 %3797, %v3260_v0  }
0x325e   :  { %3740 = vmatpush3.bf16.msra.mxu1 %v3739_v55 }
0x3261   :  { %3798 = vset.pattern.permute.xlu1 %v5294_v48 }
0x3262   :  { %3293 = vperm.xlu1 %3798, %v3260_v0  }
0x3266   :  { %3799 = vset.pattern.permute.xlu1 %v5295_v25 }
0x3267   :  { %3299 = vperm.xlu1 %3799, %v3260_v0  }
0x326b   :  { %3800 = vset.pattern.permute.xlu1 %v4154_v37 }
0x326c   :  { %3305 = vperm.xlu1 %3800, %v3260_v0  }
0x32cd   :  { %v3270_v14 = vpop.permute.xlu1 %3269  ;;  %v3264_v24 = vpop.permute.xlu0 %3263 }
0x32ce   :  { %v3272_v27 = vmul.f32 %v3270_v14, %v5173_v44  ;;  %v3266_v33 = vmul.f32 %v3264_v24, %v5191_v35 }
0x32d0   :  { %v3273_v54 = vadd.f32 %v3272_v27, %v3266_v33 }
0x32d2   :  { %v3276_v56 = vpop.permute.xlu1 %3275 }
0x32d3   :  { %v3278_v29 = vmul.f32 %v3276_v56, %v5177_v19 }
0x32d5   :  { %v3279_v30 = vadd.f32 %v3278_v29, %v3273_v54 }
0x32d7   :  { %v3282_v36 = vpop.permute.xlu1 %3281 }
0x32d8   :  { %v3284_v49 = vmul.f32 %v3282_v36, %v5181_v40  ;;  %v3393_v40 = vld [vmem:[%s5289_s12] sm:$0xff] }
0x32da   :  { %v3285_v42 = vadd.f32 %v3284_v49, %v3279_v30 }
0x32dc   :  { %v3288_v58 = vpop.permute.xlu1 %3287 }
0x32dd   :  { %v3290_v37 = vmul.f32 %v3288_v58, %v5208_v45 }
0x32df   :  { %v3291_v2 = vadd.f32 %v3290_v37, %v3285_v42 }
0x32e1   :  { %v3294_v10 = vpop.permute.xlu1 %3293 }
0x32e2   :  { %v3296_v18 = vmul.f32 %v3294_v10, %v5187_v46  ;;  %v3394_v46 = vld [vmem:[%s5289_s12 + $0x8] sm:$0xff] }
0x32e3   :  { %v3742_v45 = vpack.c.bf16 %v3394_v46, %v3393_v40 }
0x32e4   :  { %v3297_v62 = vadd.f32 %v3296_v18, %v3291_v2 }
0x32e5   :  { %3743 = vmatpush3.bf16.msra.mxu0 %v3742_v45 }
0x32e6   :  { %v3300_v11 = vpop.permute.xlu1 %3299 }
0x32e7   :  { %v3302_v28 = vmul.f32 %v3300_v11, %v5195_v15  ;;  %v3547_v15 = vld [vmem:[%s5288_s11] ss:$0 sm:$0xff]  ;;  %s4111_s11 = scalar_lea.vmem %s3484_s21, 32 }
0x32e8   :  { %p4112_p12 = scmp.ne.s32.totalorder %s3484_s21, %s4111_s11  ;;  %p4117_p0 = scmp.lt.s32.totalorder %s4111_s11, %s4111_s11 }
0x32e9   :  { %v3303_v12 = vadd.f32 %v3302_v28, %v3297_v62 }
0x32ea   :  { %p4118_p1 = por %p4117_p0, %p4116_p13 }
0x32eb   :  { %v3306_v44 = vpop.permute.xlu1 %3305 }
0x32ec   :  { %v3308_v35 = vmul.f32 %v3306_v44, %v5201_v4  ;;  %p4119_p2 = pnand %p4118_p1, %p4112_p12 }
0x32ee   :  { %v3309_v19 = vadd.f32 %v3308_v35, %v3303_v12 }
0x32f0   :  { %3713 = vmatmul.mubr.msk.f32.vlgmr.msra.gmra.mrb[20].mxu1 %vm1651_vm6, %v3309_v19 }
0x33c3   :  { %v3388_v60 = vpop.f32.mrb[20].mxu1 }
0x33c4   :  { %v3389_v59 = vadd.f32 %v3547_v15, %v3388_v60  ;;  %v3714_v4 = vpop.f32.mrb[21].mxu1 }
0x33c6   :  { %3998 = vtanh.f32 %v3389_v59 }
0x33d0   :  { %v3999_v1 = vpop.eup %3998 }
0x33d1   :  { %3720 = vmatmul.mubr.msk.f32.vlgmr.msra.gmra.mrb[18].mxu0 %vm1651_vm6, %v3999_v1 }
0x34a4   :  { %v3471_v43 = vpop.f32.mrb[18].mxu0 }
0x34a5   :  { %v3472_v5 = vadd.f32 %v3549_v23, %v3471_v43  ;;  %v3721_v61 = vpop.f32.mrb[19].mxu0 }
0x34a7   :  { %3476 = vst.msk [vmem:[#allocation12] sm:$0x3] %vm3475_vm0, %v3472_v5 }
0x34a8   :  { %4122 = shalt.err (!%p4119_p2)
}
0x34a9   :  { %s4123_s24 = scalar_lea.hbm %s5291_s14, 32 }
0x34aa   :  { %p4124_p3 = scmp.ne.s32.totalorder %s5291_s14, %s4123_s24  ;;  %p4127_p4 = scmp.lt.u32.totalorder %s4123_s24, %s5291_s14 }
0x34ac   :  { %p4129_p5 = pnand %p4127_p4, %p4124_p3 }
0x34ae   :  { %4132 = shalt.err (!%p4129_p5)
}
0x34af   :  { %3486 = dma.vmem_to_hbm [thread:$0]  %s3484_s21, 32, %s5291_s14, [#allocation5]  }
0x34b0   :  { %4139 = dma.done.wait [#allocation5], 32  }
0x34b1   :  { %4140 = vsyncadd [#allocation5], 4294967264 }
0x34b2   :  { %3490 = vsyncpa [#allocation4], 1 }
0x34b3   :  { %3491 = vsyncpa [#allocation7], 1 }
0x34b4   :  { %3492 = vsyncpa [#allocation10], 1 }
0x34b5   :  { %3493 = vsyncpa [#allocation5], 1 }

</bundles_post_ra>
